<compile_context>
chip_gen: v6e
topology: v6e:2x2x1
jax: 0.10.0
libtpu: 0.0.40
codegen_flags: <defaults>
</compile_context>

<pallas_src>
import functools

import numpy as np

import jax
import jax.numpy as jnp
from jax import lax
from jax.experimental import pallas as pl
from jax.experimental.pallas import tpu as pltpu

KSIZE = 4
STRIDE = 2
LRELU_SLOPE = 0.2
BN_EPS = 1e-5
LANE = 128
VMEM_LIMIT = 32 * 1024 * 1024


def _ceil_to(x, m):
    return ((x + m - 1) // m) * m


def _pick_block_batch(B, target=8):
    """Largest divisor of B that is <= target (images per grid step)."""
    bt = 1
    for d in range(1, min(B, target) + 1):
        if B % d == 0:
            bt = d
    return bt


# ----------------------------- Pallas kernels ------------------------------ #
def _conv1_stats_kernel(p_ref, w_ref, y_ref, s_ref, q_ref):
    """Layer 1: Y = P @ W1 (bf16 MXU, f32 acc) + per-channel sum / sum-of-squares.

    p_ref: (Bt*M1P, K1)   bf16 im2col patches of Bt images (zero rows padded)
    w_ref: (K1, C1p)      bf16 weight matrix (resident)
    y_ref: (Bt*M1P, C1p)  bf16 pre-BN conv output
    s_ref/q_ref: (1, C1p) f32  resident stat accumulators
    """
    b = pl.program_id(0)

    @pl.when(b == 0)
    def _init():
        s_ref[...] = jnp.zeros_like(s_ref)
        q_ref[...] = jnp.zeros_like(q_ref)

    y = jnp.dot(p_ref[...], w_ref[...], preferred_element_type=jnp.float32)
    y_ref[...] = y.astype(y_ref.dtype)
    # Padded rows are all-zero patches (and conv bias is dropped), so they
    # contribute exactly 0 to the sums; the true count divisor is used outside.
    s_ref[...] += jnp.sum(y, axis=0, keepdims=True)
    q_ref[...] += jnp.sum(y * y, axis=0, keepdims=True)


def _bn1_conv2_stats_kernel(m2_true, y1_ref, ss_ref, sel_ref, w2_ref,
                            y2_ref, s_ref, q_ref, patch_ref):
    """Fused BN1(scale/shift) + LeakyReLU + layer-2 conv + BN2 stats.

    y1_ref:  (Bt, M1P, C1p)     bf16 pre-BN layer-1 output
    ss_ref:  (2, C1p)           f32  [scale; shift] for BN1 (resident)
    sel_ref: (16*M2P, M1P)      bf16 0/1 row-gather matrix, rows (tap, m2) (resident)
    w2_ref:  (16*C1p, C2p)      bf16 tap-concatenated layer-2 weights (resident)
    y2_ref:  (Bt, M2P, C2p)     bf16 pre-BN layer-2 output (padded rows zeroed)
    s_ref/q_ref: (1, C2p)       f32  resident stat accumulators
    patch_ref:   (M2P, 16*C1p)  bf16 VMEM scratch for the im2col patch matrix
    """
    b = pl.program_id(0)

    @pl.when(b == 0)
    def _init():
        s_ref[...] = jnp.zeros_like(s_ref)
        q_ref[...] = jnp.zeros_like(q_ref)

    bt = y1_ref.shape[0]
    c1p = y1_ref.shape[2]
    m2p = y2_ref.shape[1]
    n_taps = patch_ref.shape[1] // c1p

    ss = ss_ref[...]
    scale = ss[0:1, :]
    shift = ss[1:2, :]
    # Mask for the padded spatial rows (rows >= 25 of each image): they carry
    # lrelu(shift) garbage after BN and must not reach y2 or the BN2 stats.
    rmask = (lax.broadcasted_iota(jnp.int32, (m2p, 1), 0) < m2_true
             ).astype(jnp.float32)

    def body(img, carry):
        a1 = y1_ref[img].astype(jnp.float32) * scale + shift
        a1 = jnp.where(a1 >= 0.0, a1, LRELU_SLOPE * a1)          # LeakyReLU(0.2)
        a1 = a1.astype(jnp.bfloat16)                              # (M1P, C1p)

        # Row gather as ONE well-shaped exact 0/1 selection matmul:
        #   g[t*M2P + m2, c] = a1[r1(m2, t), c]
        g = jnp.dot(sel_ref[...], a1,
                    preferred_element_type=jnp.float32).astype(jnp.bfloat16)

        # 16 static lane-offset copies turn the (tap, m2)-on-sublanes layout
        # into (m2)-on-sublanes x (tap, c)-on-lanes, so the conv is a single
        # K = 16*C1p matmul (fills the MXU contraction dim on v6e/v7x).
        for t in range(n_taps):
            patch_ref[:, t * c1p:(t + 1) * c1p] = g[t * m2p:(t + 1) * m2p, :]

        y2 = jnp.dot(patch_ref[...], w2_ref[...],
                     preferred_element_type=jnp.float32)          # (M2P, C2p)
        y2 = y2 * rmask
        y2_ref[img] = y2.astype(y2_ref.dtype)
        s_ref[...] += jnp.sum(y2, axis=0, keepdims=True)
        q_ref[...] += jnp.sum(y2 * y2, axis=0, keepdims=True)
        return carry

    lax.fori_loop(0, bt, body, 0, unroll=True)


def _bn2_conv3_kernel(y2_ref, ss_ref, w3_ref, o_ref):
    """Fused BN2(scale/shift) + LeakyReLU + final 1-channel conv.

    The final conv is a masked VPU multiply + sublane reduction (the 4x4x2H
    kernel is embedded in a dense (M2P, C2p) weight mask), avoiding an (M,1)
    MXU matvec and masked partial stores.  The per-channel partial sums are
    stored lane-dense; the trailing 128-lane reduction + bias is XLA glue.
    """
    ss = ss_ref[...]
    scale = ss[0:1, :][None]                         # (1, 1, C2p)
    shift = ss[1:2, :][None]
    a2 = y2_ref[...].astype(jnp.float32) * scale + shift
    a2 = jnp.where(a2 >= 0.0, a2, LRELU_SLOPE * a2)
    o_ref[...] = jnp.sum(a2 * w3_ref[...][None, :, :], axis=1, keepdims=True)


# ------------------------------ host helpers -------------------------------- #
def _im2col(x_nhwc):
    """4x4 stride-2 VALID patches: (B, Ho*Wo, kh*kw*Cin), column order (kh, kw, Cin)."""
    B, Hh, Ww, C = x_nhwc.shape
    Ho = (Hh - KSIZE) // STRIDE + 1
    Wo = (Ww - KSIZE) // STRIDE + 1
    cols = []
    for i in range(KSIZE):
        for j in range(KSIZE):
            cols.append(
                x_nhwc[:, i:i + STRIDE * Ho:STRIDE, j:j + STRIDE * Wo:STRIDE, :])
    patches = jnp.stack(cols, axis=3)                 # (B, Ho, Wo, kh*kw, C)
    return patches.reshape(B, Ho * Wo, KSIZE * KSIZE * C), Ho, Wo


def _conv_w_matrix(w, cout_pad):
    """(Cout, Cin, kh, kw) -> (kh*kw*Cin, Cout_pad) bf16, matching im2col order."""
    cout, cin, kh, kw = w.shape
    m = jnp.transpose(w, (2, 3, 1, 0)).reshape(kh * kw * cin, cout)
    return jnp.pad(m, ((0, 0), (0, cout_pad - cout))).astype(jnp.bfloat16)


def _conv_w_cat(w, cin_pad, cout_pad):
    """(Cout, Cin, kh, kw) -> (kh*kw*Cin_pad, Cout_pad) bf16, rows grouped by tap."""
    cout, cin, kh, kw = w.shape
    taps = jnp.transpose(w, (2, 3, 1, 0)).reshape(kh * kw, cin, cout)
    taps = jnp.pad(taps, ((0, 0), (0, cin_pad - cin), (0, cout_pad - cout)))
    return taps.reshape(kh * kw * cin_pad, cout_pad).astype(jnp.bfloat16)


def _selection_matrix(hin, hout, m1_pad, m2_pad):
    """sel[t*m2_pad + m2, r1] = 1 iff layer-1 row r1 feeds tap t of output m2."""
    kk = KSIZE * KSIZE
    sel = np.zeros((kk * m2_pad, m1_pad), np.float32)
    for i in range(KSIZE):
        for j in range(KSIZE):
            t = i * KSIZE + j
            for ho in range(hout):
                for wo in range(hout):
                    r1 = (STRIDE * ho + i) * hin + (STRIDE * wo + j)
                    sel[t * m2_pad + ho * hout + wo, r1] = 1.0
    return sel


def _pad_channels(v, n, fill):
    v = v.astype(jnp.float32)
    return jnp.concatenate([v, jnp.full((n - v.shape[0],), fill, jnp.float32)])


def _bn_scale_shift(s, q, gamma, beta, count):
    """Train-mode BN (biased variance, eps=1e-5) folded into scale/shift."""
    mean = s[0] / count
    var = jnp.maximum(q[0] / count - mean * mean, 0.0)
    scale = gamma * jax.lax.rsqrt(var + BN_EPS)
    shift = beta - mean * scale
    return jnp.stack([scale, shift], axis=0)          # (2, C)


def _mosaic_params(semantics):
    return pltpu.CompilerParams(dimension_semantics=semantics,
                                vmem_limit_bytes=VMEM_LIMIT)


# ----------------------------- pallas_call wrappers ------------------------- #
def _layer1(p1_2d, w1m, nblk, rows_blk, K1, C1p):
    total_rows = p1_2d.shape[0]
    return pl.pallas_call(
        _conv1_stats_kernel,
        grid=(nblk,),
        in_specs=[
            pl.BlockSpec((rows_blk, K1), lambda b: (b, 0)),
            pl.BlockSpec((K1, C1p), lambda b: (0, 0)),            # resident weights
        ],
        out_specs=(
            pl.BlockSpec((rows_blk, C1p), lambda b: (b, 0)),
            pl.BlockSpec((1, C1p), lambda b: (0, 0)),              # resident accum
            pl.BlockSpec((1, C1p), lambda b: (0, 0)),              # resident accum
        ),
        out_shape=(
            jax.ShapeDtypeStruct((total_rows, C1p), jnp.bfloat16),
            jax.ShapeDtypeStruct((1, C1p), jnp.float32),
            jax.ShapeDtypeStruct((1, C1p), jnp.float32),
        ),
        compiler_params=_mosaic_params(("arbitrary",)),
        cost_estimate=pl.CostEstimate(
            flops=2 * total_rows * K1 * C1p, transcendentals=0,
            bytes_accessed=2 * total_rows * (K1 + C1p) + 2 * K1 * C1p + 8 * C1p),
    )(p1_2d, w1m)


def _layer2(y1_3d, ss1, sel, w2cat, Bt, M1P, M2P, M2, C1p, C2p):
    B = y1_3d.shape[0]
    kk = KSIZE * KSIZE
    K2 = kk * C1p
    kernel = functools.partial(_bn1_conv2_stats_kernel, M2)
    return pl.pallas_call(
        kernel,
        grid=(B // Bt,),
        in_specs=[
            pl.BlockSpec((Bt, M1P, C1p), lambda b: (b, 0, 0)),
            pl.BlockSpec((2, C1p), lambda b: (0, 0)),              # resident scale/shift
            pl.BlockSpec((kk * M2P, M1P), lambda b: (0, 0)),       # resident selection
            pl.BlockSpec((K2, C2p), lambda b: (0, 0)),             # resident weights
        ],
        out_specs=(
            pl.BlockSpec((Bt, M2P, C2p), lambda b: (b, 0, 0)),
            pl.BlockSpec((1, C2p), lambda b: (0, 0)),
            pl.BlockSpec((1, C2p), lambda b: (0, 0)),
        ),
        out_shape=(
            jax.ShapeDtypeStruct((B, M2P, C2p), jnp.bfloat16),
            jax.ShapeDtypeStruct((1, C2p), jnp.float32),
            jax.ShapeDtypeStruct((1, C2p), jnp.float32),
        ),
        scratch_shapes=[pltpu.VMEM((M2P, K2), jnp.bfloat16)],
        compiler_params=_mosaic_params(("arbitrary",)),
        cost_estimate=pl.CostEstimate(
            flops=2 * B * (kk * M2P * M1P * C1p + M2P * K2 * C2p),
            transcendentals=0,
            bytes_accessed=(2 * B * M1P * C1p + 2 * B * M2P * C2p
                            + 2 * (kk * M2P * M1P + K2 * C2p)
                            + 8 * C1p + 16 * C2p)),
    )(y1_3d, ss1, sel, w2cat)


def _layer3(y2_3d, ss2, w3row, Bt, M2P, C2p):
    B = y2_3d.shape[0]
    return pl.pallas_call(
        _bn2_conv3_kernel,
        grid=(B // Bt,),
        in_specs=[
            pl.BlockSpec((Bt, M2P, C2p), lambda b: (b, 0, 0)),
            pl.BlockSpec((2, C2p), lambda b: (0, 0)),
            pl.BlockSpec((M2P, C2p), lambda b: (0, 0)),
        ],
        out_specs=pl.BlockSpec((Bt, 1, C2p), lambda b: (b, 0, 0)),
        out_shape=jax.ShapeDtypeStruct((B, 1, C2p), jnp.float32),
        compiler_params=_mosaic_params(("parallel",)),
        cost_estimate=pl.CostEstimate(
            flops=4 * B * M2P * C2p, transcendentals=0,
            bytes_accessed=2 * B * M2P * C2p + 4 * M2P * C2p + 4 * B * C2p
                           + 8 * C2p),
    )(y2_3d, ss2, w3row)


# ------------------------------- forward ------------------------------------ #
@jax.jit
def discriminator_28_forward(params, image_nchw):
    """image_nchw: (B, im_chan, 28, 28) float32 -> (B, 1) float32."""
    x = jnp.transpose(image_nchw, (0, 2, 3, 1)).astype(jnp.float32)   # NHWC
    B, _, _, cin = x.shape
    H = params["w1"].shape[0]
    H2 = params["w2"].shape[0]
    C1p = _ceil_to(H, LANE)
    C2p = _ceil_to(H2, LANE)

    Bt = _pick_block_batch(B)
    nblk = B // Bt

    # ---- layer 1: host-side im2col (tiny), batched MXU matmul + BN1 stats
    p1, Ho1, Wo1 = _im2col(x)                       # (B, 169, 16*cin)
    M1 = Ho1 * Wo1
    M1P = _ceil_to(M1, 16)                          # 176: aligned bf16 sublanes
    K1 = KSIZE * KSIZE * cin
    p1 = jnp.pad(p1, ((0, 0), (0, M1P - M1), (0, 0))).astype(jnp.bfloat16)
    p1_2d = p1.reshape(B * M1P, K1)                 # contiguous 2D, big row blocks
    w1m = _conv_w_matrix(params["w1"], C1p)
    # Conv biases of blocks 1-2 are dropped: train-mode BatchNorm cancels them.
    y1_2d, s1, q1 = _layer1(p1_2d, w1m, nblk, Bt * M1P, K1, C1p)
    ss1 = _bn_scale_shift(s1, q1,
                          _pad_channels(params["g1"], C1p, 1.0),
                          _pad_channels(params["be1"], C1p, 0.0),
                          float(B * M1))

    # ---- layer 2: fused BN1 + LeakyReLU + conv2 (single-gather + K=16*C1p matmul)
    Ho2 = (Ho1 - KSIZE) // STRIDE + 1
    M2 = Ho2 * Ho2                                  # 25
    M2P = _ceil_to(M2, 8)                           # 32
    sel = jnp.asarray(_selection_matrix(Ho1, Ho2, M1P, M2P), jnp.bfloat16)
    w2cat = _conv_w_cat(params["w2"], C1p, C2p)     # (16*C1p, C2p)
    y1_3d = y1_2d.reshape(B, M1P, C1p)
    y2, s2, q2 = _layer2(y1_3d, ss1, sel, w2cat, Bt, M1P, M2P, M2, C1p, C2p)
    ss2 = _bn_scale_shift(s2, q2,
                          _pad_channels(params["g2"], C2p, 1.0),
                          _pad_channels(params["be2"], C2p, 0.0),
                          float(B * M2))

    # ---- layer 3: fused BN2 + LeakyReLU + 1-channel conv as masked reduction
    w3 = params["w3"]                                # (1, 2H, 4, 4)
    w3_hwc = jnp.transpose(w3[0], (1, 2, 0)).astype(jnp.float32)   # (4, 4, 2H)
    w3row = jnp.zeros((Ho2, Ho2, C2p), jnp.float32)
    w3row = w3row.at[:KSIZE, :KSIZE, :H2].set(w3_hwc)
    w3row = w3row.reshape(M2, C2p)
    w3row = jnp.pad(w3row, ((0, M2P - M2), (0, 0)))
    o = _layer3(y2, ss2, w3row, Bt, M2P, C2p)        # (B, 1, C2p) partial sums

    # Final 128-lane reduction + conv3 bias: trivial XLA glue.
    return jnp.sum(o, axis=2) + params["b3"].astype(jnp.float32).reshape(1, 1)


# ------------------------- reference / parameters --------------------------- #
def _reference(params, image_nchw):
    """Pure-JAX reference matching the PyTorch module in train() mode."""
    x = jnp.transpose(image_nchw, (0, 2, 3, 1)).astype(jnp.float32)

    def conv(x, w, b):
        y = jax.lax.conv_general_dilated(
            x, jnp.transpose(w, (2, 3, 1, 0)), (STRIDE, STRIDE), "VALID",
            dimension_numbers=("NHWC", "HWIO", "NHWC"))
        return y + b

    def bn_lrelu(y, g, be):
        mean = jnp.mean(y, axis=(0, 1, 2))
        var = jnp.mean((y - mean) ** 2, axis=(0, 1, 2))
        yn = (y - mean) * jax.lax.rsqrt(var + BN_EPS) * g + be
        return jnp.where(yn >= 0.0, yn, LRELU_SLOPE * yn)

    h = bn_lrelu(conv(x, params["w1"], params["b1"]), params["g1"], params["be1"])
    h = bn_lrelu(conv(h, params["w2"], params["b2"]), params["g2"], params["be2"])
    h = conv(h, params["w3"], params["b3"])
    return h.reshape(x.shape[0], -1)


def init_params(key, im_chan=1, hidden_dim=64):
    """Deterministic synthetic parameters, PyTorch weight layouts."""
    ks = jax.random.split(key, 6)
    H = hidden_dim

    def conv_w(k, cout, cin):
        return 0.05 * jax.random.normal(k, (cout, cin, KSIZE, KSIZE), jnp.float32)

    def conv_b(k, cout):
        return 0.05 * jax.random.normal(k, (cout,), jnp.float32)

    return {
        "w1": conv_w(ks[0], H, im_chan),
        "b1": conv_b(ks[1], H),
        "g1": jnp.ones((H,), jnp.float32),        # BN gamma (PyTorch default init)
        "be1": jnp.zeros((H,), jnp.float32),      # BN beta
        "w2": conv_w(ks[2], 2 * H, H),
        "b2": conv_b(ks[3], 2 * H),
        "g2": jnp.ones((2 * H,), jnp.float32),
        "be2": jnp.zeros((2 * H,), jnp.float32),
        "w3": conv_w(ks[4], 1, 2 * H),
        "b3": conv_b(ks[5], 1),
    }


if __name__ == "__main__":
    key = jax.random.PRNGKey(0)
    k_param, k_img = jax.random.split(key)

    # 28x28 spatial is required by the 3x(k4,s2) stack; keep batch/hidden small.
    batch, im_chan, hidden_dim = 2, 1, 16
    image = jax.random.normal(k_img, (batch, im_chan, 28, 28), jnp.float32)
    params = init_params(k_param, im_chan=im_chan, hidden_dim=hidden_dim)

    out = discriminator_28_forward(params, image)
    out = jax.block_until_ready(out)

    assert out.shape == (batch, 1), out.shape
    assert out.dtype == jnp.float32

    # Loose tolerance: bf16 MXU inputs / bf16 intermediates vs f32 reference.
    ref = _reference(params, image)
    err = float(jnp.max(jnp.abs(out - ref)))
    tol = 0.1 * max(1.0, float(jnp.max(jnp.abs(ref))))
    assert err < tol, (err, tol)

    print("KERNEL_OK")
</pallas_src>

<mosaic_0001>
module attributes {stable_mosaic.version = 11 : i64} {
  func.func @_conv1_stats_kernel(%arg0: i32, %arg1: memref<352x16xbf16, #tpu.memory_space<vmem>>, %arg2: memref<16x128xbf16, #tpu.memory_space<vmem>>, %arg3: memref<352x128xbf16, #tpu.memory_space<vmem>>, %arg4: memref<1x128xf32, #tpu.memory_space<vmem>>, %arg5: memref<1x128xf32, #tpu.memory_space<vmem>>) attributes {dimension_semantics = [#tpu.dimension_semantics<arbitrary>], iteration_bounds = array<i64: 1>, scalar_prefetch = 0 : i64, scratch_operands = 0 : i64, tpu.core_type = #tpu.core_type<tc>, window_params = [{transform_indices = @transform_0, window_bounds = array<i64: 352, 16>}, {pipeline_mode = #tpu.pipeline_mode<synchronous>, transform_indices = @transform_1, window_bounds = array<i64: 16, 128>}, {transform_indices = @transform_2, window_bounds = array<i64: 352, 128>}, {pipeline_mode = #tpu.pipeline_mode<synchronous>, transform_indices = @transform_3, window_bounds = array<i64: 1, 128>}, {pipeline_mode = #tpu.pipeline_mode<synchronous>, transform_indices = @transform_4, window_bounds = array<i64: 1, 128>}]} {
    %c0_i32 = arith.constant 0 : i32
    %0 = arith.cmpi eq, %arg0, %c0_i32 : i32
    %1 = arith.extui %0 : i1 to i32
    %c0_i32_0 = arith.constant 0 : i32
    %2 = arith.cmpi ne, %1, %c0_i32_0 : i32
    scf.if %2 {
      %cst_16 = arith.constant 0.000000e+00 : f32
      %19 = vector.broadcast %cst_16 : f32 to vector<1x128xf32>
      %c0_17 = arith.constant 0 : index
      %c0_18 = arith.constant 0 : index
      %20 = vector.load %arg4[%c0_17, %c0_18] : memref<1x128xf32, #tpu.memory_space<vmem>>, vector<1x128xf32>
      tpu.vector_store %arg4[%c0_17, %c0_18], %19 {strides = array<i32>} : memref<1x128xf32, #tpu.memory_space<vmem>>, vector<1x128xf32>,
      %cst_19 = arith.constant 0.000000e+00 : f32
      %21 = vector.broadcast %cst_19 : f32 to vector<1x128xf32>
      %c0_20 = arith.constant 0 : index
      %c0_21 = arith.constant 0 : index
      %22 = vector.load %arg5[%c0_20, %c0_21] : memref<1x128xf32, #tpu.memory_space<vmem>>, vector<1x128xf32>
      tpu.vector_store %arg5[%c0_20, %c0_21], %21 {strides = array<i32>} : memref<1x128xf32, #tpu.memory_space<vmem>>, vector<1x128xf32>,
    } else {
    }
    %c0 = arith.constant 0 : index
    %c0_1 = arith.constant 0 : index
    %3 = vector.load %arg1[%c0, %c0_1] : memref<352x16xbf16, #tpu.memory_space<vmem>>, vector<352x16xbf16>
    %c0_2 = arith.constant 0 : index
    %c0_3 = arith.constant 0 : index
    %4 = vector.load %arg2[%c0_2, %c0_3] : memref<16x128xbf16, #tpu.memory_space<vmem>>, vector<16x128xbf16>
    %cst = arith.constant dense<0.000000e+00> : vector<352x128xf32>
    %5 = tpu.matmul %3, %4, %cst {dimension_numbers = #tpu.dot_dimension_numbers<[1], [0], [0], [1], [0, 0, 1, 1], [], []>} : vector<352x16xbf16>, vector<16x128xbf16>, vector<352x128xf32> -> vector<352x128xf32>
    %6 = arith.truncf %5 : vector<352x128xf32> to vector<352x128xbf16>
    %c0_4 = arith.constant 0 : index
    %c0_5 = arith.constant 0 : index
    %7 = vector.load %arg3[%c0_4, %c0_5] : memref<352x128xbf16, #tpu.memory_space<vmem>>, vector<352x128xbf16>
    tpu.vector_store %arg3[%c0_4, %c0_5], %6 {strides = array<i32>} : memref<352x128xbf16, #tpu.memory_space<vmem>>, vector<352x128xbf16>,
    %c0_6 = arith.constant 0 : index
    %c0_7 = arith.constant 0 : index
    %8 = vector.load %arg4[%c0_6, %c0_7] : memref<1x128xf32, #tpu.memory_space<vmem>>, vector<1x128xf32>
    %cst_8 = arith.constant dense<0.000000e+00> : vector<128xf32>
    %9 = vector.multi_reduction <add>, %5, %cst_8 [0] : vector<352x128xf32> to vector<128xf32>
    %10 = vector.shape_cast %9 : vector<128xf32> to vector<1x128xf32>
    %11 = arith.addf %8, %10 : vector<1x128xf32>
    %c0_9 = arith.constant 0 : index
    %c0_10 = arith.constant 0 : index
    %12 = vector.load %arg4[%c0_9, %c0_10] : memref<1x128xf32, #tpu.memory_space<vmem>>, vector<1x128xf32>
    tpu.vector_store %arg4[%c0_9, %c0_10], %11 {strides = array<i32>} : memref<1x128xf32, #tpu.memory_space<vmem>>, vector<1x128xf32>,
    %c0_11 = arith.constant 0 : index
    %c0_12 = arith.constant 0 : index
    %13 = vector.load %arg5[%c0_11, %c0_12] : memref<1x128xf32, #tpu.memory_space<vmem>>, vector<1x128xf32>
    %14 = arith.mulf %5, %5 : vector<352x128xf32>
    %cst_13 = arith.constant dense<0.000000e+00> : vector<128xf32>
    %15 = vector.multi_reduction <add>, %14, %cst_13 [0] : vector<352x128xf32> to vector<128xf32>
    %16 = vector.shape_cast %15 : vector<128xf32> to vector<1x128xf32>
    %17 = arith.addf %13, %16 : vector<1x128xf32>
    %c0_14 = arith.constant 0 : index
    %c0_15 = arith.constant 0 : index
    %18 = vector.load %arg5[%c0_14, %c0_15] : memref<1x128xf32, #tpu.memory_space<vmem>>, vector<1x128xf32>
    tpu.vector_store %arg5[%c0_14, %c0_15], %17 {strides = array<i32>} : memref<1x128xf32, #tpu.memory_space<vmem>>, vector<1x128xf32>,
    return
  }
  func.func @transform_0(%arg0: i32) -> (i32, i32) {
    %c0_i32 = arith.constant 0 : i32
    %c0_i32_0 = arith.constant 0 : i32
    return %arg0, %c0_i32 : i32, i32
  }
  func.func @transform_1(%arg0: i32) -> (i32, i32) {
    %c0_i32 = arith.constant 0 : i32
    %c0_i32_0 = arith.constant 0 : i32
    %c0_i32_1 = arith.constant 0 : i32
    return %c0_i32, %c0_i32_0 : i32, i32
  }
  func.func @transform_2(%arg0: i32) -> (i32, i32) {
    %c0_i32 = arith.constant 0 : i32
    %c0_i32_0 = arith.constant 0 : i32
    return %arg0, %c0_i32 : i32, i32
  }
  func.func @transform_3(%arg0: i32) -> (i32, i32) {
    %c0_i32 = arith.constant 0 : i32
    %c0_i32_0 = arith.constant 0 : i32
    %c0_i32_1 = arith.constant 0 : i32
    return %c0_i32, %c0_i32_0 : i32, i32
  }
  func.func @transform_4(%arg0: i32) -> (i32, i32) {
    %c0_i32 = arith.constant 0 : i32
    %c0_i32_0 = arith.constant 0 : i32
    %c0_i32_1 = arith.constant 0 : i32
    return %c0_i32, %c0_i32_0 : i32, i32
  }
}

module attributes {stable_mosaic.version = 11 : i64} {
  func.func @_bn1_conv2_stats_kernel(%arg0: i32, %arg1: memref<2x176x128xbf16, #tpu.memory_space<vmem>>, %arg2: memref<2x128xf32, #tpu.memory_space<vmem>>, %arg3: memref<512x176xbf16, #tpu.memory_space<vmem>>, %arg4: memref<2048x128xbf16, #tpu.memory_space<vmem>>, %arg5: memref<2x32x128xbf16, #tpu.memory_space<vmem>>, %arg6: memref<1x128xf32, #tpu.memory_space<vmem>>, %arg7: memref<1x128xf32, #tpu.memory_space<vmem>>, %arg8: memref<32x2048xbf16, #tpu.memory_space<vmem>>) attributes {dimension_semantics = [#tpu.dimension_semantics<arbitrary>], iteration_bounds = array<i64: 1>, scalar_prefetch = 0 : i64, scratch_operands = 1 : i64, tpu.core_type = #tpu.core_type<tc>, window_params = [{transform_indices = @transform_0, window_bounds = array<i64: 2, 176, 128>}, {pipeline_mode = #tpu.pipeline_mode<synchronous>, transform_indices = @transform_1, window_bounds = array<i64: 2, 128>}, {pipeline_mode = #tpu.pipeline_mode<synchronous>, transform_indices = @transform_2, window_bounds = array<i64: 512, 176>}, {pipeline_mode = #tpu.pipeline_mode<synchronous>, transform_indices = @transform_3, window_bounds = array<i64: 2048, 128>}, {transform_indices = @transform_4, window_bounds = array<i64: 2, 32, 128>}, {pipeline_mode = #tpu.pipeline_mode<synchronous>, transform_indices = @transform_5, window_bounds = array<i64: 1, 128>}, {pipeline_mode = #tpu.pipeline_mode<synchronous>, transform_indices = @transform_6, window_bounds = array<i64: 1, 128>}]} {
    %c0_i32 = arith.constant 0 : i32
    %0 = arith.cmpi eq, %arg0, %c0_i32 : i32
    %1 = arith.extui %0 : i1 to i32
    %c0_i32_0 = arith.constant 0 : i32
    %2 = arith.cmpi ne, %1, %c0_i32_0 : i32
    scf.if %2 {
      %cst_99 = arith.constant 0.000000e+00 : f32
      %151 = vector.broadcast %cst_99 : f32 to vector<1x128xf32>
      %c0_100 = arith.constant 0 : index
      %c0_101 = arith.constant 0 : index
      %152 = vector.load %arg6[%c0_100, %c0_101] : memref<1x128xf32, #tpu.memory_space<vmem>>, vector<1x128xf32>
      tpu.vector_store %arg6[%c0_100, %c0_101], %151 {strides = array<i32>} : memref<1x128xf32, #tpu.memory_space<vmem>>, vector<1x128xf32>,
      %cst_102 = arith.constant 0.000000e+00 : f32
      %153 = vector.broadcast %cst_102 : f32 to vector<1x128xf32>
      %c0_103 = arith.constant 0 : index
      %c0_104 = arith.constant 0 : index
      %154 = vector.load %arg7[%c0_103, %c0_104] : memref<1x128xf32, #tpu.memory_space<vmem>>, vector<1x128xf32>
      tpu.vector_store %arg7[%c0_103, %c0_104], %153 {strides = array<i32>} : memref<1x128xf32, #tpu.memory_space<vmem>>, vector<1x128xf32>,
    } else {
    }
    %c0 = arith.constant 0 : index
    %c0_1 = arith.constant 0 : index
    %3 = vector.load %arg2[%c0, %c0_1] : memref<2x128xf32, #tpu.memory_space<vmem>>, vector<2x128xf32>
    %4 = vector.extract_strided_slice %3 {offsets = [0, 0], sizes = [1, 128], strides = [1, 1]} : vector<2x128xf32> to vector<1x128xf32>
    %5 = vector.extract_strided_slice %3 {offsets = [1, 0], sizes = [1, 128], strides = [1, 1]} : vector<2x128xf32> to vector<1x128xf32>
    %6 = tpu.iota {dimensions = array<i32: 0>} : vector<32x1xi32>
    %c25_i32 = arith.constant 25 : i32
    %7 = vector.broadcast %c25_i32 : i32 to vector<32x1xi32>
    %8 = arith.cmpi slt, %6, %7 : vector<32x1xi32>
    %9 = arith.extui %8 : vector<32x1xi1> to vector<32x1xi32>
    %10 = arith.sitofp %9 : vector<32x1xi32> to vector<32x1xf32>
    %c0_i32_2 = arith.constant 0 : i32
    %11 = arith.index_cast %c0_i32_2 : i32 to index
    %c0_3 = arith.constant 0 : index
    %c0_4 = arith.constant 0 : index
    %12 = vector.load %arg1[%11, %c0_3, %c0_4] : memref<2x176x128xbf16, #tpu.memory_space<vmem>>, vector<1x176x128xbf16>
    %13 = vector.shape_cast %12 : vector<1x176x128xbf16> to vector<176x128xbf16>
    %14 = arith.extf %13 : vector<176x128xbf16> to vector<176x128xf32>
    %15 = vector.broadcast %4 : vector<1x128xf32> to vector<176x128xf32>
    %16 = arith.mulf %14, %15 : vector<176x128xf32>
    %17 = vector.broadcast %5 : vector<1x128xf32> to vector<176x128xf32>
    %18 = arith.addf %16, %17 : vector<176x128xf32>
    %cst = arith.constant 0.000000e+00 : f32
    %19 = vector.broadcast %cst : f32 to vector<176x128xf32>
    %20 = arith.cmpf oge, %18, %19 : vector<176x128xf32>
    %cst_5 = arith.constant 2.000000e-01 : f32
    %21 = vector.broadcast %cst_5 : f32 to vector<176x128xf32>
    %22 = arith.mulf %21, %18 : vector<176x128xf32>
    %23 = arith.select %20, %18, %22 : vector<176x128xi1>, vector<176x128xf32>
    %24 = arith.truncf %23 : vector<176x128xf32> to vector<176x128xbf16>
    %c0_6 = arith.constant 0 : index
    %c0_7 = arith.constant 0 : index
    %25 = vector.load %arg3[%c0_6, %c0_7] : memref<512x176xbf16, #tpu.memory_space<vmem>>, vector<512x176xbf16>
    %cst_8 = arith.constant dense<0.000000e+00> : vector<512x128xf32>
    %26 = tpu.matmul %25, %24, %cst_8 {dimension_numbers = #tpu.dot_dimension_numbers<[1], [0], [0], [1], [0, 0, 1, 1], [], []>} : vector<512x176xbf16>, vector<176x128xbf16>, vector<512x128xf32> -> vector<512x128xf32>
    %27 = arith.truncf %26 : vector<512x128xf32> to vector<512x128xbf16>
    %28 = vector.extract_strided_slice %27 {offsets = [0, 0], sizes = [32, 128], strides = [1, 1]} : vector<512x128xbf16> to vector<32x128xbf16>
    %c0_9 = arith.constant 0 : index
    %c0_10 = arith.constant 0 : index
    %29 = vector.load %arg8[%c0_9, %c0_10] : memref<32x2048xbf16, #tpu.memory_space<vmem>>, vector<32x128xbf16>
    tpu.vector_store %arg8[%c0_9, %c0_10], %28 {strides = array<i32>} : memref<32x2048xbf16, #tpu.memory_space<vmem>>, vector<32x128xbf16>,
    %30 = vector.extract_strided_slice %27 {offsets = [32, 0], sizes = [32, 128], strides = [1, 1]} : vector<512x128xbf16> to vector<32x128xbf16>
    %c0_11 = arith.constant 0 : index
    %c128 = arith.constant 128 : index
    %31 = vector.load %arg8[%c0_11, %c128] : memref<32x2048xbf16, #tpu.memory_space<vmem>>, vector<32x128xbf16>
    tpu.vector_store %arg8[%c0_11, %c128], %30 {strides = array<i32>} : memref<32x2048xbf16, #tpu.memory_space<vmem>>, vector<32x128xbf16>,
    %32 = vector.extract_strided_slice %27 {offsets = [64, 0], sizes = [32, 128], strides = [1, 1]} : vector<512x128xbf16> to vector<32x128xbf16>
    %c0_12 = arith.constant 0 : index
    %c256 = arith.constant 256 : index
    %33 = vector.load %arg8[%c0_12, %c256] : memref<32x2048xbf16, #tpu.memory_space<vmem>>, vector<32x128xbf16>
    tpu.vector_store %arg8[%c0_12, %c256], %32 {strides = array<i32>} : memref<32x2048xbf16, #tpu.memory_space<vmem>>, vector<32x128xbf16>,
    %34 = vector.extract_strided_slice %27 {offsets = [96, 0], sizes = [32, 128], strides = [1, 1]} : vector<512x128xbf16> to vector<32x128xbf16>
    %c0_13 = arith.constant 0 : index
    %c384 = arith.constant 384 : index
    %35 = vector.load %arg8[%c0_13, %c384] : memref<32x2048xbf16, #tpu.memory_space<vmem>>, vector<32x128xbf16>
    tpu.vector_store %arg8[%c0_13, %c384], %34 {strides = array<i32>} : memref<32x2048xbf16, #tpu.memory_space<vmem>>, vector<32x128xbf16>,
    %36 = vector.extract_strided_slice %27 {offsets = [128, 0], sizes = [32, 128], strides = [1, 1]} : vector<512x128xbf16> to vector<32x128xbf16>
    %c0_14 = arith.constant 0 : index
    %c512 = arith.constant 512 : index
    %37 = vector.load %arg8[%c0_14, %c512] : memref<32x2048xbf16, #tpu.memory_space<vmem>>, vector<32x128xbf16>
    tpu.vector_store %arg8[%c0_14, %c512], %36 {strides = array<i32>} : memref<32x2048xbf16, #tpu.memory_space<vmem>>, vector<32x128xbf16>,
    %38 = vector.extract_strided_slice %27 {offsets = [160, 0], sizes = [32, 128], strides = [1, 1]} : vector<512x128xbf16> to vector<32x128xbf16>
    %c0_15 = arith.constant 0 : index
    %c640 = arith.constant 640 : index
    %39 = vector.load %arg8[%c0_15, %c640] : memref<32x2048xbf16, #tpu.memory_space<vmem>>, vector<32x128xbf16>
    tpu.vector_store %arg8[%c0_15, %c640], %38 {strides = array<i32>} : memref<32x2048xbf16, #tpu.memory_space<vmem>>, vector<32x128xbf16>,
    %40 = vector.extract_strided_slice %27 {offsets = [192, 0], sizes = [32, 128], strides = [1, 1]} : vector<512x128xbf16> to vector<32x128xbf16>
    %c0_16 = arith.constant 0 : index
    %c768 = arith.constant 768 : index
    %41 = vector.load %arg8[%c0_16, %c768] : memref<32x2048xbf16, #tpu.memory_space<vmem>>, vector<32x128xbf16>
    tpu.vector_store %arg8[%c0_16, %c768], %40 {strides = array<i32>} : memref<32x2048xbf16, #tpu.memory_space<vmem>>, vector<32x128xbf16>,
    %42 = vector.extract_strided_slice %27 {offsets = [224, 0], sizes = [32, 128], strides = [1, 1]} : vector<512x128xbf16> to vector<32x128xbf16>
    %c0_17 = arith.constant 0 : index
    %c896 = arith.constant 896 : index
    %43 = vector.load %arg8[%c0_17, %c896] : memref<32x2048xbf16, #tpu.memory_space<vmem>>, vector<32x128xbf16>
    tpu.vector_store %arg8[%c0_17, %c896], %42 {strides = array<i32>} : memref<32x2048xbf16, #tpu.memory_space<vmem>>, vector<32x128xbf16>,
    %44 = vector.extract_strided_slice %27 {offsets = [256, 0], sizes = [32, 128], strides = [1, 1]} : vector<512x128xbf16> to vector<32x128xbf16>
    %c0_18 = arith.constant 0 : index
    %c1024 = arith.constant 1024 : index
    %45 = vector.load %arg8[%c0_18, %c1024] : memref<32x2048xbf16, #tpu.memory_space<vmem>>, vector<32x128xbf16>
    tpu.vector_store %arg8[%c0_18, %c1024], %44 {strides = array<i32>} : memref<32x2048xbf16, #tpu.memory_space<vmem>>, vector<32x128xbf16>,
    %46 = vector.extract_strided_slice %27 {offsets = [288, 0], sizes = [32, 128], strides = [1, 1]} : vector<512x128xbf16> to vector<32x128xbf16>
    %c0_19 = arith.constant 0 : index
    %c1152 = arith.constant 1152 : index
    %47 = vector.load %arg8[%c0_19, %c1152] : memref<32x2048xbf16, #tpu.memory_space<vmem>>, vector<32x128xbf16>
    tpu.vector_store %arg8[%c0_19, %c1152], %46 {strides = array<i32>} : memref<32x2048xbf16, #tpu.memory_space<vmem>>, vector<32x128xbf16>,
    %48 = vector.extract_strided_slice %27 {offsets = [320, 0], sizes = [32, 128], strides = [1, 1]} : vector<512x128xbf16> to vector<32x128xbf16>
    %c0_20 = arith.constant 0 : index
    %c1280 = arith.constant 1280 : index
    %49 = vector.load %arg8[%c0_20, %c1280] : memref<32x2048xbf16, #tpu.memory_space<vmem>>, vector<32x128xbf16>
    tpu.vector_store %arg8[%c0_20, %c1280], %48 {strides = array<i32>} : memref<32x2048xbf16, #tpu.memory_space<vmem>>, vector<32x128xbf16>,
    %50 = vector.extract_strided_slice %27 {offsets = [352, 0], sizes = [32, 128], strides = [1, 1]} : vector<512x128xbf16> to vector<32x128xbf16>
    %c0_21 = arith.constant 0 : index
    %c1408 = arith.constant 1408 : index
    %51 = vector.load %arg8[%c0_21, %c1408] : memref<32x2048xbf16, #tpu.memory_space<vmem>>, vector<32x128xbf16>
    tpu.vector_store %arg8[%c0_21, %c1408], %50 {strides = array<i32>} : memref<32x2048xbf16, #tpu.memory_space<vmem>>, vector<32x128xbf16>,
    %52 = vector.extract_strided_slice %27 {offsets = [384, 0], sizes = [32, 128], strides = [1, 1]} : vector<512x128xbf16> to vector<32x128xbf16>
    %c0_22 = arith.constant 0 : index
    %c1536 = arith.constant 1536 : index
    %53 = vector.load %arg8[%c0_22, %c1536] : memref<32x2048xbf16, #tpu.memory_space<vmem>>, vector<32x128xbf16>
    tpu.vector_store %arg8[%c0_22, %c1536], %52 {strides = array<i32>} : memref<32x2048xbf16, #tpu.memory_space<vmem>>, vector<32x128xbf16>,
    %54 = vector.extract_strided_slice %27 {offsets = [416, 0], sizes = [32, 128], strides = [1, 1]} : vector<512x128xbf16> to vector<32x128xbf16>
    %c0_23 = arith.constant 0 : index
    %c1664 = arith.constant 1664 : index
    %55 = vector.load %arg8[%c0_23, %c1664] : memref<32x2048xbf16, #tpu.memory_space<vmem>>, vector<32x128xbf16>
    tpu.vector_store %arg8[%c0_23, %c1664], %54 {strides = array<i32>} : memref<32x2048xbf16, #tpu.memory_space<vmem>>, vector<32x128xbf16>,
    %56 = vector.extract_strided_slice %27 {offsets = [448, 0], sizes = [32, 128], strides = [1, 1]} : vector<512x128xbf16> to vector<32x128xbf16>
    %c0_24 = arith.constant 0 : index
    %c1792 = arith.constant 1792 : index
    %57 = vector.load %arg8[%c0_24, %c1792] : memref<32x2048xbf16, #tpu.memory_space<vmem>>, vector<32x128xbf16>
    tpu.vector_store %arg8[%c0_24, %c1792], %56 {strides = array<i32>} : memref<32x2048xbf16, #tpu.memory_space<vmem>>, vector<32x128xbf16>,
    %58 = vector.extract_strided_slice %27 {offsets = [480, 0], sizes = [32, 128], strides = [1, 1]} : vector<512x128xbf16> to vector<32x128xbf16>
    %c0_25 = arith.constant 0 : index
    %c1920 = arith.constant 1920 : index
    %59 = vector.load %arg8[%c0_25, %c1920] : memref<32x2048xbf16, #tpu.memory_space<vmem>>, vector<32x128xbf16>
    tpu.vector_store %arg8[%c0_25, %c1920], %58 {strides = array<i32>} : memref<32x2048xbf16, #tpu.memory_space<vmem>>, vector<32x128xbf16>,
    %c0_26 = arith.constant 0 : index
    %c0_27 = arith.constant 0 : index
    %60 = vector.load %arg8[%c0_26, %c0_27] : memref<32x2048xbf16, #tpu.memory_space<vmem>>, vector<32x2048xbf16>
    %c0_28 = arith.constant 0 : index
    %c0_29 = arith.constant 0 : index
    %61 = vector.load %arg4[%c0_28, %c0_29] : memref<2048x128xbf16, #tpu.memory_space<vmem>>, vector<2048x128xbf16>
    %cst_30 = arith.constant dense<0.000000e+00> : vector<32x128xf32>
    %62 = tpu.matmul %60, %61, %cst_30 {dimension_numbers = #tpu.dot_dimension_numbers<[1], [0], [0], [1], [0, 0, 1, 1], [], []>} : vector<32x2048xbf16>, vector<2048x128xbf16>, vector<32x128xf32> -> vector<32x128xf32>
    %63 = vector.broadcast %10 : vector<32x1xf32> to vector<32x128xf32>
    %64 = arith.mulf %62, %63 : vector<32x128xf32>
    %65 = arith.truncf %64 : vector<32x128xf32> to vector<32x128xbf16>
    %66 = arith.index_cast %c0_i32_2 : i32 to index
    %c0_31 = arith.constant 0 : index
    %c0_32 = arith.constant 0 : index
    %67 = vector.load %arg5[%66, %c0_31, %c0_32] : memref<2x32x128xbf16, #tpu.memory_space<vmem>>, vector<1x32x128xbf16>
    %68 = vector.shape_cast %67 : vector<1x32x128xbf16> to vector<32x128xbf16>
    %69 = vector.shape_cast %65 : vector<32x128xbf16> to vector<1x32x128xbf16>
    tpu.vector_store %arg5[%66, %c0_31, %c0_32], %69 {strides = array<i32>} : memref<2x32x128xbf16, #tpu.memory_space<vmem>>, vector<1x32x128xbf16>,
    %c0_33 = arith.constant 0 : index
    %c0_34 = arith.constant 0 : index
    %70 = vector.load %arg6[%c0_33, %c0_34] : memref<1x128xf32, #tpu.memory_space<vmem>>, vector<1x128xf32>
    %cst_35 = arith.constant dense<0.000000e+00> : vector<128xf32>
    %71 = vector.multi_reduction <add>, %64, %cst_35 [0] : vector<32x128xf32> to vector<128xf32>
    %72 = vector.shape_cast %71 : vector<128xf32> to vector<1x128xf32>
    %73 = arith.addf %70, %72 : vector<1x128xf32>
    %c0_36 = arith.constant 0 : index
    %c0_37 = arith.constant 0 : index
    %74 = vector.load %arg6[%c0_36, %c0_37] : memref<1x128xf32, #tpu.memory_space<vmem>>, vector<1x128xf32>
    tpu.vector_store %arg6[%c0_36, %c0_37], %73 {strides = array<i32>} : memref<1x128xf32, #tpu.memory_space<vmem>>, vector<1x128xf32>,
    %c0_38 = arith.constant 0 : index
    %c0_39 = arith.constant 0 : index
    %75 = vector.load %arg7[%c0_38, %c0_39] : memref<1x128xf32, #tpu.memory_space<vmem>>, vector<1x128xf32>
    %76 = arith.mulf %64, %64 : vector<32x128xf32>
    %cst_40 = arith.constant dense<0.000000e+00> : vector<128xf32>
    %77 = vector.multi_reduction <add>, %76, %cst_40 [0] : vector<32x128xf32> to vector<128xf32>
    %78 = vector.shape_cast %77 : vector<128xf32> to vector<1x128xf32>
    %79 = arith.addf %75, %78 : vector<1x128xf32>
    %c0_41 = arith.constant 0 : index
    %c0_42 = arith.constant 0 : index
    %80 = vector.load %arg7[%c0_41, %c0_42] : memref<1x128xf32, #tpu.memory_space<vmem>>, vector<1x128xf32>
    tpu.vector_store %arg7[%c0_41, %c0_42], %79 {strides = array<i32>} : memref<1x128xf32, #tpu.memory_space<vmem>>, vector<1x128xf32>,
    %c1_i32 = arith.constant 1 : i32
    %81 = arith.index_cast %c1_i32 : i32 to index
    %c0_43 = arith.constant 0 : index
    %c0_44 = arith.constant 0 : index
    %82 = vector.load %arg1[%81, %c0_43, %c0_44] : memref<2x176x128xbf16, #tpu.memory_space<vmem>>, vector<1x176x128xbf16>
    %83 = vector.shape_cast %82 : vector<1x176x128xbf16> to vector<176x128xbf16>
    %84 = arith.extf %83 : vector<176x128xbf16> to vector<176x128xf32>
    %85 = vector.broadcast %4 : vector<1x128xf32> to vector<176x128xf32>
    %86 = arith.mulf %84, %85 : vector<176x128xf32>
    %87 = vector.broadcast %5 : vector<1x128xf32> to vector<176x128xf32>
    %88 = arith.addf %86, %87 : vector<176x128xf32>
    %cst_45 = arith.constant 0.000000e+00 : f32
    %89 = vector.broadcast %cst_45 : f32 to vector<176x128xf32>
    %90 = arith.cmpf oge, %88, %89 : vector<176x128xf32>
    %cst_46 = arith.constant 2.000000e-01 : f32
    %91 = vector.broadcast %cst_46 : f32 to vector<176x128xf32>
    %92 = arith.mulf %91, %88 : vector<176x128xf32>
    %93 = arith.select %90, %88, %92 : vector<176x128xi1>, vector<176x128xf32>
    %94 = arith.truncf %93 : vector<176x128xf32> to vector<176x128xbf16>
    %c0_47 = arith.constant 0 : index
    %c0_48 = arith.constant 0 : index
    %95 = vector.load %arg3[%c0_47, %c0_48] : memref<512x176xbf16, #tpu.memory_space<vmem>>, vector<512x176xbf16>
    %cst_49 = arith.constant dense<0.000000e+00> : vector<512x128xf32>
    %96 = tpu.matmul %95, %94, %cst_49 {dimension_numbers = #tpu.dot_dimension_numbers<[1], [0], [0], [1], [0, 0, 1, 1], [], []>} : vector<512x176xbf16>, vector<176x128xbf16>, vector<512x128xf32> -> vector<512x128xf32>
    %97 = arith.truncf %96 : vector<512x128xf32> to vector<512x128xbf16>
    %98 = vector.extract_strided_slice %97 {offsets = [0, 0], sizes = [32, 128], strides = [1, 1]} : vector<512x128xbf16> to vector<32x128xbf16>
    %c0_50 = arith.constant 0 : index
    %c0_51 = arith.constant 0 : index
    %99 = vector.load %arg8[%c0_50, %c0_51] : memref<32x2048xbf16, #tpu.memory_space<vmem>>, vector<32x128xbf16>
    tpu.vector_store %arg8[%c0_50, %c0_51], %98 {strides = array<i32>} : memref<32x2048xbf16, #tpu.memory_space<vmem>>, vector<32x128xbf16>,
    %100 = vector.extract_strided_slice %97 {offsets = [32, 0], sizes = [32, 128], strides = [1, 1]} : vector<512x128xbf16> to vector<32x128xbf16>
    %c0_52 = arith.constant 0 : index
    %c128_53 = arith.constant 128 : index
    %101 = vector.load %arg8[%c0_52, %c128_53] : memref<32x2048xbf16, #tpu.memory_space<vmem>>, vector<32x128xbf16>
    tpu.vector_store %arg8[%c0_52, %c128_53], %100 {strides = array<i32>} : memref<32x2048xbf16, #tpu.memory_space<vmem>>, vector<32x128xbf16>,
    %102 = vector.extract_strided_slice %97 {offsets = [64, 0], sizes = [32, 128], strides = [1, 1]} : vector<512x128xbf16> to vector<32x128xbf16>
    %c0_54 = arith.constant 0 : index
    %c256_55 = arith.constant 256 : index
    %103 = vector.load %arg8[%c0_54, %c256_55] : memref<32x2048xbf16, #tpu.memory_space<vmem>>, vector<32x128xbf16>
    tpu.vector_store %arg8[%c0_54, %c256_55], %102 {strides = array<i32>} : memref<32x2048xbf16, #tpu.memory_space<vmem>>, vector<32x128xbf16>,
    %104 = vector.extract_strided_slice %97 {offsets = [96, 0], sizes = [32, 128], strides = [1, 1]} : vector<512x128xbf16> to vector<32x128xbf16>
    %c0_56 = arith.constant 0 : index
    %c384_57 = arith.constant 384 : index
    %105 = vector.load %arg8[%c0_56, %c384_57] : memref<32x2048xbf16, #tpu.memory_space<vmem>>, vector<32x128xbf16>
    tpu.vector_store %arg8[%c0_56, %c384_57], %104 {strides = array<i32>} : memref<32x2048xbf16, #tpu.memory_space<vmem>>, vector<32x128xbf16>,
    %106 = vector.extract_strided_slice %97 {offsets = [128, 0], sizes = [32, 128], strides = [1, 1]} : vector<512x128xbf16> to vector<32x128xbf16>
    %c0_58 = arith.constant 0 : index
    %c512_59 = arith.constant 512 : index
    %107 = vector.load %arg8[%c0_58, %c512_59] : memref<32x2048xbf16, #tpu.memory_space<vmem>>, vector<32x128xbf16>
    tpu.vector_store %arg8[%c0_58, %c512_59], %106 {strides = array<i32>} : memref<32x2048xbf16, #tpu.memory_space<vmem>>, vector<32x128xbf16>,
    %108 = vector.extract_strided_slice %97 {offsets = [160, 0], sizes = [32, 128], strides = [1, 1]} : vector<512x128xbf16> to vector<32x128xbf16>
    %c0_60 = arith.constant 0 : index
    %c640_61 = arith.constant 640 : index
    %109 = vector.load %arg8[%c0_60, %c640_61] : memref<32x2048xbf16, #tpu.memory_space<vmem>>, vector<32x128xbf16>
    tpu.vector_store %arg8[%c0_60, %c640_61], %108 {strides = array<i32>} : memref<32x2048xbf16, #tpu.memory_space<vmem>>, vector<32x128xbf16>,
    %110 = vector.extract_strided_slice %97 {offsets = [192, 0], sizes = [32, 128], strides = [1, 1]} : vector<512x128xbf16> to vector<32x128xbf16>
    %c0_62 = arith.constant 0 : index
    %c768_63 = arith.constant 768 : index
    %111 = vector.load %arg8[%c0_62, %c768_63] : memref<32x2048xbf16, #tpu.memory_space<vmem>>, vector<32x128xbf16>
    tpu.vector_store %arg8[%c0_62, %c768_63], %110 {strides = array<i32>} : memref<32x2048xbf16, #tpu.memory_space<vmem>>, vector<32x128xbf16>,
    %112 = vector.extract_strided_slice %97 {offsets = [224, 0], sizes = [32, 128], strides = [1, 1]} : vector<512x128xbf16> to vector<32x128xbf16>
    %c0_64 = arith.constant 0 : index
    %c896_65 = arith.constant 896 : index
    %113 = vector.load %arg8[%c0_64, %c896_65] : memref<32x2048xbf16, #tpu.memory_space<vmem>>, vector<32x128xbf16>
    tpu.vector_store %arg8[%c0_64, %c896_65], %112 {strides = array<i32>} : memref<32x2048xbf16, #tpu.memory_space<vmem>>, vector<32x128xbf16>,
    %114 = vector.extract_strided_slice %97 {offsets = [256, 0], sizes = [32, 128], strides = [1, 1]} : vector<512x128xbf16> to vector<32x128xbf16>
    %c0_66 = arith.constant 0 : index
    %c1024_67 = arith.constant 1024 : index
    %115 = vector.load %arg8[%c0_66, %c1024_67] : memref<32x2048xbf16, #tpu.memory_space<vmem>>, vector<32x128xbf16>
    tpu.vector_store %arg8[%c0_66, %c1024_67], %114 {strides = array<i32>} : memref<32x2048xbf16, #tpu.memory_space<vmem>>, vector<32x128xbf16>,
    %116 = vector.extract_strided_slice %97 {offsets = [288, 0], sizes = [32, 128], strides = [1, 1]} : vector<512x128xbf16> to vector<32x128xbf16>
    %c0_68 = arith.constant 0 : index
    %c1152_69 = arith.constant 1152 : index
    %117 = vector.load %arg8[%c0_68, %c1152_69] : memref<32x2048xbf16, #tpu.memory_space<vmem>>, vector<32x128xbf16>
    tpu.vector_store %arg8[%c0_68, %c1152_69], %116 {strides = array<i32>} : memref<32x2048xbf16, #tpu.memory_space<vmem>>, vector<32x128xbf16>,
    %118 = vector.extract_strided_slice %97 {offsets = [320, 0], sizes = [32, 128], strides = [1, 1]} : vector<512x128xbf16> to vector<32x128xbf16>
    %c0_70 = arith.constant 0 : index
    %c1280_71 = arith.constant 1280 : index
    %119 = vector.load %arg8[%c0_70, %c1280_71] : memref<32x2048xbf16, #tpu.memory_space<vmem>>, vector<32x128xbf16>
    tpu.vector_store %arg8[%c0_70, %c1280_71], %118 {strides = array<i32>} : memref<32x2048xbf16, #tpu.memory_space<vmem>>, vector<32x128xbf16>,
    %120 = vector.extract_strided_slice %97 {offsets = [352, 0], sizes = [32, 128], strides = [1, 1]} : vector<512x128xbf16> to vector<32x128xbf16>
    %c0_72 = arith.constant 0 : index
    %c1408_73 = arith.constant 1408 : index
    %121 = vector.load %arg8[%c0_72, %c1408_73] : memref<32x2048xbf16, #tpu.memory_space<vmem>>, vector<32x128xbf16>
    tpu.vector_store %arg8[%c0_72, %c1408_73], %120 {strides = array<i32>} : memref<32x2048xbf16, #tpu.memory_space<vmem>>, vector<32x128xbf16>,
    %122 = vector.extract_strided_slice %97 {offsets = [384, 0], sizes = [32, 128], strides = [1, 1]} : vector<512x128xbf16> to vector<32x128xbf16>
    %c0_74 = arith.constant 0 : index
    %c1536_75 = arith.constant 1536 : index
    %123 = vector.load %arg8[%c0_74, %c1536_75] : memref<32x2048xbf16, #tpu.memory_space<vmem>>, vector<32x128xbf16>
    tpu.vector_store %arg8[%c0_74, %c1536_75], %122 {strides = array<i32>} : memref<32x2048xbf16, #tpu.memory_space<vmem>>, vector<32x128xbf16>,
    %124 = vector.extract_strided_slice %97 {offsets = [416, 0], sizes = [32, 128], strides = [1, 1]} : vector<512x128xbf16> to vector<32x128xbf16>
    %c0_76 = arith.constant 0 : index
    %c1664_77 = arith.constant 1664 : index
    %125 = vector.load %arg8[%c0_76, %c1664_77] : memref<32x2048xbf16, #tpu.memory_space<vmem>>, vector<32x128xbf16>
    tpu.vector_store %arg8[%c0_76, %c1664_77], %124 {strides = array<i32>} : memref<32x2048xbf16, #tpu.memory_space<vmem>>, vector<32x128xbf16>,
    %126 = vector.extract_strided_slice %97 {offsets = [448, 0], sizes = [32, 128], strides = [1, 1]} : vector<512x128xbf16> to vector<32x128xbf16>
    %c0_78 = arith.constant 0 : index
    %c1792_79 = arith.constant 1792 : index
    %127 = vector.load %arg8[%c0_78, %c1792_79] : memref<32x2048xbf16, #tpu.memory_space<vmem>>, vector<32x128xbf16>
    tpu.vector_store %arg8[%c0_78, %c1792_79], %126 {strides = array<i32>} : memref<32x2048xbf16, #tpu.memory_space<vmem>>, vector<32x128xbf16>,
    %128 = vector.extract_strided_slice %97 {offsets = [480, 0], sizes = [32, 128], strides = [1, 1]} : vector<512x128xbf16> to vector<32x128xbf16>
    %c0_80 = arith.constant 0 : index
    %c1920_81 = arith.constant 1920 : index
    %129 = vector.load %arg8[%c0_80, %c1920_81] : memref<32x2048xbf16, #tpu.memory_space<vmem>>, vector<32x128xbf16>
    tpu.vector_store %arg8[%c0_80, %c1920_81], %128 {strides = array<i32>} : memref<32x2048xbf16, #tpu.memory_space<vmem>>, vector<32x128xbf16>,
    %c0_82 = arith.constant 0 : index
    %c0_83 = arith.constant 0 : index
    %130 = vector.load %arg8[%c0_82, %c0_83] : memref<32x2048xbf16, #tpu.memory_space<vmem>>, vector<32x2048xbf16>
    %c0_84 = arith.constant 0 : index
    %c0_85 = arith.constant 0 : index
    %131 = vector.load %arg4[%c0_84, %c0_85] : memref<2048x128xbf16, #tpu.memory_space<vmem>>, vector<2048x128xbf16>
    %cst_86 = arith.constant dense<0.000000e+00> : vector<32x128xf32>
    %132 = tpu.matmul %130, %131, %cst_86 {dimension_numbers = #tpu.dot_dimension_numbers<[1], [0], [0], [1], [0, 0, 1, 1], [], []>} : vector<32x2048xbf16>, vector<2048x128xbf16>, vector<32x128xf32> -> vector<32x128xf32>
    %133 = vector.broadcast %10 : vector<32x1xf32> to vector<32x128xf32>
    %134 = arith.mulf %132, %133 : vector<32x128xf32>
    %135 = arith.truncf %134 : vector<32x128xf32> to vector<32x128xbf16>
    %136 = arith.index_cast %c1_i32 : i32 to index
    %c0_87 = arith.constant 0 : index
    %c0_88 = arith.constant 0 : index
    %137 = vector.load %arg5[%136, %c0_87, %c0_88] : memref<2x32x128xbf16, #tpu.memory_space<vmem>>, vector<1x32x128xbf16>
    %138 = vector.shape_cast %137 : vector<1x32x128xbf16> to vector<32x128xbf16>
    %139 = vector.shape_cast %135 : vector<32x128xbf16> to vector<1x32x128xbf16>
    tpu.vector_store %arg5[%136, %c0_87, %c0_88], %139 {strides = array<i32>} : memref<2x32x128xbf16, #tpu.memory_space<vmem>>, vector<1x32x128xbf16>,
    %c0_89 = arith.constant 0 : index
    %c0_90 = arith.constant 0 : index
    %140 = vector.load %arg6[%c0_89, %c0_90] : memref<1x128xf32, #tpu.memory_space<vmem>>, vector<1x128xf32>
    %cst_91 = arith.constant dense<0.000000e+00> : vector<128xf32>
    %141 = vector.multi_reduction <add>, %134, %cst_91 [0] : vector<32x128xf32> to vector<128xf32>
    %142 = vector.shape_cast %141 : vector<128xf32> to vector<1x128xf32>
    %143 = arith.addf %140, %142 : vector<1x128xf32>
    %c0_92 = arith.constant 0 : index
    %c0_93 = arith.constant 0 : index
    %144 = vector.load %arg6[%c0_92, %c0_93] : memref<1x128xf32, #tpu.memory_space<vmem>>, vector<1x128xf32>
    tpu.vector_store %arg6[%c0_92, %c0_93], %143 {strides = array<i32>} : memref<1x128xf32, #tpu.memory_space<vmem>>, vector<1x128xf32>,
    %c0_94 = arith.constant 0 : index
    %c0_95 = arith.constant 0 : index
    %145 = vector.load %arg7[%c0_94, %c0_95] : memref<1x128xf32, #tpu.memory_space<vmem>>, vector<1x128xf32>
    %146 = arith.mulf %134, %134 : vector<32x128xf32>
    %cst_96 = arith.constant dense<0.000000e+00> : vector<128xf32>
    %147 = vector.multi_reduction <add>, %146, %cst_96 [0] : vector<32x128xf32> to vector<128xf32>
    %148 = vector.shape_cast %147 : vector<128xf32> to vector<1x128xf32>
    %149 = arith.addf %145, %148 : vector<1x128xf32>
    %c0_97 = arith.constant 0 : index
    %c0_98 = arith.constant 0 : index
    %150 = vector.load %arg7[%c0_97, %c0_98] : memref<1x128xf32, #tpu.memory_space<vmem>>, vector<1x128xf32>
    tpu.vector_store %arg7[%c0_97, %c0_98], %149 {strides = array<i32>} : memref<1x128xf32, #tpu.memory_space<vmem>>, vector<1x128xf32>,
    %c2_i32 = arith.constant 2 : i32
    return
  }
  func.func @transform_0(%arg0: i32) -> (i32, i32, i32) {
    %c0_i32 = arith.constant 0 : i32
    %c0_i32_0 = arith.constant 0 : i32
    %c0_i32_1 = arith.constant 0 : i32
    return %arg0, %c0_i32, %c0_i32_0 : i32, i32, i32
  }
  func.func @transform_1(%arg0: i32) -> (i32, i32) {
    %c0_i32 = arith.constant 0 : i32
    %c0_i32_0 = arith.constant 0 : i32
    %c0_i32_1 = arith.constant 0 : i32
    return %c0_i32, %c0_i32_0 : i32, i32
  }
  func.func @transform_2(%arg0: i32) -> (i32, i32) {
    %c0_i32 = arith.constant 0 : i32
    %c0_i32_0 = arith.constant 0 : i32
    %c0_i32_1 = arith.constant 0 : i32
    return %c0_i32, %c0_i32_0 : i32, i32
  }
  func.func @transform_3(%arg0: i32) -> (i32, i32) {
    %c0_i32 = arith.constant 0 : i32
    %c0_i32_0 = arith.constant 0 : i32
    %c0_i32_1 = arith.constant 0 : i32
    return %c0_i32, %c0_i32_0 : i32, i32
  }
  func.func @transform_4(%arg0: i32) -> (i32, i32, i32) {
    %c0_i32 = arith.constant 0 : i32
    %c0_i32_0 = arith.constant 0 : i32
    %c0_i32_1 = arith.constant 0 : i32
    return %arg0, %c0_i32, %c0_i32_0 : i32, i32, i32
  }
  func.func @transform_5(%arg0: i32) -> (i32, i32) {
    %c0_i32 = arith.constant 0 : i32
    %c0_i32_0 = arith.constant 0 : i32
    %c0_i32_1 = arith.constant 0 : i32
    return %c0_i32, %c0_i32_0 : i32, i32
  }
  func.func @transform_6(%arg0: i32) -> (i32, i32) {
    %c0_i32 = arith.constant 0 : i32
    %c0_i32_0 = arith.constant 0 : i32
    %c0_i32_1 = arith.constant 0 : i32
    return %c0_i32, %c0_i32_0 : i32, i32
  }
}

module attributes {stable_mosaic.version = 11 : i64} {
  func.func @_bn2_conv3_kernel(%arg0: i32, %arg1: memref<2x32x128xbf16, #tpu.memory_space<vmem>>, %arg2: memref<2x128xf32, #tpu.memory_space<vmem>>, %arg3: memref<32x128xf32, #tpu.memory_space<vmem>>, %arg4: memref<2x1x128xf32, #tpu.memory_space<vmem>>) attributes {dimension_semantics = [#tpu.dimension_semantics<parallel>], iteration_bounds = array<i64: 1>, scalar_prefetch = 0 : i64, scratch_operands = 0 : i64, tpu.core_type = #tpu.core_type<tc>, window_params = [{transform_indices = @transform_0, window_bounds = array<i64: 2, 32, 128>}, {pipeline_mode = #tpu.pipeline_mode<synchronous>, transform_indices = @transform_1, window_bounds = array<i64: 2, 128>}, {pipeline_mode = #tpu.pipeline_mode<synchronous>, transform_indices = @transform_2, window_bounds = array<i64: 32, 128>}, {transform_indices = @transform_3, window_bounds = array<i64: 2, 1, 128>}]} {
    %c0 = arith.constant 0 : index
    %c0_0 = arith.constant 0 : index
    %0 = vector.load %arg2[%c0, %c0_0] : memref<2x128xf32, #tpu.memory_space<vmem>>, vector<2x128xf32>
    %1 = vector.extract_strided_slice %0 {offsets = [0, 0], sizes = [1, 128], strides = [1, 1]} : vector<2x128xf32> to vector<1x128xf32>
    %2 = vector.shape_cast %1 : vector<1x128xf32> to vector<1x1x128xf32>
    %3 = vector.extract_strided_slice %0 {offsets = [1, 0], sizes = [1, 128], strides = [1, 1]} : vector<2x128xf32> to vector<1x128xf32>
    %4 = vector.shape_cast %3 : vector<1x128xf32> to vector<1x1x128xf32>
    %c0_1 = arith.constant 0 : index
    %c0_2 = arith.constant 0 : index
    %c0_3 = arith.constant 0 : index
    %5 = vector.load %arg1[%c0_1, %c0_2, %c0_3] : memref<2x32x128xbf16, #tpu.memory_space<vmem>>, vector<2x32x128xbf16>
    %6 = arith.extf %5 : vector<2x32x128xbf16> to vector<2x32x128xf32>
    %7 = vector.broadcast %2 : vector<1x1x128xf32> to vector<2x32x128xf32>
    %8 = arith.mulf %6, %7 : vector<2x32x128xf32>
    %9 = vector.broadcast %4 : vector<1x1x128xf32> to vector<2x32x128xf32>
    %10 = arith.addf %8, %9 : vector<2x32x128xf32>
    %cst = arith.constant 0.000000e+00 : f32
    %11 = vector.broadcast %cst : f32 to vector<2x32x128xf32>
    %12 = arith.cmpf oge, %10, %11 : vector<2x32x128xf32>
    %cst_4 = arith.constant 2.000000e-01 : f32
    %13 = vector.broadcast %cst_4 : f32 to vector<2x32x128xf32>
    %14 = arith.mulf %13, %10 : vector<2x32x128xf32>
    %15 = arith.select %12, %10, %14 : vector<2x32x128xi1>, vector<2x32x128xf32>
    %c0_5 = arith.constant 0 : index
    %c0_6 = arith.constant 0 : index
    %16 = vector.load %arg3[%c0_5, %c0_6] : memref<32x128xf32, #tpu.memory_space<vmem>>, vector<32x128xf32>
    %17 = vector.shape_cast %16 : vector<32x128xf32> to vector<1x32x128xf32>
    %18 = vector.broadcast %17 : vector<1x32x128xf32> to vector<2x32x128xf32>
    %19 = arith.mulf %15, %18 : vector<2x32x128xf32>
    %cst_7 = arith.constant dense<0.000000e+00> : vector<2x128xf32>
    %20 = vector.multi_reduction <add>, %19, %cst_7 [1] : vector<2x32x128xf32> to vector<2x128xf32>
    %21 = vector.shape_cast %20 : vector<2x128xf32> to vector<2x1x128xf32>
    %c0_8 = arith.constant 0 : index
    %c0_9 = arith.constant 0 : index
    %c0_10 = arith.constant 0 : index
    %22 = vector.load %arg4[%c0_8, %c0_9, %c0_10] : memref<2x1x128xf32, #tpu.memory_space<vmem>>, vector<2x1x128xf32>
    tpu.vector_store %arg4[%c0_8, %c0_9, %c0_10], %21 {strides = array<i32>} : memref<2x1x128xf32, #tpu.memory_space<vmem>>, vector<2x1x128xf32>,
    return
  }
  func.func @transform_0(%arg0: i32) -> (i32, i32, i32) {
    %c0_i32 = arith.constant 0 : i32
    %c0_i32_0 = arith.constant 0 : i32
    %c0_i32_1 = arith.constant 0 : i32
    return %arg0, %c0_i32, %c0_i32_0 : i32, i32, i32
  }
  func.func @transform_1(%arg0: i32) -> (i32, i32) {
    %c0_i32 = arith.constant 0 : i32
    %c0_i32_0 = arith.constant 0 : i32
    %c0_i32_1 = arith.constant 0 : i32
    return %c0_i32, %c0_i32_0 : i32, i32
  }
  func.func @transform_2(%arg0: i32) -> (i32, i32) {
    %c0_i32 = arith.constant 0 : i32
    %c0_i32_0 = arith.constant 0 : i32
    %c0_i32_1 = arith.constant 0 : i32
    return %c0_i32, %c0_i32_0 : i32, i32
  }
  func.func @transform_3(%arg0: i32) -> (i32, i32, i32) {
    %c0_i32 = arith.constant 0 : i32
    %c0_i32_0 = arith.constant 0 : i32
    %c0_i32_1 = arith.constant 0 : i32
    return %arg0, %c0_i32, %c0_i32_0 : i32, i32, i32
  }
}

</mosaic_0001>

<bundles_post_ra>
// kernel: discriminator_28_forward.5
= control target key start
LH: loop header
LB: loop body
LE: loop exit
PB: predicated region body
PF: predicated region fallthrough
CT: control target
= control target key end

     0   :  { %v31_v0 = vlaneseq  ;;  %s190_s0 = inlined_call_operand.vmem [shape: bf16[2,32,128], index: 0, kind: input, shape index: {}]   ;;  %s191_s1 = inlined_call_operand.vmem [shape: f32[2,128], index: 1, kind: input, shape index: {}]   ;;  %s192_s2 = inlined_call_operand.vmem [shape: f32[32,128], index: 2, kind: input, shape index: {}]   ;;  %s193_s3 = inlined_call_operand.vmem [shape: f32[2,1,128], index: 3, kind: output, shape index: {}]  }
   0x1   :  { %v116_v1 = vld [vmem:[%s190_s0] sm:$0xff]   ;;  %v131_v2 = vld [vmem:[%s190_s0 + $0x8] sm:$0xff]   ;;  %v132_v4 = vld [vmem:[%s190_s0 + $0x10] sm:$0xff]  }
   0x2   :  { %v32_v3 = vshrl.u32 %v31_v0, 7  ;;  %v133_v5 = vld [vmem:[%s190_s0 + $0x18] sm:$0xff]   ;;  %v14_v6 = vld [vmem:[%s191_s1] sm:$0x3]  ;;  %v117_v7 = vunpack.c.l.bf16 %v116_v1  ;;  %v118_v8 = vunpack.c.h.bf16 %v116_v1  ;;  %v121_v9 = vunpack.c.l.bf16 %v131_v2  ;;  %v80_v36 = vld [vmem:[%s192_s2 + $0x8] sm:$0xff] }
   0x3   :  { %v122_v10 = vunpack.c.h.bf16 %v131_v2  ;;  %v125_v13 = vunpack.c.l.bf16 %v132_v4  ;;  %v126_v14 = vunpack.c.h.bf16 %v132_v4  ;;  %v129_v15 = vunpack.c.l.bf16 %v133_v5  ;;  %v79_v31 = vld [vmem:[%s192_s2] sm:$0xff]  ;;  %v81_v37 = vld [vmem:[%s192_s2 + $0x10] sm:$0xff]  ;;  %v82_v45 = vld [vmem:[%s192_s2 + $0x18] sm:$0xff] }
   0x4   :  { %v33_v11 = vsub.s32 0, %v32_v3  ;;  %v45_v12 = vsub.s32 1, %v32_v3  ;;  %v130_v16 = vunpack.c.h.bf16 %v133_v5 }
   0x6   :  { %v34_v17 = vrot.slane %v14_v6, %v33_v11  ;;  %v46_v18 = vrot.slane %v14_v6, %v45_v12 }
   0x8   :  { %v35_v19 = vmul.f32 %v117_v7, %v34_v17  ;;  %v36_v20 = vmul.f32 %v118_v8, %v34_v17  ;;  %v37_v21 = vmul.f32 %v121_v9, %v34_v17  ;;  %v38_v22 = vmul.f32 %v122_v10, %v34_v17 }
   0x9   :  { %v39_v23 = vmul.f32 %v125_v13, %v34_v17  ;;  %v40_v24 = vmul.f32 %v126_v14, %v34_v17  ;;  %v41_v25 = vmul.f32 %v129_v15, %v34_v17  ;;  %v42_v26 = vmul.f32 %v130_v16, %v34_v17 }
   0xa   :  { %v47_v27 = vadd.f32 %v46_v18, %v35_v19  ;;  %v48_v28 = vadd.f32 %v46_v18, %v36_v20  ;;  %v49_v29 = vadd.f32 %v46_v18, %v37_v21  ;;  %v50_v30 = vadd.f32 %v46_v18, %v38_v22 }
   0xb   :  { %v51_v32 = vadd.f32 %v46_v18, %v39_v23  ;;  %v52_v33 = vadd.f32 %v46_v18, %v40_v24  ;;  %v53_v34 = vadd.f32 %v46_v18, %v41_v25  ;;  %v54_v35 = vadd.f32 %v46_v18, %v42_v26 }
   0xc   :  { %vm55_vm0 = vcmp.ge.f32.partialorder %v47_v27, 0.0  ;;  %vm56_vm1 = vcmp.ge.f32.partialorder %v48_v28, 0.0  ;;  %vm57_vm2 = vcmp.ge.f32.partialorder %v49_v29, 0.0  ;;  %vm58_vm3 = vcmp.ge.f32.partialorder %v50_v30, 0.0 }
   0xd   :  { %v63_v38 = vmul.f32 0.2, %v47_v27  ;;  %v64_v39 = vmul.f32 0.2, %v48_v28  ;;  %v65_v40 = vmul.f32 0.2, %v49_v29 }
   0xe   :  { %v66_v41 = vmul.f32 0.2, %v50_v30  ;;  %vm59_vm4 = vcmp.ge.f32.partialorder %v51_v32, 0.0  ;;  %vm60_vm5 = vcmp.ge.f32.partialorder %v52_v33, 0.0  ;;  %vm61_vm6 = vcmp.ge.f32.partialorder %v53_v34, 0.0 }
   0xf   :  { %v71_v42 = vsel %vm55_vm0, %v47_v27, %v63_v38  ;;  %v72_v43 = vsel %vm56_vm1, %v48_v28, %v64_v39  ;;  %v73_v44 = vsel %vm57_vm2, %v49_v29, %v65_v40  ;;  %vm62_vm7 = vcmp.ge.f32.partialorder %v54_v35, 0.0 }
  0x10   :  { %v74_v46 = vsel %vm58_vm3, %v50_v30, %v66_v41  ;;  %v83_v47 = vmul.f32 %v79_v31, %v71_v42  ;;  %v84_v48 = vmul.f32 %v80_v36, %v72_v43  ;;  %v85_v49 = vmul.f32 %v81_v37, %v73_v44 }
  0x11   :  { %v67_v50 = vmul.f32 0.2, %v51_v32  ;;  %v68_v51 = vmul.f32 0.2, %v52_v33  ;;  %v69_v52 = vmul.f32 0.2, %v53_v34  ;;  %v86_v53 = vmul.f32 %v82_v45, %v74_v46 }
  0x12   :  { %v91_v54 = vadd.f32 %v84_v48, %v83_v47  ;;  %v70_v55 = vmul.f32 0.2, %v54_v35 }
  0x13   :  { %v75_v56 = vsel %vm59_vm4, %v51_v32, %v67_v50  ;;  %v76_v57 = vsel %vm60_vm5, %v52_v33, %v68_v51  ;;  %v77_v58 = vsel %vm61_vm6, %v53_v34, %v69_v52 }
  0x14   :  { %v92_v59 = vadd.f32 %v91_v54, %v85_v49  ;;  %v78_v60 = vsel %vm62_vm7, %v54_v35, %v70_v55  ;;  %v87_v61 = vmul.f32 %v79_v31, %v75_v56  ;;  %v88_v62 = vmul.f32 %v80_v36, %v76_v57 }
  0x15   :  { %v89_v63 = vmul.f32 %v81_v37, %v77_v58  ;;  %v90_v1 = vmul.f32 %v82_v45, %v78_v60 }
  0x16   :  { %v93_v0 = vadd.f32 %v92_v59, %v86_v53  ;;  %v100_v2 = vadd.f32 %v88_v62, %v87_v61 }
  0x18   :  { %v94_v3 = vrot.slane %v93_v0, 4  ;;  %v101_v4 = vadd.f32 %v100_v2, %v89_v63 }
  0x1a   :  { %v95_v5 = vadd.f32 %v94_v3, %v93_v0  ;;  %v102_v6 = vadd.f32 %v101_v4, %v90_v1 }
  0x1c   :  { %v96_v7 = vrot.slane %v95_v5, 2  ;;  %v103_v8 = vrot.slane %v102_v6, 4 }
  0x1e   :  { %v97_v9 = vadd.f32 %v96_v7, %v95_v5  ;;  %v104_v10 = vadd.f32 %v103_v8, %v102_v6 }
  0x20   :  { %v98_v11 = vrot.slane %v97_v9, 1  ;;  %v105_v12 = vrot.slane %v104_v10, 2 }
  0x22   :  { %v99_v13 = vadd.f32 %v98_v11, %v97_v9  ;;  %v106_v14 = vadd.f32 %v105_v12, %v104_v10 }
  0x24   :  { %109 = vst [vmem:[%s193_s3] sm:$0x1] %v99_v13  ;;  %v107_v15 = vrot.slane %v106_v14, 1 }
  0x26   :  { %v108_v16 = vadd.f32 %v107_v15, %v106_v14 }
  0x28   :  { %110 = vst [vmem:[%s193_s3 + $0x1] sm:$0x1] %v108_v16 }

// kernel: discriminator_28_forward.3
= control target key start
LH: loop header
LB: loop body
LE: loop exit
PB: predicated region body
PF: predicated region fallthrough
CT: control target
= control target key end

     0   :  { %vm183_vm0 = vcmask 130048   ;;  %v1198_v23 = vmov 0.0   ;;  %s1519_s1 = inlined_call_operand.vmem [shape: bf16[16,128], index: 1, kind: input, shape index: {}]   ;;  %s1520_s0 = inlined_call_operand.vmem [shape: bf16[352,16], index: 0, kind: input, shape index: {}]   ;;  %s1521_s3 = inlined_call_operand.vmem [shape: f32[1,128], index: 3, kind: output, shape index: {1}]   ;;  %s1522_s4 = inlined_call_operand.vmem [shape: f32[1,128], index: 4, kind: output, shape index: {2}]   ;;  %s1523_s2 = inlined_call_operand.vmem [shape: bf16[352,128], index: 2, kind: output, shape index: {0}]  }
   0x1   :  { %v1175_v0 = vld [vmem:[%s1519_s1] sm:$0xff]   ;;  %v1177_v2 = vld [vmem:[%s1520_s0 + $0x8] sm:$0xff]   ;;  %v1178_v3 = vld [vmem:[%s1520_s0 + $0x10] sm:$0xff]   ;;  %19 = vst [vmem:[%s1521_s3] sm:$0x1] %v1198_v23 }
   0x2   :  { %v1176_v1 = vld [vmem:[%s1520_s0] sm:$0xff]   ;;  %1126 = vmatprep.subr.bf16.mxu0 %v1175_v0  ;;  %1172 = vmatprep.subr.bf16.mxu1 %v1175_v0  ;;  %v1179_v4 = vld [vmem:[%s1520_s0 + $0x18] sm:$0xff]   ;;  %v1189_v7 = vld [vmem:[%s1520_s0 + $0x68] sm:$0xff]   ;;  %20 = vst [vmem:[%s1522_s4] sm:$0x1] %v1198_v23 }
   0x3   :  { %1127 = vmatpush3.bf16.msra.mxu0 %v1175_v0  ;;  %1128 = vmatprep.mubr.msk.bf16.mxu0 %vm183_vm0, %v1176_v1  ;;  %v1180_v5 = vld [vmem:[%s1520_s0 + $0x20] sm:$0xff]   ;;  %v1190_v8 = vld [vmem:[%s1520_s0 + $0x70] sm:$0xff]   ;;  %v1181_v9 = vld [vmem:[%s1520_s0 + $0x28] sm:$0xff]  }
   0x4   :  { %1173 = vmatpush3.bf16.msra.mxu1 %v1175_v0  ;;  %v1188_v6 = vld [vmem:[%s1520_s0 + $0x60] sm:$0xff]   ;;  %v1182_v10 = vld [vmem:[%s1520_s0 + $0x30] sm:$0xff]   ;;  %v1191_v11 = vld [vmem:[%s1520_s0 + $0x78] sm:$0xff]  }
   0x5   :  { %1152 = vmatprep.mubr.msk.bf16.mxu1 %vm183_vm0, %v1188_v6  ;;  %v1192_v12 = vld [vmem:[%s1520_s0 + $0x80] sm:$0xff]   ;;  %v1183_v13 = vld [vmem:[%s1520_s0 + $0x38] sm:$0xff]   ;;  %v1193_v15 = vld [vmem:[%s1520_s0 + $0x88] sm:$0xff]  }
   0x6   :  { %1129 = vmatmul.mubr.msk.bf16.vlgmr.msra.gmra.mxu0 %vm183_vm0, %v1177_v2  ;;  %v1184_v14 = vld [vmem:[%s1520_s0 + $0x40] sm:$0xff]   ;;  %v1194_v16 = vld [vmem:[%s1520_s0 + $0x90] sm:$0xff]   ;;  %v1185_v17 = vld [vmem:[%s1520_s0 + $0x48] sm:$0xff]  }
   0x7   :  { %1132 = vmatprep.mubr.msk.bf16.mxu0 %vm183_vm0, %v1178_v3  ;;  %1153 = vmatmul.mubr.msk.bf16.vlgmr.msra.gmra.mxu1 %vm183_vm0, %v1189_v7  ;;  %v1186_v18 = vld [vmem:[%s1520_s0 + $0x50] sm:$0xff]   ;;  %v1195_v19 = vld [vmem:[%s1520_s0 + $0x98] sm:$0xff]   ;;  %v1196_v20 = vld [vmem:[%s1520_s0 + $0xa0] sm:$0xff]  }
   0x8   :  { %1156 = vmatprep.mubr.msk.bf16.mxu1 %vm183_vm0, %v1190_v8  ;;  %v1187_v21 = vld [vmem:[%s1520_s0 + $0x58] sm:$0xff]   ;;  %v1197_v22 = vld [vmem:[%s1520_s0 + $0xa8] sm:$0xff]  }
   0xe   :  { %1133 = vmatmul.mubr.msk.bf16.gmra.mxu0 %vm183_vm0, %v1179_v4 }
   0xf   :  { %1136 = vmatprep.mubr.msk.bf16.mxu0 %vm183_vm0, %v1180_v5  ;;  %1157 = vmatmul.mubr.msk.bf16.gmra.mxu1 %vm183_vm0, %v1191_v11 }
  0x10   :  { %1160 = vmatprep.mubr.msk.bf16.mxu1 %vm183_vm0, %v1192_v12 }
  0x16   :  { %1137 = vmatmul.mubr.msk.bf16.gmra.mxu0 %vm183_vm0, %v1181_v9 }
  0x17   :  { %1140 = vmatprep.mubr.msk.bf16.mxu0 %vm183_vm0, %v1182_v10  ;;  %1161 = vmatmul.mubr.msk.bf16.gmra.mxu1 %vm183_vm0, %v1193_v15 }
  0x18   :  { %1164 = vmatprep.mubr.msk.bf16.mxu1 %vm183_vm0, %v1194_v16 }
  0x1e   :  { %1141 = vmatmul.mubr.msk.bf16.gmra.mxu0 %vm183_vm0, %v1183_v13 }
  0x1f   :  { %1144 = vmatprep.mubr.msk.bf16.mxu0 %vm183_vm0, %v1184_v14  ;;  %1165 = vmatmul.mubr.msk.bf16.gmra.mxu1 %vm183_vm0, %v1195_v19 }
  0x20   :  { %1168 = vmatprep.mubr.msk.bf16.mxu1 %vm183_vm0, %v1196_v20 }
  0x26   :  { %1145 = vmatmul.mubr.msk.bf16.gmra.mxu0 %vm183_vm0, %v1185_v17 }
  0x27   :  { %1148 = vmatprep.mubr.msk.bf16.mxu0 %vm183_vm0, %v1186_v18  ;;  %1169 = vmatmul.mubr.msk.bf16.gmra.mxu1 %vm183_vm0, %v1197_v22 }
  0x2e   :  { %1149 = vmatmul.mubr.msk.bf16.gmra.mxu0 %vm183_vm0, %v1187_v21 }
  0xc6   :  { %v1130_v24 = vpop.f32.mrf.mxu0 }
  0xc7   :  { %v734_v34 = vmul.f32 %v1130_v24, %v1130_v24  ;;  %v1327_v38 = vpop.f32.mrf.mxu1 }
  0xc8   :  { %v284_v25 = vpop.f32.mrf.mxu0 }
  0xc9   :  { %v732_v29 = vmul.f32 %v284_v25, %v284_v25  ;;  %v1329_v43 = vpop.f32.mrf.mxu1 }
  0xca   :  { %v1131_v26 = vpop.f32.mrf.mxu0 }
  0xcb   :  { %v980_v27 = vpack.c.bf16 %v1131_v26, %v1130_v24  ;;  %v735_v39 = vmul.f32 %v1131_v26, %v1131_v26  ;;  %v1331_v49 = vpop.f32.mrf.mxu1 }
  0xcc   :  { %v287_v28 = vpop.f32.mrf.mxu0  ;;  %v1040_v55 = vpack.c.bf16 %v1331_v49, %v1327_v38 }
  0xcd   :  { %1082 = vst [vmem:[%s1523_s2 + $0x8] sm:$0xff] %v980_v27   ;;  %v975_v30 = vpack.c.bf16 %v287_v28, %v284_v25  ;;  %v680_v31 = vadd.f32 %v287_v28, %v284_v25  ;;  %v733_v32 = vmul.f32 %v287_v28, %v287_v28  ;;  %v1338_v56 = vpop.f32.mrf.mxu1 }
  0xce   :  { %v1134_v33 = vpop.f32.mrf.mxu0  ;;  %v1035_v60 = vpack.c.bf16 %v1338_v56, %v1329_v43  ;;  %1094 = vst [vmem:[%s1523_s2 + $0x68] sm:$0xff] %v1040_v55  }
  0xcf   :  { %976 = vst [vmem:[%s1523_s2] sm:$0xff] %v975_v30   ;;  %v681_v35 = vadd.f32 %v1130_v24, %v680_v31  ;;  %v776_v36 = vadd.f32 %v733_v32, %v732_v29  ;;  %v738_v57 = vmul.f32 %v1134_v33, %v1134_v33  ;;  %v1348_v62 = vpop.f32.mrf.mxu1 }
  0xd0   :  { %v300_v37 = vpop.f32.mrf.mxu0  ;;  %1093 = vst [vmem:[%s1523_s2 + $0x60] sm:$0xff] %v1035_v60  }
  0xd1   :  { %v777_v40 = vadd.f32 %v776_v36, %v734_v34  ;;  %v682_v41 = vadd.f32 %v1131_v26, %v681_v35  ;;  %v736_v45 = vmul.f32 %v300_v37, %v300_v37  ;;  %v1353_v3 = vpop.f32.mrf.mxu1 }
  0xd2   :  { %v1135_v42 = vpop.f32.mrf.mxu0 }
  0xd3   :  { %v683_v44 = vadd.f32 %v682_v41, %v300_v37  ;;  %v778_v46 = vadd.f32 %v777_v40, %v735_v39  ;;  %v990_v47 = vpack.c.bf16 %v1135_v42, %v1134_v33  ;;  %v739_v63 = vmul.f32 %v1135_v42, %v1135_v42  ;;  %v1355_v9 = vpop.f32.mrf.mxu1 }
  0xd4   :  { %v303_v48 = vpop.f32.mrf.mxu0  ;;  %v1050_v15 = vpack.c.bf16 %v1355_v9, %v1348_v62 }
  0xd5   :  { %v779_v50 = vadd.f32 %v778_v46, %v736_v45  ;;  %1084 = vst [vmem:[%s1523_s2 + $0x18] sm:$0xff] %v990_v47   ;;  %v985_v51 = vpack.c.bf16 %v303_v48, %v300_v37  ;;  %v684_v52 = vadd.f32 %v683_v44, %v303_v48  ;;  %v737_v53 = vmul.f32 %v303_v48, %v303_v48  ;;  %v1362_v16 = vpop.f32.mrf.mxu1 }
  0xd6   :  { %v1138_v54 = vpop.f32.mrf.mxu0  ;;  %v1045_v20 = vpack.c.bf16 %v1362_v16, %v1353_v3  ;;  %1096 = vst [vmem:[%s1523_s2 + $0x78] sm:$0xff] %v1050_v15  }
  0xd7   :  { %1083 = vst [vmem:[%s1523_s2 + $0x10] sm:$0xff] %v985_v51   ;;  %v685_v58 = vadd.f32 %v1134_v33, %v684_v52  ;;  %v780_v59 = vadd.f32 %v779_v50, %v737_v53  ;;  %v742_v17 = vmul.f32 %v1138_v54, %v1138_v54  ;;  %v1372_v22 = vpop.f32.mrf.mxu1 }
  0xd8   :  { %v316_v61 = vpop.f32.mrf.mxu0  ;;  %1095 = vst [vmem:[%s1523_s2 + $0x70] sm:$0xff] %v1045_v20  }
  0xd9   :  { %v781_v0 = vadd.f32 %v780_v59, %v738_v57  ;;  %v686_v1 = vadd.f32 %v1135_v42, %v685_v58  ;;  %v740_v5 = vmul.f32 %v316_v61, %v316_v61  ;;  %v1377_v27 = vpop.f32.mrf.mxu1 }
  0xda   :  { %v1139_v2 = vpop.f32.mrf.mxu0 }
  0xdb   :  { %v687_v4 = vadd.f32 %v686_v1, %v316_v61  ;;  %v782_v6 = vadd.f32 %v781_v0, %v739_v63  ;;  %v1000_v7 = vpack.c.bf16 %v1139_v2, %v1138_v54  ;;  %v743_v23 = vmul.f32 %v1139_v2, %v1139_v2  ;;  %v1379_v33 = vpop.f32.mrf.mxu1 }
  0xdc   :  { %v319_v8 = vpop.f32.mrf.mxu0  ;;  %v1060_v40 = vpack.c.bf16 %v1379_v33, %v1372_v22 }
  0xdd   :  { %v783_v10 = vadd.f32 %v782_v6, %v740_v5  ;;  %1086 = vst [vmem:[%s1523_s2 + $0x28] sm:$0xff] %v1000_v7   ;;  %v995_v11 = vpack.c.bf16 %v319_v8, %v316_v61  ;;  %v688_v12 = vadd.f32 %v687_v4, %v319_v8  ;;  %v741_v13 = vmul.f32 %v319_v8, %v319_v8  ;;  %v1386_v41 = vpop.f32.mrf.mxu1 }
  0xde   :  { %v1142_v14 = vpop.f32.mrf.mxu0  ;;  %v1055_v46 = vpack.c.bf16 %v1386_v41, %v1377_v27  ;;  %1098 = vst [vmem:[%s1523_s2 + $0x88] sm:$0xff] %v1060_v40  }
  0xdf   :  { %1085 = vst [vmem:[%s1523_s2 + $0x20] sm:$0xff] %v995_v11   ;;  %v689_v18 = vadd.f32 %v1138_v54, %v688_v12  ;;  %v784_v19 = vadd.f32 %v783_v10, %v741_v13  ;;  %v746_v42 = vmul.f32 %v1142_v14, %v1142_v14  ;;  %v1396_v48 = vpop.f32.mrf.mxu1 }
  0xe0   :  { %v332_v21 = vpop.f32.mrf.mxu0  ;;  %1097 = vst [vmem:[%s1523_s2 + $0x80] sm:$0xff] %v1055_v46  }
  0xe1   :  { %v785_v24 = vadd.f32 %v784_v19, %v742_v17  ;;  %v690_v25 = vadd.f32 %v1139_v2, %v689_v18  ;;  %v744_v29 = vmul.f32 %v332_v21, %v332_v21  ;;  %v1401_v54 = vpop.f32.mrf.mxu1 }
  0xe2   :  { %v1143_v26 = vpop.f32.mrf.mxu0 }
  0xe3   :  { %v691_v28 = vadd.f32 %v690_v25, %v332_v21  ;;  %v786_v30 = vadd.f32 %v785_v24, %v743_v23  ;;  %v1010_v31 = vpack.c.bf16 %v1143_v26, %v1142_v14  ;;  %v747_v50 = vmul.f32 %v1143_v26, %v1143_v26  ;;  %v1403_v61 = vpop.f32.mrf.mxu1 }
  0xe4   :  { %v335_v32 = vpop.f32.mrf.mxu0  ;;  %v1070_v5 = vpack.c.bf16 %v1403_v61, %v1396_v48 }
  0xe5   :  { %v787_v34 = vadd.f32 %v786_v30, %v744_v29  ;;  %1088 = vst [vmem:[%s1523_s2 + $0x38] sm:$0xff] %v1010_v31   ;;  %v1005_v35 = vpack.c.bf16 %v335_v32, %v332_v21  ;;  %v692_v36 = vadd.f32 %v691_v28, %v335_v32  ;;  %v745_v37 = vmul.f32 %v335_v32, %v335_v32  ;;  %v1410_v6 = vpop.f32.mrf.mxu1 }
  0xe6   :  { %v1146_v39 = vpop.f32.mrf.mxu0  ;;  %v1065_v11 = vpack.c.bf16 %v1410_v6, %v1401_v54  ;;  %1100 = vst [vmem:[%s1523_s2 + $0x98] sm:$0xff] %v1070_v5  }
  0xe7   :  { %1087 = vst [vmem:[%s1523_s2 + $0x30] sm:$0xff] %v1005_v35   ;;  %v693_v44 = vadd.f32 %v1142_v14, %v692_v36  ;;  %v788_v45 = vadd.f32 %v787_v34, %v745_v37  ;;  %v750_v7 = vmul.f32 %v1146_v39, %v1146_v39  ;;  %v1420_v13 = vpop.f32.mrf.mxu1 }
  0xe8   :  { %v348_v47 = vpop.f32.mrf.mxu0  ;;  %1099 = vst [vmem:[%s1523_s2 + $0x90] sm:$0xff] %v1065_v11  }
  0xe9   :  { %v789_v51 = vadd.f32 %v788_v45, %v746_v42  ;;  %v694_v52 = vadd.f32 %v1143_v26, %v693_v44  ;;  %v748_v57 = vmul.f32 %v348_v47, %v348_v47  ;;  %v1425_v19 = vpop.f32.mrf.mxu1  ;;  %v756_v45 = vmul.f32 %v1329_v43, %v1329_v43 }
  0xea   :  { %v1147_v53 = vpop.f32.mrf.mxu0 }
  0xeb   :  { %v695_v55 = vadd.f32 %v694_v52, %v348_v47  ;;  %v790_v58 = vadd.f32 %v789_v51, %v747_v50  ;;  %v1020_v59 = vpack.c.bf16 %v1147_v53, %v1146_v39  ;;  %v751_v14 = vmul.f32 %v1147_v53, %v1147_v53  ;;  %v1427_v26 = vpop.f32.mrf.mxu1 }
  0xec   :  { %v351_v60 = vpop.f32.mrf.mxu0  ;;  %v1080_v32 = vpack.c.bf16 %v1427_v26, %v1420_v13  ;;  %v757_v51 = vmul.f32 %v1338_v56, %v1338_v56 }
  0xed   :  { %v791_v63 = vadd.f32 %v790_v58, %v748_v57  ;;  %1090 = vst [vmem:[%s1523_s2 + $0x48] sm:$0xff] %v1020_v59   ;;  %v1015_v0 = vpack.c.bf16 %v351_v60, %v348_v47  ;;  %v696_v1 = vadd.f32 %v695_v55, %v351_v60  ;;  %v749_v2 = vmul.f32 %v351_v60, %v351_v60  ;;  %v1434_v34 = vpop.f32.mrf.mxu1 }
  0xee   :  { %v1150_v4 = vpop.f32.mrf.mxu0  ;;  %1102 = vst [vmem:[%s1523_s2 + $0xa8] sm:$0xff] %v1080_v32   ;;  %v759_v58 = vmul.f32 %v1331_v49, %v1331_v49  ;;  %v772_v32 = vmul.f32 %v1425_v19, %v1425_v19 }
  0xef   :  { %1089 = vst [vmem:[%s1523_s2 + $0x40] sm:$0xff] %v1015_v0   ;;  %v697_v8 = vadd.f32 %v1146_v39, %v696_v1  ;;  %v792_v10 = vadd.f32 %v791_v63, %v749_v2  ;;  %v754_v35 = vmul.f32 %v1150_v4, %v1150_v4  ;;  %v1075_v39 = vpack.c.bf16 %v1434_v34, %v1425_v19 }
  0xf0   :  { %v364_v12 = vpop.f32.mrf.mxu0  ;;  %v760_v63 = vmul.f32 %v1353_v3, %v1353_v3  ;;  %v761_v2 = vmul.f32 %v1362_v16, %v1362_v16 }
  0xf1   :  { %v793_v15 = vadd.f32 %v792_v10, %v750_v7  ;;  %v698_v17 = vadd.f32 %v1147_v53, %v697_v8  ;;  %v752_v21 = vmul.f32 %v364_v12, %v364_v12  ;;  %1101 = vst [vmem:[%s1523_s2 + $0xa0] sm:$0xff] %v1075_v39   ;;  %v758_v53 = vmul.f32 %v1327_v38, %v1327_v38 }
  0xf2   :  { %v1151_v18 = vpop.f32.mrf.mxu0  ;;  %v764_v10 = vmul.f32 %v1377_v27, %v1377_v27 }
  0xf3   :  { %v699_v20 = vadd.f32 %v698_v17, %v364_v12  ;;  %v794_v23 = vadd.f32 %v793_v15, %v751_v14  ;;  %v1030_v24 = vpack.c.bf16 %v1151_v18, %v1150_v4  ;;  %v755_v40 = vmul.f32 %v1151_v18, %v1151_v18 }
  0xf4   :  { %v367_v25 = vpop.f32.mrf.mxu0  ;;  %v765_v14 = vmul.f32 %v1386_v41, %v1386_v41 }
  0xf5   :  { %v795_v28 = vadd.f32 %v794_v23, %v752_v21  ;;  %1092 = vst [vmem:[%s1523_s2 + $0x58] sm:$0xff] %v1030_v24   ;;  %v1025_v29 = vpack.c.bf16 %v367_v25, %v364_v12  ;;  %v700_v30 = vadd.f32 %v699_v20, %v367_v25  ;;  %v753_v31 = vmul.f32 %v367_v25, %v367_v25 }
  0xf6   :  { %v768_v21 = vmul.f32 %v1401_v54, %v1401_v54  ;;  %v769_v25 = vmul.f32 %v1410_v6, %v1410_v6 }
  0xf7   :  { %1091 = vst [vmem:[%s1523_s2 + $0x50] sm:$0xff] %v1025_v29   ;;  %v701_v36 = vadd.f32 %v1150_v4, %v700_v30  ;;  %v796_v37 = vadd.f32 %v795_v28, %v753_v31 }
  0xf9   :  { %v702_v42 = vadd.f32 %v1151_v18, %v701_v36  ;;  %v797_v44 = vadd.f32 %v796_v37, %v754_v35  ;;  %v773_v37 = vmul.f32 %v1434_v34, %v1434_v34 }
  0xfb   :  { %v798_v46 = vadd.f32 %v797_v44, %v755_v40  ;;  %v703_v47 = vadd.f32 %v702_v42, %v1329_v43 }
  0xfd   :  { %v704_v50 = vadd.f32 %v703_v47, %v1338_v56  ;;  %v799_v52 = vadd.f32 %v798_v46, %v756_v45 }
  0xff   :  { %v705_v55 = vadd.f32 %v1327_v38, %v704_v50  ;;  %v800_v57 = vadd.f32 %v799_v52, %v757_v51  ;;  %v762_v38 = vmul.f32 %v1348_v62, %v1348_v62 }
 0x101   :  { %v801_v59 = vadd.f32 %v800_v57, %v758_v53  ;;  %v706_v60 = vadd.f32 %v1331_v49, %v705_v55  ;;  %v763_v49 = vmul.f32 %v1355_v9, %v1355_v9 }
 0x103   :  { %v707_v43 = vadd.f32 %v706_v60, %v1353_v3  ;;  %v802_v0 = vadd.f32 %v801_v59, %v759_v58 }
 0x105   :  { %v803_v56 = vadd.f32 %v802_v0, %v760_v63  ;;  %v708_v1 = vadd.f32 %v707_v43, %v1362_v16 }
 0x107   :  { %v709_v4 = vadd.f32 %v1348_v62, %v708_v1  ;;  %v804_v5 = vadd.f32 %v803_v56, %v761_v2  ;;  %v766_v62 = vmul.f32 %v1372_v22, %v1372_v22 }
 0x109   :  { %v805_v7 = vadd.f32 %v804_v5, %v762_v38  ;;  %v710_v8 = vadd.f32 %v1355_v9, %v709_v4  ;;  %v767_v9 = vmul.f32 %v1379_v33, %v1379_v33 }
 0x10b   :  { %v711_v3 = vadd.f32 %v710_v8, %v1377_v27  ;;  %v806_v11 = vadd.f32 %v805_v7, %v763_v49 }
 0x10d   :  { %v807_v12 = vadd.f32 %v806_v11, %v764_v10  ;;  %v712_v16 = vadd.f32 %v711_v3, %v1386_v41 }
 0x10f   :  { %v713_v15 = vadd.f32 %v1372_v22, %v712_v16  ;;  %v808_v17 = vadd.f32 %v807_v12, %v765_v14  ;;  %v770_v22 = vmul.f32 %v1396_v48, %v1396_v48 }
 0x111   :  { %v809_v18 = vadd.f32 %v808_v17, %v766_v62  ;;  %v714_v20 = vadd.f32 %v1379_v33, %v713_v15  ;;  %v771_v33 = vmul.f32 %v1403_v61, %v1403_v61 }
 0x113   :  { %v715_v27 = vadd.f32 %v714_v20, %v1401_v54  ;;  %v810_v23 = vadd.f32 %v809_v18, %v767_v9 }
 0x115   :  { %v811_v24 = vadd.f32 %v810_v23, %v768_v21  ;;  %v716_v41 = vadd.f32 %v715_v27, %v1410_v6 }
 0x117   :  { %v717_v28 = vadd.f32 %v1396_v48, %v716_v41  ;;  %v812_v29 = vadd.f32 %v811_v24, %v769_v25  ;;  %v774_v48 = vmul.f32 %v1420_v13, %v1420_v13 }
 0x119   :  { %v813_v30 = vadd.f32 %v812_v29, %v770_v22  ;;  %v718_v31 = vadd.f32 %v1403_v61, %v717_v28  ;;  %v775_v61 = vmul.f32 %v1427_v26, %v1427_v26 }
 0x11b   :  { %v719_v54 = vadd.f32 %v718_v31, %v1425_v19  ;;  %v814_v35 = vadd.f32 %v813_v30, %v771_v33 }
 0x11d   :  { %v815_v36 = vadd.f32 %v814_v35, %v772_v32  ;;  %v720_v6 = vadd.f32 %v719_v54, %v1434_v34 }
 0x11f   :  { %v721_v39 = vadd.f32 %v1420_v13, %v720_v6  ;;  %v816_v40 = vadd.f32 %v815_v36, %v773_v37  ;;  %v679_v13 = vld [vmem:[%s1521_s3] sm:$0x1] }
 0x121   :  { %v722_v42 = vadd.f32 %v1427_v26, %v721_v39  ;;  %v817_v44 = vadd.f32 %v816_v40, %v774_v48  ;;  %v731_v26 = vld [vmem:[%s1522_s4] sm:$0x1] }
 0x123   :  { %v723_v19 = vrot.slane %v722_v42, 4  ;;  %v818_v45 = vadd.f32 %v817_v44, %v775_v61 }
 0x125   :  { %v724_v46 = vadd.f32 %v723_v19, %v722_v42  ;;  %v819_v47 = vrot.slane %v818_v45, 4 }
 0x127   :  { %v725_v50 = vrot.slane %v724_v46, 2  ;;  %v820_v51 = vadd.f32 %v819_v47, %v818_v45 }
 0x129   :  { %v726_v52 = vadd.f32 %v725_v50, %v724_v46  ;;  %v821_v34 = vrot.slane %v820_v51, 2 }
 0x12b   :  { %v727_v53 = vrot.slane %v726_v52, 1  ;;  %v822_v55 = vadd.f32 %v821_v34, %v820_v51 }
 0x12d   :  { %v728_v57 = vadd.f32 %v727_v53, %v726_v52  ;;  %v823_v58 = vrot.slane %v822_v55, 1 }
 0x12f   :  { %v729_v59 = vadd.f32 %v728_v57, %v679_v13  ;;  %v824_v60 = vadd.f32 %v823_v58, %v822_v55 }
 0x131   :  { %730 = vst [vmem:[%s1521_s3] sm:$0x1] %v729_v59  ;;  %v825_v43 = vadd.f32 %v824_v60, %v731_v26 }
 0x133   :  { %826 = vst [vmem:[%s1522_s4] sm:$0x1] %v825_v43 }

// kernel: discriminator_28_forward.4
= control target key start
LH: loop header
LB: loop body
LE: loop exit
PB: predicated region body
PF: predicated region fallthrough
CT: control target
= control target key end

     0   :  { %v28_v0 = vlaneseq  ;;  %v7673_v1 = vmov 0   ;;  %vm570_vm0 = vcmask 392192   ;;  %s9328_s0 = inlined_call_operand.vmem [shape: bf16[2,176,128], index: 0, kind: input, shape index: {}]   ;;  %s9329_s1 = inlined_call_operand.vmem [shape: f32[2,128], index: 1, kind: input, shape index: {}]   ;;  %s9330_s2 = inlined_call_operand.vmem [shape: bf16[512,176], index: 2, kind: input, shape index: {}]   ;;  %s9331_s3 = inlined_call_operand.vmem [shape: bf16[2048,128], index: 3, kind: input, shape index: {}]   ;;  %s9332_s5 = inlined_call_operand.vmem [shape: f32[1,128], index: 5, kind: output, shape index: {1}]   ;;  %s9333_s6 = inlined_call_operand.vmem [shape: f32[1,128], index: 6, kind: output, shape index: {2}]   ;;  %s9334_s4 = inlined_call_operand.vmem [shape: bf16[2,32,128], index: 4, kind: output, shape index: {0}]  }
   0x1   :  { %667 = vmatprep.subr.bf16.mxu0 %v7673_v1  ;;  %v6757_v2 = vld [vmem:[%s9328_s0 + $0x38] sm:$0xff]   ;;  %v6756_v3 = vld [vmem:[%s9328_s0 + $0x30] sm:$0xff]   ;;  %v6755_v5 = vld [vmem:[%s9328_s0 + $0x28] sm:$0xff]  }
   0x2   :  { %v7717_v4 = vshrl.u32 %v28_v0, 7  ;;  %v6754_v6 = vld [vmem:[%s9328_s0 + $0x20] sm:$0xff]   ;;  %v6673_v8 = vunpack.c.l.bf16 %v6757_v2  ;;  %v6674_v9 = vunpack.c.h.bf16 %v6757_v2  ;;  %v7731_v10 = vld [vmem:[%s9328_s0 + $0x18] sm:$0xff]   ;;  %v6669_v13 = vunpack.c.l.bf16 %v6756_v3  ;;  %v6752_v15 = vld [vmem:[%s9328_s0 + $0x10] sm:$0xff]  }
   0x3   :  { %v27_v7 = vld [vmem:[%s9329_s1] sm:$0x3]  ;;  %v6670_v14 = vunpack.c.h.bf16 %v6756_v3  ;;  %v7741_v16 = vld [vmem:[%s9328_s0 + $0x8] sm:$0xff]   ;;  %v6665_v17 = vunpack.c.l.bf16 %v6755_v5  ;;  %v6666_v18 = vunpack.c.h.bf16 %v6755_v5  ;;  %v6661_v19 = vunpack.c.l.bf16 %v6754_v6 }
   0x4   :  { %v91_v11 = vsub.s32 0, %v7717_v4  ;;  %v117_v12 = vsub.s32 1, %v7717_v4  ;;  %v6662_v20 = vunpack.c.h.bf16 %v6754_v6  ;;  %v6657_v23 = vunpack.c.l.bf16 %v7731_v10  ;;  %v7227_v24 = vld [vmem:[%s9330_s2 + $0x4] ss:$8 sps:$4 sm:$0xff]  }
   0x5   :  { %v6658_v25 = vunpack.c.h.bf16 %v7731_v10  ;;  %v6653_v26 = vunpack.c.l.bf16 %v6752_v15  ;;  %v6654_v27 = vunpack.c.h.bf16 %v6752_v15  ;;  %v6649_v28 = vunpack.c.l.bf16 %v7741_v16  ;;  %5897 = vmatprep.mubr.msk.bf16.mxu0 %vm570_vm0, %v7227_v24  ;;  %v7773_v45 = vld [vmem:[%s9328_s0] sm:$0xff]   ;;  %v6759_v24 = vld [vmem:[%s9328_s0 + $0x48] sm:$0xff]  }
   0x6   :  { %v7743_v21 = vrot.slane %v27_v7, %v91_v11  ;;  %v7745_v22 = vrot.slane %v27_v7, %v117_v12  ;;  %v6650_v58 = vunpack.c.h.bf16 %v7741_v16  ;;  %v6645_v59 = vunpack.c.l.bf16 %v7773_v45  ;;  %v6760_v12 = vld [vmem:[%s9328_s0 + $0x50] sm:$0xff]  }
   0x7   :  { %v6646_v7 = vunpack.c.h.bf16 %v7773_v45 }
   0x8   :  { %v107_v29 = vmul.f32 %v6673_v8, %v7743_v21  ;;  %v108_v30 = vmul.f32 %v6674_v9, %v7743_v21  ;;  %v105_v31 = vmul.f32 %v6669_v13, %v7743_v21  ;;  %v106_v32 = vmul.f32 %v6670_v14, %v7743_v21 }
   0x9   :  { %v103_v33 = vmul.f32 %v6665_v17, %v7743_v21  ;;  %v104_v34 = vmul.f32 %v6666_v18, %v7743_v21  ;;  %v101_v35 = vmul.f32 %v6661_v19, %v7743_v21  ;;  %v102_v36 = vmul.f32 %v6662_v20, %v7743_v21 }
   0xa   :  { %v133_v37 = vadd.f32 %v7745_v22, %v107_v29  ;;  %v134_v38 = vadd.f32 %v7745_v22, %v108_v30  ;;  %v131_v39 = vadd.f32 %v7745_v22, %v105_v31  ;;  %v132_v40 = vadd.f32 %v7745_v22, %v106_v32 }
   0xb   :  { %v129_v41 = vadd.f32 %v7745_v22, %v103_v33  ;;  %v130_v42 = vadd.f32 %v7745_v22, %v104_v34  ;;  %v127_v43 = vadd.f32 %v7745_v22, %v101_v35  ;;  %v128_v44 = vadd.f32 %v7745_v22, %v102_v36 }
   0xc   :  { %vm155_vm1 = vcmp.ge.f32.partialorder %v133_v37, 0.0  ;;  %vm156_vm2 = vcmp.ge.f32.partialorder %v134_v38, 0.0  ;;  %v177_v46 = vmul.f32 0.2, %v133_v37  ;;  %v178_v47 = vmul.f32 0.2, %v134_v38 }
   0xd   :  { %vm153_vm3 = vcmp.ge.f32.partialorder %v131_v39, 0.0  ;;  %vm154_vm4 = vcmp.ge.f32.partialorder %v132_v40, 0.0  ;;  %v175_v48 = vmul.f32 0.2, %v131_v39  ;;  %v176_v49 = vmul.f32 0.2, %v132_v40 }
   0xe   :  { %v199_v50 = vsel %vm155_vm1, %v133_v37, %v177_v46  ;;  %v200_v51 = vsel %vm156_vm2, %v134_v38, %v178_v47  ;;  %vm151_vm5 = vcmp.ge.f32.partialorder %v129_v41, 0.0  ;;  %vm152_vm6 = vcmp.ge.f32.partialorder %v130_v42, 0.0 }
   0xf   :  { %v214_v52 = vpack.c.bf16 %v200_v51, %v199_v50  ;;  %v197_v53 = vsel %vm153_vm3, %v131_v39, %v175_v48  ;;  %v198_v54 = vsel %vm154_vm4, %v132_v40, %v176_v49  ;;  %v173_v55 = vmul.f32 0.2, %v129_v41  ;;  %v6758_v39 = vld [vmem:[%s9328_s0 + $0x40] sm:$0xff]   ;;  %v6769_v51 = vld [vmem:[%s9328_s0 + $0x90] sm:$0xff]  }
  0x10   :  { %v213_v56 = vpack.c.bf16 %v198_v54, %v197_v53  ;;  %v174_v57 = vmul.f32 0.2, %v130_v42  ;;  %v171_v61 = vmul.f32 0.2, %v127_v43  ;;  %v172_v62 = vmul.f32 0.2, %v128_v44 }
  0x11   :  { %668 = vmatpush1.bf16.msra.mxu0 %v214_v52  ;;  %v195_v60 = vsel %vm151_vm5, %v129_v41, %v173_v55  ;;  %v99_v63 = vmul.f32 %v6657_v23, %v7743_v21  ;;  %v100_v2 = vmul.f32 %v6658_v25, %v7743_v21  ;;  %v97_v3 = vmul.f32 %v6653_v26, %v7743_v21 }
  0x12   :  { %669 = vmatprep.subr.bf16.mxu0 %v7673_v1  ;;  %v196_v0 = vsel %vm152_vm6, %v130_v42, %v174_v57  ;;  %v98_v5 = vmul.f32 %v6654_v27, %v7743_v21  ;;  %vm149_vm7 = vcmp.ge.f32.partialorder %v127_v43, 0.0  ;;  %vm150_vm8 = vcmp.ge.f32.partialorder %v128_v44, 0.0 }
  0x13   :  { %v125_v6 = vadd.f32 %v7745_v22, %v99_v63  ;;  %v212_v8 = vpack.c.bf16 %v196_v0, %v195_v60  ;;  %v126_v9 = vadd.f32 %v7745_v22, %v100_v2  ;;  %v123_v10 = vadd.f32 %v7745_v22, %v97_v3  ;;  %v6768_v63 = vld [vmem:[%s9328_s0 + $0x88] sm:$0xff]  }
  0x14   :  { %v124_v11 = vadd.f32 %v7745_v22, %v98_v5  ;;  %v95_v14 = vmul.f32 %v6649_v28, %v7743_v21  ;;  %v96_v15 = vmul.f32 %v6650_v58, %v7743_v21  ;;  %v193_v16 = vsel %vm149_vm7, %v127_v43, %v171_v61 }
  0x15   :  { %670 = vmatpush1.bf16.msra.mxu0 %v213_v56  ;;  %vm147_vm9 = vcmp.ge.f32.partialorder %v125_v6, 0.0  ;;  %v169_v13 = vmul.f32 0.2, %v125_v6  ;;  %v194_v17 = vsel %vm150_vm8, %v128_v44, %v172_v62  ;;  %vm148_vm10 = vcmp.ge.f32.partialorder %v126_v9, 0.0 }
  0x16   :  { %671 = vmatprep.subr.bf16.mxu0 %v7673_v1  ;;  %v170_v18 = vmul.f32 0.2, %v126_v9  ;;  %vm145_vm11 = vcmp.ge.f32.partialorder %v123_v10, 0.0  ;;  %v167_v19 = vmul.f32 0.2, %v123_v10  ;;  %v6685_v20 = vunpack.c.l.bf16 %v6760_v12 }
  0x17   :  { %v6686_v23 = vunpack.c.h.bf16 %v6760_v12  ;;  %v191_v25 = vsel %vm147_vm9, %v125_v6, %v169_v13  ;;  %v168_v27 = vmul.f32 0.2, %v124_v11  ;;  %v121_v28 = vadd.f32 %v7745_v22, %v95_v14 }
  0x18   :  { %v192_v26 = vsel %vm148_vm10, %v126_v9, %v170_v18  ;;  %v211_v29 = vpack.c.bf16 %v194_v17, %v193_v16  ;;  %vm146_vm12 = vcmp.ge.f32.partialorder %v124_v11, 0.0  ;;  %v122_v30 = vadd.f32 %v7745_v22, %v96_v15 }
  0x19   :  { %672 = vmatpush1.bf16.msra.mxu0 %v212_v8  ;;  %v93_v31 = vmul.f32 %v6645_v59, %v7743_v21  ;;  %v94_v32 = vmul.f32 %v6646_v7, %v7743_v21  ;;  %v6681_v33 = vunpack.c.l.bf16 %v6759_v24  ;;  %v210_v34 = vpack.c.bf16 %v192_v26, %v191_v25 }
  0x1a   :  { %673 = vmatprep.subr.bf16.mxu0 %v7673_v1  ;;  %v189_v35 = vsel %vm145_vm11, %v123_v10, %v167_v19  ;;  %v190_v36 = vsel %vm146_vm12, %v124_v11, %v168_v27  ;;  %vm143_vm13 = vcmp.ge.f32.partialorder %v121_v28, 0.0  ;;  %v165_v37 = vmul.f32 0.2, %v121_v28  ;;  %v6767_v10 = vld [vmem:[%s9328_s0 + $0x80] sm:$0xff]  }
  0x1b   :  { %v6682_v38 = vunpack.c.h.bf16 %v6759_v24  ;;  %v166_v40 = vmul.f32 0.2, %v122_v30  ;;  %v119_v41 = vadd.f32 %v7745_v22, %v93_v31  ;;  %v113_v42 = vmul.f32 %v6685_v20, %v7743_v21  ;;  %v6766_v31 = vld [vmem:[%s9328_s0 + $0x78] sm:$0xff]  }
  0x1c   :  { %v114_v43 = vmul.f32 %v6686_v23, %v7743_v21  ;;  %vm144_vm14 = vcmp.ge.f32.partialorder %v122_v30, 0.0  ;;  %v120_v44 = vadd.f32 %v7745_v22, %v94_v32  ;;  %v111_v45 = vmul.f32 %v6681_v33, %v7743_v21 }
  0x1d   :  { %674 = vmatpush1.bf16.msra.mxu0 %v211_v29  ;;  %v112_v46 = vmul.f32 %v6682_v38, %v7743_v21  ;;  %v6677_v47 = vunpack.c.l.bf16 %v6758_v39  ;;  %v209_v48 = vpack.c.bf16 %v190_v36, %v189_v35  ;;  %v187_v49 = vsel %vm143_vm13, %v121_v28, %v165_v37 }
  0x1e   :  { %675 = vmatprep.subr.bf16.mxu0 %v7673_v1  ;;  %v6678_v50 = vunpack.c.h.bf16 %v6758_v39  ;;  %v188_v52 = vsel %vm144_vm14, %v122_v30, %v166_v40  ;;  %v163_v53 = vmul.f32 0.2, %v119_v41  ;;  %v139_v54 = vadd.f32 %v7745_v22, %v113_v42  ;;  %v6765_v39 = vld [vmem:[%s9328_s0 + $0x70] sm:$0xff]  }
  0x1f   :  { %v140_v55 = vadd.f32 %v7745_v22, %v114_v43  ;;  %v164_v56 = vmul.f32 0.2, %v120_v44  ;;  %v137_v57 = vadd.f32 %v7745_v22, %v111_v45  ;;  %vm141_vm15 = vcmp.ge.f32.partialorder %v119_v41, 0.0 }
  0x20   :  { %vm142_vm1 = vcmp.ge.f32.partialorder %v120_v44, 0.0  ;;  %v138_v58 = vadd.f32 %v7745_v22, %v112_v46  ;;  %v109_v59 = vmul.f32 %v6677_v47, %v7743_v21  ;;  %v208_v60 = vpack.c.bf16 %v188_v52, %v187_v49 }
  0x21   :  { %676 = vmatpush1.bf16.msra.mxu0 %v210_v34  ;;  %v110_v61 = vmul.f32 %v6678_v50, %v7743_v21  ;;  %v6727_v62 = vunpack.c.l.bf16 %v6769_v51  ;;  %vm161_vm2 = vcmp.ge.f32.partialorder %v139_v54, 0.0  ;;  %vm162_vm3 = vcmp.ge.f32.partialorder %v140_v55, 0.0 }
  0x22   :  { %677 = vmatprep.subr.bf16.mxu0 %v7673_v1  ;;  %v183_v0 = vmul.f32 0.2, %v139_v54  ;;  %v6728_v2 = vunpack.c.h.bf16 %v6769_v51  ;;  %v185_v3 = vsel %vm141_vm15, %v119_v41, %v163_v53  ;;  %v186_v5 = vsel %vm142_vm1, %v120_v44, %v164_v56  ;;  %v6764_v53 = vld [vmem:[%s9328_s0 + $0x68] sm:$0xff]  }
  0x23   :  { %v184_v6 = vmul.f32 0.2, %v140_v55  ;;  %v181_v7 = vmul.f32 0.2, %v137_v57  ;;  %vm159_vm4 = vcmp.ge.f32.partialorder %v137_v57, 0.0  ;;  %v135_v9 = vadd.f32 %v7745_v22, %v109_v59 }
  0x24   :  { %v182_v8 = vmul.f32 0.2, %v138_v58  ;;  %vm160_vm5 = vcmp.ge.f32.partialorder %v138_v58, 0.0  ;;  %v136_v11 = vadd.f32 %v7745_v22, %v110_v61  ;;  %v2995_v12 = vmul.f32 %v6727_v62, %v7743_v21 }
  0x25   :  { %678 = vmatpush1.bf16.msra.mxu0 %v209_v48  ;;  %v6723_v13 = vunpack.c.l.bf16 %v6768_v63  ;;  %v207_v14 = vpack.c.bf16 %v186_v5, %v185_v3  ;;  %v2996_v15 = vmul.f32 %v6728_v2, %v7743_v21  ;;  %v6724_v16 = vunpack.c.h.bf16 %v6768_v63 }
  0x26   :  { %679 = vmatprep.subr.bf16.mxu0 %v7673_v1  ;;  %v205_v17 = vsel %vm161_vm2, %v139_v54, %v183_v0  ;;  %v206_v18 = vsel %vm162_vm3, %v140_v55, %v184_v6  ;;  %v203_v19 = vsel %vm159_vm4, %v137_v57, %v181_v7  ;;  %v204_v20 = vsel %vm160_vm5, %v138_v58, %v182_v8  ;;  %v7225_v54 = vld [vmem:[%s9330_s2] ss:$8 sps:$4 sm:$0xff]   ;;  %v7228_v58 = vld [vmem:[%s9330_s2 + $0x14] ss:$8 sps:$4 sm:$0xff]  }
  0x27   :  { %vm157_vm6 = vcmp.ge.f32.partialorder %v135_v9, 0.0  ;;  %v179_v23 = vmul.f32 0.2, %v135_v9  ;;  %v180_v24 = vmul.f32 0.2, %v136_v11  ;;  %v3017_v25 = vadd.f32 %v2995_v12, %v7745_v22 }
  0x28   :  { %v2993_v26 = vmul.f32 %v6723_v13, %v7743_v21  ;;  %v6719_v27 = vunpack.c.l.bf16 %v6767_v10  ;;  %v217_v28 = vpack.c.bf16 %v206_v18, %v205_v17  ;;  %vm158_vm7 = vcmp.ge.f32.partialorder %v136_v11, 0.0  ;;  %v7230_v13 = vld [vmem:[%s9330_s2 + $0x10] ss:$8 sps:$4 sm:$0xff]   ;;  %v7231_v18 = vld [vmem:[%s9330_s2 + $0x24] ss:$8 sps:$4 sm:$0xff]  }
  0x29   :  { %680 = vmatpush1.bf16.msra.mxu0 %v208_v60  ;;  %v3018_v29 = vadd.f32 %v2996_v15, %v7745_v22  ;;  %v2994_v30 = vmul.f32 %v6724_v16, %v7743_v21  ;;  %v6720_v32 = vunpack.c.h.bf16 %v6767_v10  ;;  %v216_v33 = vpack.c.bf16 %v204_v20, %v203_v19 }
  0x2a   :  { %681 = vmatprep.subr.bf16.mxu0 %v7673_v1  ;;  %v201_v34 = vsel %vm157_vm6, %v135_v9, %v179_v23  ;;  %v202_v35 = vsel %vm158_vm7, %v136_v11, %v180_v24  ;;  %v3061_v36 = vmul.f32 0.2, %v3017_v25  ;;  %v3015_v37 = vadd.f32 %v2993_v26, %v7745_v22 }
  0x2b   :  { %v2991_v38 = vmul.f32 %v6719_v27, %v7743_v21  ;;  %vm3039_vm8 = vcmp.ge.f32.partialorder %v3017_v25, 0.0  ;;  %v3062_v40 = vmul.f32 0.2, %v3018_v29  ;;  %v3016_v41 = vadd.f32 %v2994_v30, %v7745_v22 }
  0x2c   :  { %v6715_v42 = vunpack.c.l.bf16 %v6766_v31  ;;  %vm3040_vm9 = vcmp.ge.f32.partialorder %v3018_v29, 0.0  ;;  %v2992_v43 = vmul.f32 %v6720_v32, %v7743_v21  ;;  %v6716_v44 = vunpack.c.h.bf16 %v6766_v31 }
  0x2d   :  { %682 = vmatpush1.bf16.msra.mxu0 %v207_v14  ;;  %v215_v45 = vpack.c.bf16 %v202_v35, %v201_v34  ;;  %v3083_v46 = vsel %vm3039_vm8, %v3017_v25, %v3061_v36  ;;  %vm3037_vm10 = vcmp.ge.f32.partialorder %v3015_v37, 0.0  ;;  %v3059_v47 = vmul.f32 0.2, %v3015_v37 }
  0x2e   :  { %693 = vmatprep.subr.bf16.mxu0 %v7673_v1  ;;  %v3013_v48 = vadd.f32 %v2991_v38, %v7745_v22  ;;  %v3084_v49 = vsel %vm3040_vm9, %v3018_v29, %v3062_v40  ;;  %v3060_v50 = vmul.f32 0.2, %v3016_v41  ;;  %v2989_v51 = vmul.f32 %v6715_v42, %v7743_v21  ;;  %v7233_v38 = vld [vmem:[%s9330_s2 + $0x20] ss:$8 sps:$4 sm:$0xff]  }
  0x2f   :  { %v6711_v52 = vunpack.c.l.bf16 %v6765_v39  ;;  %vm3038_vm11 = vcmp.ge.f32.partialorder %v3016_v41, 0.0  ;;  %v3014_v55 = vadd.f32 %v2992_v43, %v7745_v22  ;;  %v2990_v56 = vmul.f32 %v6716_v44, %v7743_v21 }
  0x30   :  { %v6712_v57 = vunpack.c.h.bf16 %v6765_v39  ;;  %v3098_v59 = vpack.c.bf16 %v3084_v49, %v3083_v46  ;;  %v3081_v60 = vsel %vm3037_vm10, %v3015_v37, %v3059_v47  ;;  %vm3035_vm12 = vcmp.ge.f32.partialorder %v3013_v48, 0.0  ;;  %v7234_v39 = vld [vmem:[%s9330_s2 + $0x34] ss:$8 sps:$4 sm:$0xff]  }
  0x31   :  { %694 = vmatpush2.bf16.msra.mxu0 %v217_v28  ;;  %v3057_v61 = vmul.f32 0.2, %v3013_v48  ;;  %v3082_v62 = vsel %vm3038_vm11, %v3016_v41, %v3060_v50  ;;  %v3011_v63 = vadd.f32 %v2989_v51, %v7745_v22  ;;  %v2987_v0 = vmul.f32 %v6711_v52, %v7743_v21  ;;  %v6763_v28 = vld [vmem:[%s9328_s0 + $0x60] sm:$0xff]   ;;  %v7236_v50 = vld [vmem:[%s9330_s2 + $0x30] ss:$8 sps:$4 sm:$0xff]  }
  0x32   :  { %695 = vmatprep.subr.bf16.mxu0 %v7673_v1  ;;  %v6707_v2 = vunpack.c.l.bf16 %v6764_v53  ;;  %v3058_v3 = vmul.f32 0.2, %v3014_v55  ;;  %v3012_v5 = vadd.f32 %v2990_v56, %v7745_v22  ;;  %v2988_v6 = vmul.f32 %v6712_v57, %v7743_v21  ;;  %v7237_v51 = vld [vmem:[%s9330_s2 + $0x44] ss:$8 sps:$4 sm:$0xff]  }
  0x33   :  { %v6708_v7 = vunpack.c.h.bf16 %v6764_v53  ;;  %vm3036_vm13 = vcmp.ge.f32.partialorder %v3014_v55, 0.0  ;;  %v3097_v8 = vpack.c.bf16 %v3082_v62, %v3081_v60  ;;  %v3079_v9 = vsel %vm3035_vm12, %v3013_v48, %v3057_v61  ;;  %v7239_v53 = vld [vmem:[%s9330_s2 + $0x40] ss:$8 sps:$4 sm:$0xff]   ;;  %v7242_v60 = vld [vmem:[%s9330_s2 + $0x50] ss:$8 sps:$4 sm:$0xff]  }
  0x34   :  { %v3055_v10 = vmul.f32 0.2, %v3011_v63  ;;  %v3009_v11 = vadd.f32 %v2987_v0, %v7745_v22  ;;  %v2985_v12 = vmul.f32 %v6707_v2, %v7743_v21  ;;  %v3080_v14 = vsel %vm3036_vm13, %v3014_v55, %v3058_v3  ;;  %v6762_v55 = vld [vmem:[%s9328_s0 + $0x58] sm:$0xff]   ;;  %v7243_v61 = vld [vmem:[%s9330_s2 + $0x64] ss:$8 sps:$4 sm:$0xff]  }
  0x35   :  { %696 = vmatpush2.bf16.msra.mxu0 %v216_v33  ;;  %v3056_v15 = vmul.f32 0.2, %v3012_v5  ;;  %v3010_v16 = vadd.f32 %v2988_v6, %v7745_v22  ;;  %v2986_v17 = vmul.f32 %v6708_v7, %v7743_v21  ;;  %vm3033_vm14 = vcmp.ge.f32.partialorder %v3011_v63, 0.0  ;;  %v7245_v7 = vld [vmem:[%s9330_s2 + $0x60] ss:$8 sps:$4 sm:$0xff]  }
  0x36   :  { %697 = vmatprep.subr.bf16.mxu0 %v7673_v1  ;;  %vm3034_vm15 = vcmp.ge.f32.partialorder %v3012_v5, 0.0  ;;  %v3096_v19 = vpack.c.bf16 %v3080_v14, %v3079_v9  ;;  %v3053_v20 = vmul.f32 0.2, %v3009_v11  ;;  %v3007_v23 = vadd.f32 %v2985_v12, %v7745_v22  ;;  %v7248_v9 = vld [vmem:[%s9330_s2 + $0x70] ss:$8 sps:$4 sm:$0xff]  }
  0x37   :  { %v3077_v24 = vsel %vm3033_vm14, %v3011_v63, %v3055_v10  ;;  %v3078_v25 = vsel %vm3034_vm15, %v3012_v5, %v3056_v15  ;;  %v3054_v26 = vmul.f32 0.2, %v3010_v16  ;;  %v3008_v27 = vadd.f32 %v2986_v17, %v7745_v22  ;;  %v7249_v10 = vld [vmem:[%s9330_s2 + $0x84] ss:$8 sps:$4 sm:$0xff]   ;;  %v7252_v17 = vld [vmem:[%s9330_s2 + $0x94] ss:$8 sps:$4 sm:$0xff]  }
  0x38   :  { %vm3031_vm1 = vcmp.ge.f32.partialorder %v3009_v11, 0.0  ;;  %vm3032_vm2 = vcmp.ge.f32.partialorder %v3010_v16, 0.0  ;;  %v3095_v29 = vpack.c.bf16 %v3078_v25, %v3077_v24  ;;  %v3051_v30 = vmul.f32 0.2, %v3007_v23  ;;  %v7300_v24 = vld [vmem:[%s9331_s3 + $0x78] sm:$0xff]  }
  0x39   :  { %698 = vmatpush2.bf16.msra.mxu0 %v215_v45  ;;  %v6703_v31 = vunpack.c.l.bf16 %v6763_v28  ;;  %v6704_v32 = vunpack.c.h.bf16 %v6763_v28  ;;  %v3075_v33 = vsel %vm3031_vm1, %v3009_v11, %v3053_v20  ;;  %v3076_v34 = vsel %vm3032_vm2, %v3010_v16, %v3054_v26  ;;  %v6772_v11 = vld [vmem:[%s9328_s0 + $0xa8] sm:$0xff]   ;;  %v7254_v28 = vld [vmem:[%s9330_s2 + $0x90] ss:$8 sps:$4 sm:$0xff]   ;;  %6775 = vmatprep.subr.bf16.mxu1 %v7300_v24  ;;  %v7282_v24 = vld [vmem:[%s9330_s2 + $0x134] ss:$8 sps:$4 sm:$0xff]  }
  0x3a   :  { %3550 = vmatprep.subr.bf16.mxu0 %v7673_v1  ;;  %v3052_v35 = vmul.f32 0.2, %v3008_v27  ;;  %vm3029_vm3 = vcmp.ge.f32.partialorder %v3007_v23, 0.0  ;;  %vm3030_vm4 = vcmp.ge.f32.partialorder %v3008_v27, 0.0  ;;  %v3094_v40 = vpack.c.bf16 %v3076_v34, %v3075_v33  ;;  %v7251_v16 = vld [vmem:[%s9330_s2 + $0x80] ss:$8 sps:$4 sm:$0xff]  }
  0x3b   :  { %v2983_v36 = vmul.f32 %v6703_v31, %v7743_v21  ;;  %v2984_v37 = vmul.f32 %v6704_v32, %v7743_v21  ;;  %v3073_v43 = vsel %vm3029_vm3, %v3007_v23, %v3051_v30  ;;  %v6699_v56 = vunpack.c.l.bf16 %v6762_v55  ;;  %v7302_v30 = vld [vmem:[%s9331_s3 + $0x70] sm:$0xff]   ;;  %v7255_v31 = vld [vmem:[%s9330_s2 + $0xa4] ss:$8 sps:$4 sm:$0xff]  }
  0x3c   :  { %700 = vmatmul.mubr.bf16.vlgmr.msra.gmra.mxu0 %v7225_v54  ;;  %v3074_v44 = vsel %vm3030_vm4, %v3008_v27, %v3052_v35  ;;  %v7240_v54 = vld [vmem:[%s9330_s2 + $0x54] ss:$8 sps:$4 sm:$0xff]   ;;  %v6700_v57 = vunpack.c.h.bf16 %v6762_v55  ;;  %v6739_v12 = vunpack.c.l.bf16 %v6772_v11  ;;  %v7307_v33 = vld [vmem:[%s9331_s3 + $0x68] sm:$0xff]  }
  0x3d   :  { %3551 = vmatpush1.bf16.msra.mxu0 %v3098_v59  ;;  %5898 = vmatprep.mubr.msk.bf16.mxu0 %vm570_vm0, %v7228_v58  ;;  %v3005_v41 = vadd.f32 %v2983_v36, %v7745_v22  ;;  %v3006_v42 = vadd.f32 %v2984_v37, %v7745_v22  ;;  %v3093_v47 = vpack.c.bf16 %v3074_v44, %v3073_v43  ;;  %v7301_v27 = vld [vmem:[%s9331_s3 + $0x38] sm:$0xff]   ;;  %v7305_v32 = vld [vmem:[%s9331_s3 + $0x30] sm:$0xff]   ;;  %v7308_v34 = vld [vmem:[%s9331_s3 + $0x28] sm:$0xff]  }
  0x3e   :  { %3552 = vmatprep.subr.bf16.mxu0 %v7673_v1  ;;  %v2981_v58 = vmul.f32 %v6699_v56, %v7743_v21  ;;  %v2982_v59 = vmul.f32 %v6700_v57, %v7743_v21  ;;  %v3001_v14 = vmul.f32 %v6739_v12, %v7743_v21  ;;  %6776 = vmatpush3.bf16.msra.mxu1 %v7301_v27  ;;  %v7257_v35 = vld [vmem:[%s9330_s2 + $0xa0] ss:$8 sps:$4 sm:$0xff]   ;;  %v7258_v37 = vld [vmem:[%s9330_s2 + $0xb4] ss:$8 sps:$4 sm:$0xff]  }
  0x3f   :  { %vm3027_vm5 = vcmp.ge.f32.partialorder %v3005_v41, 0.0  ;;  %vm3028_vm6 = vcmp.ge.f32.partialorder %v3006_v42, 0.0  ;;  %v3049_v45 = vmul.f32 0.2, %v3005_v41  ;;  %v3050_v46 = vmul.f32 0.2, %v3006_v42  ;;  %6777 = vmatprep.subr.bf16.mxu1 %v7302_v30 }
  0x40   :  { %v3003_v62 = vadd.f32 %v2981_v58, %v7745_v22  ;;  %v3004_v63 = vadd.f32 %v2982_v59, %v7745_v22  ;;  %v7309_v36 = vld [vmem:[%s9331_s3 + $0x60] sm:$0xff]  }
  0x41   :  { %3553 = vmatpush1.bf16.msra.mxu0 %v3097_v8  ;;  %v3071_v48 = vsel %vm3027_vm5, %v3005_v41, %v3049_v45  ;;  %v3072_v49 = vsel %vm3028_vm6, %v3006_v42, %v3050_v46  ;;  %v7246_v8 = vld [vmem:[%s9330_s2 + $0x74] ss:$8 sps:$4 sm:$0xff]   ;;  %v7260_v41 = vld [vmem:[%s9330_s2 + $0xb0] ss:$8 sps:$4 sm:$0xff]   ;;  %v6771_v42 = vld [vmem:[%s9328_s0 + $0xa0] sm:$0xff]  }
  0x42   :  { %3554 = vmatprep.subr.bf16.mxu0 %v7673_v1  ;;  %v3092_v52 = vpack.c.bf16 %v3072_v49, %v3071_v48  ;;  %vm3025_vm7 = vcmp.ge.f32.partialorder %v3003_v62, 0.0  ;;  %vm3026_vm8 = vcmp.ge.f32.partialorder %v3004_v63, 0.0  ;;  %v3047_v0 = vmul.f32 0.2, %v3003_v62  ;;  %6778 = vmatpush3.bf16.msra.mxu1 %v7305_v32  ;;  %v7316_v45 = vld [vmem:[%s9331_s3 + $0x50] sm:$0xff]   ;;  %v7323_v59 = vld [vmem:[%s9331_s3 + $0x40] sm:$0xff]  }
  0x43   :  { %v3048_v2 = vmul.f32 0.2, %v3004_v63  ;;  %6779 = vmatprep.subr.bf16.mxu1 %v7307_v33  ;;  %v6735_v43 = vunpack.c.l.bf16 %v6771_v42  ;;  %v6736_v44 = vunpack.c.h.bf16 %v6771_v42  ;;  %v7261_v46 = vld [vmem:[%s9330_s2 + $0xc4] ss:$8 sps:$4 sm:$0xff]   ;;  %v7287_v27 = vld [vmem:[%s9330_s2 + $0x140] ss:$8 sps:$4 sm:$0xff]  }
  0x44   :  { %708 = vmatmul.mubr.bf16.gmra.mxu0 %v7230_v13  ;;  %v3069_v3 = vsel %vm3025_vm7, %v3003_v62, %v3047_v0  ;;  %v6740_v13 = vunpack.c.h.bf16 %v6772_v11  ;;  %v7326_v62 = vld [vmem:[%s9331_s3] sm:$0xff]   ;;  %v7266_v0 = vld [vmem:[%s9330_s2 + $0xd0] ss:$8 sps:$4 sm:$0xff]   ;;  %v7294_v32 = vld [vmem:[%s9330_s2 + $0x174] ss:$8 sps:$4 sm:$0xff]  }
  0x45   :  { %5899 = vmatprep.mubr.msk.bf16.mxu0 %vm570_vm0, %v7231_v18  ;;  %3555 = vmatpush1.bf16.msra.mxu0 %v3096_v19  ;;  %v3070_v5 = vsel %vm3026_vm8, %v3004_v63, %v3048_v2  ;;  %v3023_v18 = vadd.f32 %v3001_v14, %v7745_v22  ;;  %v2999_v48 = vmul.f32 %v6735_v43, %v7743_v21  ;;  %v7328_v63 = vld [vmem:[%s9331_s3 + $0xf8] sm:$0xff]   ;;  %v7267_v2 = vld [vmem:[%s9330_s2 + $0xe4] ss:$8 sps:$4 sm:$0xff]  }
  0x46   :  { %3556 = vmatprep.subr.bf16.mxu0 %v7673_v1  ;;  %v3091_v6 = vpack.c.bf16 %v3070_v5, %v3069_v3  ;;  %v3002_v15 = vmul.f32 %v6740_v13, %v7743_v21  ;;  %6780 = vmatpush3.bf16.msra.mxu1 %v7308_v34  ;;  %v3000_v49 = vmul.f32 %v6736_v44, %v7743_v21  ;;  %v6770_v3 = vld [vmem:[%s9328_s0 + $0x98] sm:$0xff]   ;;  %v7291_v30 = vld [vmem:[%s9330_s2 + $0x164] ss:$8 sps:$4 sm:$0xff]  }
  0x47   :  { %vm3045_vm9 = vcmp.ge.f32.partialorder %v3023_v18, 0.0  ;;  %v3067_v20 = vmul.f32 0.2, %v3023_v18  ;;  %6781 = vmatprep.subr.bf16.mxu1 %v7309_v36  ;;  %v6731_v5 = vunpack.c.l.bf16 %v6770_v3  ;;  %v7272_v14 = vld [vmem:[%s9330_s2 + $0xf0] ss:$8 sps:$4 sm:$0xff]  }
  0x48   :  { %v3024_v19 = vadd.f32 %v3002_v15, %v7745_v22  ;;  %v7296_v33 = vld [vmem:[%s9330_s2 + $0x170] ss:$8 sps:$4 sm:$0xff]   ;;  %v7297_v34 = vld [vmem:[%s9330_s2 + $0x184] ss:$8 sps:$4 sm:$0xff]   ;;  %v7303_v36 = vld [vmem:[%s9330_s2 + $0x194] ss:$8 sps:$4 sm:$0xff]  }
  0x49   :  { %3557 = vmatpush1.bf16.msra.mxu0 %v3095_v29  ;;  %v3089_v25 = vsel %vm3045_vm9, %v3023_v18, %v3067_v20  ;;  %v7276_v18 = vld [vmem:[%s9330_s2 + $0x114] ss:$8 sps:$4 sm:$0xff]   ;;  %v7279_v20 = vld [vmem:[%s9330_s2 + $0x124] ss:$8 sps:$4 sm:$0xff]  }
  0x4a   :  { %3558 = vmatprep.subr.bf16.mxu0 %v7673_v1  ;;  %vm3046_vm10 = vcmp.ge.f32.partialorder %v3024_v19, 0.0  ;;  %v3068_v23 = vmul.f32 0.2, %v3024_v19  ;;  %v7310_v43 = vld [vmem:[%s9330_s2 + $0x1a4] ss:$8 sps:$4 sm:$0xff]  }
  0x4c   :  { %716 = vmatmul.mubr.bf16.gmra.mxu0 %v7233_v38  ;;  %v3090_v26 = vsel %vm3046_vm10, %v3024_v19, %v3068_v23  ;;  %v7312_v38 = vld [vmem:[%s9331_s3 + $0x20] sm:$0xff]   ;;  %v7278_v19 = vld [vmem:[%s9330_s2 + $0x110] ss:$8 sps:$4 sm:$0xff]  }
  0x4d   :  { %5900 = vmatprep.mubr.msk.bf16.mxu0 %vm570_vm0, %v7234_v39  ;;  %3559 = vmatpush1.bf16.msra.mxu0 %v3094_v40  ;;  %v3101_v29 = vpack.c.bf16 %v3090_v26, %v3089_v25  ;;  %v7314_v39 = vld [vmem:[%s9331_s3 + $0x58] sm:$0xff]   ;;  %v7281_v23 = vld [vmem:[%s9330_s2 + $0x120] ss:$8 sps:$4 sm:$0xff]   ;;  %v7285_v26 = vld [vmem:[%s9330_s2 + $0x144] ss:$8 sps:$4 sm:$0xff]  }
  0x4e   :  { %3560 = vmatprep.subr.bf16.mxu0 %v7673_v1  ;;  %6782 = vmatpush3.bf16.msra.mxu1 %v7312_v38  ;;  %v7315_v40 = vld [vmem:[%s9331_s3 + $0x18] sm:$0xff]  }
  0x4f   :  { %6783 = vmatprep.subr.bf16.mxu1 %v7314_v39  ;;  %v7284_v25 = vld [vmem:[%s9330_s2 + $0x130] ss:$8 sps:$4 sm:$0xff]  }
  0x51   :  { %3561 = vmatpush1.bf16.msra.mxu0 %v3093_v47  ;;  %v7319_v47 = vld [vmem:[%s9331_s3 + $0x10] sm:$0xff]  }
  0x52   :  { %3562 = vmatprep.subr.bf16.mxu0 %v7673_v1  ;;  %6784 = vmatpush3.bf16.msra.mxu1 %v7315_v40 }
  0x53   :  { %6785 = vmatprep.subr.bf16.mxu1 %v7316_v45 }
  0x54   :  { %724 = vmatmul.mubr.bf16.gmra.mxu0 %v7236_v50  ;;  %v3021_v50 = vadd.f32 %v2999_v48, %v7745_v22 }
  0x55   :  { %5901 = vmatprep.mubr.msk.bf16.mxu0 %vm570_vm0, %v7237_v51  ;;  %3563 = vmatpush1.bf16.msra.mxu0 %v3092_v52  ;;  %v3022_v51 = vadd.f32 %v3000_v49, %v7745_v22  ;;  %v7321_v52 = vld [vmem:[%s9331_s3 + $0x48] sm:$0xff]  }
  0x56   :  { %3564 = vmatprep.subr.bf16.mxu0 %v7673_v1  ;;  %6786 = vmatpush3.bf16.msra.mxu1 %v7319_v47  ;;  %vm3043_vm11 = vcmp.ge.f32.partialorder %v3021_v50, 0.0  ;;  %v3065_v55 = vmul.f32 0.2, %v3021_v50  ;;  %v7313_v49 = vld [vmem:[%s9330_s2 + $0x1a0] ss:$8 sps:$4 sm:$0xff]  }
  0x57   :  { %vm3044_vm12 = vcmp.ge.f32.partialorder %v3022_v51, 0.0  ;;  %v3066_v56 = vmul.f32 0.2, %v3022_v51  ;;  %6787 = vmatprep.subr.bf16.mxu1 %v7321_v52 }
  0x58   :  { %v3087_v57 = vsel %vm3043_vm11, %v3021_v50, %v3065_v55 }
  0x59   :  { %3565 = vmatpush1.bf16.msra.mxu0 %v3091_v6  ;;  %v3088_v58 = vsel %vm3044_vm12, %v3022_v51, %v3066_v56  ;;  %v6732_v6 = vunpack.c.h.bf16 %v6770_v3  ;;  %v7317_v51 = vld [vmem:[%s9330_s2 + $0x1b4] ss:$8 sps:$4 sm:$0xff]  }
  0x5a   :  { %3576 = vmatprep.subr.bf16.mxu0 %v7673_v1 }
  0x5c   :  { %732 = vmatmul.mubr.bf16.gmra.mxu0 %v7239_v53  ;;  %v7322_v53 = vld [vmem:[%s9331_s3 + $0x8] sm:$0xff]  }
  0x5d   :  { %5902 = vmatprep.mubr.msk.bf16.mxu0 %vm570_vm0, %v7240_v54  ;;  %3577 = vmatpush2.bf16.msra.mxu0 %v3101_v29  ;;  %v7263_v54 = vld [vmem:[%s9330_s2 + $0xc0] ss:$8 sps:$4 sm:$0xff]   ;;  %v7290_v29 = vld [vmem:[%s9330_s2 + $0x150] ss:$8 sps:$4 sm:$0xff]  }
  0x5e   :  { %3578 = vmatprep.subr.bf16.mxu0 %v7673_v1  ;;  %6788 = vmatpush3.bf16.msra.mxu1 %v7322_v53 }
  0x5f   :  { %6789 = vmatprep.subr.bf16.mxu1 %v7323_v59  ;;  %v7324_v59 = vld [vmem:[%s9330_s2 + $0x1c4] ss:$8 sps:$4 sm:$0xff]  }
  0x62   :  { %6790 = vmatpush3.bf16.msra.mxu1 %v7326_v62 }
  0x63   :  { %6803 = vmatprep.subr.bf16.mxu1 %v7328_v63 }
  0x64   :  { %740 = vmatmul.mubr.bf16.gmra.mxu0 %v7242_v60  ;;  %v7264_v60 = vld [vmem:[%s9330_s2 + $0xd4] ss:$8 sps:$4 sm:$0xff]  }
  0x65   :  { %5903 = vmatprep.mubr.msk.bf16.mxu0 %vm570_vm0, %v7243_v61  ;;  %v3100_v61 = vpack.c.bf16 %v3088_v58, %v3087_v57  ;;  %v7320_v57 = vld [vmem:[%s9330_s2 + $0x1b0] ss:$8 sps:$4 sm:$0xff]  }
  0x67   :  { %3579 = vmatpush2.bf16.msra.mxu0 %v3100_v61 }
  0x68   :  { %3580 = vmatprep.subr.bf16.mxu0 %v7673_v1  ;;  %v7269_v1 = vld [vmem:[%s9330_s2 + $0xe0] ss:$8 sps:$4 sm:$0xff]  }
  0x6c   :  { %748 = vmatmul.mubr.bf16.gmra.mxu0 %v7245_v7  ;;  %v7270_v7 = vld [vmem:[%s9330_s2 + $0xf4] ss:$8 sps:$4 sm:$0xff]  }
  0x6d   :  { %5904 = vmatprep.mubr.msk.bf16.mxu0 %vm570_vm0, %v7246_v8  ;;  %v2997_v8 = vmul.f32 %v6731_v5, %v7743_v21  ;;  %v7331_v5 = vld [vmem:[%s9330_s2 + $0x1d4] ss:$8 sps:$4 sm:$0xff]  }
  0x74   :  { %756 = vmatmul.mubr.bf16.gmra.mxu0 %v7248_v9  ;;  %v2998_v9 = vmul.f32 %v6732_v6, %v7743_v21  ;;  %v7273_v21 = vld [vmem:[%s9330_s2 + $0x104] ss:$8 sps:$4 sm:$0xff]  }
  0x75   :  { %5905 = vmatprep.mubr.msk.bf16.mxu0 %vm570_vm0, %v7249_v10  ;;  %v3019_v10 = vadd.f32 %v2997_v8, %v7745_v22 }
  0x76   :  { %v3020_v11 = vadd.f32 %v2998_v9, %v7745_v22  ;;  %v7275_v22 = vld [vmem:[%s9330_s2 + $0x100] ss:$8 sps:$4 sm:$0xff]  }
  0x77   :  { %vm3041_vm13 = vcmp.ge.f32.partialorder %v3019_v10, 0.0  ;;  %v3063_v12 = vmul.f32 0.2, %v3019_v10 }
  0x78   :  { %vm3042_vm14 = vcmp.ge.f32.partialorder %v3020_v11, 0.0  ;;  %v3064_v13 = vmul.f32 0.2, %v3020_v11 }
  0x79   :  { %v3085_v15 = vsel %vm3041_vm13, %v3019_v10, %v3063_v12  ;;  %v7330_v12 = vld [vmem:[%s9331_s3 + $0xf0] sm:$0xff]  }
  0x7c   :  { %764 = vmatmul.mubr.bf16.gmra.mxu0 %v7251_v16  ;;  %v3086_v16 = vsel %vm3042_vm14, %v3020_v11, %v3064_v13 }
  0x7d   :  { %5906 = vmatprep.mubr.msk.bf16.mxu0 %vm570_vm0, %v7252_v17  ;;  %v3099_v17 = vpack.c.bf16 %v3086_v16, %v3085_v15  ;;  %v7334_v16 = vld [vmem:[%s9330_s2 + $0x1d0] ss:$8 sps:$4 sm:$0xff]  }
  0x7f   :  { %3581 = vmatpush2.bf16.msra.mxu0 %v3099_v17  ;;  %v7335_v17 = vld [vmem:[%s9331_s3 + $0xe8] sm:$0xff]  }
  0x84   :  { %772 = vmatmul.mubr.bf16.gmra.mxu0 %v7254_v28  ;;  %v7288_v28 = vld [vmem:[%s9330_s2 + $0x154] ss:$8 sps:$4 sm:$0xff]  }
  0x85   :  { %5907 = vmatprep.mubr.msk.bf16.mxu0 %vm570_vm0, %v7255_v31  ;;  %v7293_v31 = vld [vmem:[%s9330_s2 + $0x160] ss:$8 sps:$4 sm:$0xff]  }
  0x8c   :  { %780 = vmatmul.mubr.bf16.gmra.mxu0 %v7257_v35  ;;  %v7299_v35 = vld [vmem:[%s9330_s2 + $0x180] ss:$8 sps:$4 sm:$0xff]  }
  0x8d   :  { %5908 = vmatprep.mubr.msk.bf16.mxu0 %vm570_vm0, %v7258_v37 }
  0x94   :  { %788 = vmatmul.mubr.bf16.gmra.mxu0 %v7260_v41  ;;  %v7306_v41 = vld [vmem:[%s9330_s2 + $0x190] ss:$8 sps:$4 sm:$0xff]  }
  0x95   :  { %5909 = vmatprep.mubr.msk.bf16.mxu0 %vm570_vm0, %v7261_v46 }
  0x9c   :  { %796 = vmatmul.mubr.bf16.gmra.mxu0 %v7263_v54 }
  0x9d   :  { %5910 = vmatprep.mubr.msk.bf16.mxu0 %vm570_vm0, %v7264_v60 }
  0xa4   :  { %804 = vmatmul.mubr.bf16.gmra.mxu0 %v7266_v0 }
  0xa5   :  { %5911 = vmatprep.mubr.msk.bf16.mxu0 %vm570_vm0, %v7267_v2  ;;  %v7327_v2 = vld [vmem:[%s9330_s2 + $0x1c0] ss:$8 sps:$4 sm:$0xff]  }
  0xac   :  { %812 = vmatmul.mubr.bf16.gmra.mxu0 %v7269_v1  ;;  %v7329_v1 = vld [vmem:[%s9331_s3 + $0xb8] sm:$0xff]  }
  0xad   :  { %5912 = vmatprep.mubr.msk.bf16.mxu0 %vm570_vm0, %v7270_v7 }
  0xb4   :  { %820 = vmatmul.mubr.bf16.gmra.mxu0 %v7272_v14  ;;  %v7333_v14 = vld [vmem:[%s9331_s3 + $0xb0] sm:$0xff]  }
  0xb5   :  { %5913 = vmatprep.mubr.msk.bf16.mxu0 %vm570_vm0, %v7273_v21 }
  0xbc   :  { %828 = vmatmul.mubr.bf16.gmra.mxu0 %v7275_v22 }
  0xbd   :  { %5914 = vmatprep.mubr.msk.bf16.mxu0 %vm570_vm0, %v7276_v18  ;;  %v7336_v18 = vld [vmem:[%s9331_s3 + $0xa8] sm:$0xff]  }
  0xc4   :  { %836 = vmatmul.mubr.bf16.gmra.mxu0 %v7278_v19  ;;  %v7338_v19 = vld [vmem:[%s9330_s2 + $0x1e4] ss:$8 sps:$4 sm:$0xff]  }
  0xc5   :  { %5915 = vmatprep.mubr.msk.bf16.mxu0 %vm570_vm0, %v7279_v20 }
  0xcc   :  { %844 = vmatmul.mubr.bf16.gmra.mxu0 %v7281_v23 }
  0xcd   :  { %5916 = vmatprep.mubr.msk.bf16.mxu0 %vm570_vm0, %v7282_v24 }
  0xd4   :  { %852 = vmatmul.mubr.bf16.gmra.mxu0 %v7284_v25 }
  0xd5   :  { %5917 = vmatprep.mubr.msk.bf16.mxu0 %vm570_vm0, %v7285_v26 }
  0xdc   :  { %860 = vmatmul.mubr.bf16.gmra.mxu0 %v7287_v27 }
  0xdd   :  { %5918 = vmatprep.mubr.msk.bf16.mxu0 %vm570_vm0, %v7288_v28  ;;  %v7337_v28 = vld [vmem:[%s9331_s3 + $0xe0] sm:$0xff]  }
  0xe4   :  { %868 = vmatmul.mubr.bf16.gmra.mxu0 %v7290_v29 }
  0xe5   :  { %5919 = vmatprep.mubr.msk.bf16.mxu0 %vm570_vm0, %v7291_v30  ;;  %v7340_v30 = vld [vmem:[%s9331_s3 + $0xa0] sm:$0xff]  }
  0xec   :  { %876 = vmatmul.mubr.bf16.gmra.mxu0 %v7293_v31 }
  0xed   :  { %5920 = vmatprep.mubr.msk.bf16.mxu0 %vm570_vm0, %v7294_v32  ;;  %v7341_v32 = vld [vmem:[%s9330_s2 + $0x1e0] ss:$8 sps:$4 sm:$0xff]  }
  0xf4   :  { %884 = vmatmul.mubr.bf16.gmra.mxu0 %v7296_v33 }
  0xf5   :  { %5921 = vmatprep.mubr.msk.bf16.mxu0 %vm570_vm0, %v7297_v34  ;;  %v7342_v34 = vld [vmem:[%s9331_s3 + $0xd8] sm:$0xff]  }
  0xfc   :  { %v701_v37 = vpop.f32.mrf.mxu0  ;;  %892 = vmatmul.mubr.bf16.gmra.mxu0 %v7299_v35 }
  0xfd   :  { %v6507_v38 = vpack.c.bf16 %v701_v37, %v701_v37  ;;  %5922 = vmatprep.mubr.msk.bf16.mxu0 %vm570_vm0, %v7303_v36  ;;  %v7345_v36 = vld [vmem:[%s9330_s2 + $0x1f4] ss:$8 sps:$4 sm:$0xff]  }
  0xfe   :  { %v703_v39 = vpop.f32.mrf.mxu0 }
  0xff   :  { %1002 = vst [vmem:[#allocation2] sm:$0xf] %v6507_v38  ;;  %v7343_v38 = vld [vmem:[%s9331_s3 + $0x98] sm:$0xff]  }
 0x100   :  { %v704_v40 = vpop.f32.mrf.mxu0 }
 0x101   :  { %v6508_v42 = vpack.c.bf16 %v704_v40, %v704_v40  ;;  %v7344_v40 = vld [vmem:[%s9331_s3 + $0xd0] sm:$0xff]  }
 0x102   :  { %v706_v44 = vpop.f32.mrf.mxu0 }
 0x103   :  { %1003 = vst [vmem:[#allocation2 + $0x40] sm:$0xf] %v6508_v42  ;;  %v7347_v42 = vld [vmem:[%s9331_s3 + $0x90] sm:$0xff]  }
 0x104   :  { %v709_v45 = vpop.f32.mrf.mxu0  ;;  %900 = vmatmul.mubr.bf16.gmra.mxu0 %v7306_v41  ;;  %v7348_v44 = vld [vmem:[%s9330_s2 + $0x1f0] ss:$8 sps:$4 sm:$0xff]  }
 0x105   :  { %v6509_v46 = vpack.c.bf16 %v709_v45, %v709_v45  ;;  %5923 = vmatprep.mubr.msk.bf16.mxu0 %vm570_vm0, %v7310_v43 }
 0x106   :  { %v711_v47 = vpop.f32.mrf.mxu0 }
 0x107   :  { %1004 = vst [vmem:[#allocation2 + $0x80] sm:$0xf] %v6509_v46  ;;  %v7349_v46 = vld [vmem:[%s9331_s3 + $0xc8] sm:$0xff]  }
 0x108   :  { %v712_v48 = vpop.f32.mrf.mxu0 }
 0x109   :  { %v6510_v50 = vpack.c.bf16 %v712_v48, %v712_v48  ;;  %v7355_v48 = vld [vmem:[%s9330_s2 + $0x4] ss:$8 sps:$4 sm:$0xff]  }
 0x10a   :  { %v714_v52 = vpop.f32.mrf.mxu0 }
 0x10b   :  { %1005 = vst [vmem:[#allocation2 + $0xc0] sm:$0xf] %v6510_v50  ;;  %v7350_v50 = vld [vmem:[%s9331_s3 + $0x88] sm:$0xff]   ;;  %v7351_v52 = vld [vmem:[%s9331_s3 + $0xc0] sm:$0xff]  }
 0x10c   :  { %v717_v53 = vpop.f32.mrf.mxu0  ;;  %908 = vmatmul.mubr.bf16.gmra.mxu0 %v7313_v49 }
 0x10d   :  { %v6511_v54 = vpack.c.bf16 %v717_v53, %v717_v53  ;;  %5924 = vmatprep.mubr.msk.bf16.mxu0 %vm570_vm0, %v7317_v51 }
 0x10e   :  { %v719_v55 = vpop.f32.mrf.mxu0 }
 0x10f   :  { %1020 = vst [vmem:[#allocation2 + $0x4] sm:$0xf] %v6511_v54  ;;  %v7352_v54 = vld [vmem:[%s9331_s3 + $0x80] sm:$0xff]  }
 0x110   :  { %v720_v56 = vpop.f32.mrf.mxu0 }
 0x111   :  { %v6512_v58 = vpack.c.bf16 %v720_v56, %v720_v56  ;;  %v7353_v56 = vld [vmem:[%s9330_s2] ss:$8 sps:$4 sm:$0xff]  }
 0x112   :  { %v722_v60 = vpop.f32.mrf.mxu0 }
 0x113   :  { %1021 = vst [vmem:[#allocation2 + $0x44] sm:$0xf] %v6512_v58  ;;  %v7356_v58 = vld [vmem:[%s9331_s3 + $0x178] sm:$0xff]  }
 0x114   :  { %v725_v61 = vpop.f32.mrf.mxu0  ;;  %916 = vmatmul.mubr.bf16.gmra.mxu0 %v7320_v57  ;;  %v7357_v60 = vld [vmem:[%s9331_s3 + $0x138] sm:$0xff]  }
 0x115   :  { %v6513_v62 = vpack.c.bf16 %v725_v61, %v725_v61  ;;  %5925 = vmatprep.mubr.msk.bf16.mxu0 %vm570_vm0, %v7324_v59  ;;  %v7360_v61 = vld [vmem:[%s9330_s2 + $0x14] ss:$8 sps:$4 sm:$0xff]  }
 0x116   :  { %v727_v63 = vpop.f32.mrf.mxu0  ;;  %v1276_v7 = vld [vmem:[#allocation2] sm:$0xff] }
 0x117   :  { %1022 = vst [vmem:[#allocation2 + $0x84] sm:$0xf] %v6513_v62 }
 0x118   :  { %v728_v0 = vpop.f32.mrf.mxu0 }
 0x119   :  { %v6514_v3 = vpack.c.bf16 %v728_v0, %v728_v0 }
 0x11a   :  { %v730_v6 = vpop.f32.mrf.mxu0  ;;  %v1284_v8 = vld [vmem:[#allocation2 + $0x40] sm:$0xff] }
 0x11b   :  { %1023 = vst [vmem:[#allocation2 + $0xc4] sm:$0xf] %v6514_v3  ;;  %v5994_v9 = vcombine.high %v1276_v7, %v1284_v8  ;;  %v5993_v10 = vcombine.low %v1276_v7, %v1284_v8  ;;  %v7359_v7 = vld [vmem:[%s9331_s3 + $0x130] sm:$0xff]  }
 0x11c   :  { %v733_v11 = vpop.f32.mrf.mxu0  ;;  %924 = vmatmul.mubr.bf16.gmra.mxu0 %v7327_v2 }
 0x11d   :  { %v6515_v13 = vpack.c.bf16 %v733_v11, %v733_v11  ;;  %2524 = vmatprep.mubr.bf16.mxu1 %v5994_v9  ;;  %5926 = vmatprep.mubr.msk.bf16.mxu0 %vm570_vm0, %v7331_v5  ;;  %v7358_v5 = vld [vmem:[%s9331_s3 + $0x170] sm:$0xff]   ;;  %v7363_v11 = vld [vmem:[%s9331_s3 + $0x168] sm:$0xff]  }
 0x11e   :  { %v735_v15 = vpop.f32.mrf.mxu0  ;;  %2525 = vmatmul.mubr.bf16.vlgmr.msra.gmra.mxu1 %v5993_v10  ;;  %v1292_v23 = vld [vmem:[#allocation2 + $0x80] sm:$0xff]  ;;  %v7362_v9 = vld [vmem:[%s9330_s2 + $0x10] ss:$8 sps:$4 sm:$0xff]  }
 0x11f   :  { %1038 = vst [vmem:[#allocation2 + $0x8] sm:$0xf] %v6515_v13  ;;  %6804 = vmatpush3.bf16.msra.mxu1 %v7329_v1  ;;  %v7364_v13 = vld [vmem:[%s9331_s3 + $0x128] sm:$0xff]  }
 0x120   :  { %v736_v21 = vpop.f32.mrf.mxu0  ;;  %6805 = vmatprep.subr.bf16.mxu1 %v7330_v12 }
 0x121   :  { %v6516_v22 = vpack.c.bf16 %v736_v21, %v736_v21 }
 0x122   :  { %v738_v20 = vpop.f32.mrf.mxu0  ;;  %v1300_v24 = vld [vmem:[#allocation2 + $0xc0] sm:$0xff] }
 0x123   :  { %1039 = vst [vmem:[#allocation2 + $0x48] sm:$0xf] %v6516_v22  ;;  %6806 = vmatpush3.bf16.msra.mxu1 %v7333_v14  ;;  %v6010_v25 = vcombine.high %v1292_v23, %v1300_v24  ;;  %v6009_v26 = vcombine.low %v1292_v23, %v1300_v24  ;;  %v7367_v14 = vld [vmem:[%s9330_s2 + $0x24] ss:$8 sps:$4 sm:$0xff]  }
 0x124   :  { %v741_v27 = vpop.f32.mrf.mxu0  ;;  %932 = vmatmul.mubr.bf16.gmra.mxu0 %v7334_v16  ;;  %6807 = vmatprep.subr.bf16.mxu1 %v7335_v17  ;;  %v7366_v23 = vld [vmem:[%s9331_s3 + $0x120] sm:$0xff]  }
 0x125   :  { %v6517_v29 = vpack.c.bf16 %v741_v27, %v741_v27  ;;  %2532 = vmatprep.mubr.bf16.mxu1 %v6010_v25  ;;  %5927 = vmatprep.mubr.msk.bf16.mxu0 %vm570_vm0, %v7338_v19  ;;  %v7365_v19 = vld [vmem:[%s9331_s3 + $0x160] sm:$0xff]   ;;  %v7370_v27 = vld [vmem:[%s9331_s3 + $0x158] sm:$0xff]  }
 0x126   :  { %v743_v31 = vpop.f32.mrf.mxu0  ;;  %2533 = vmatmul.mubr.bf16.gmra.mxu1 %v6009_v26  ;;  %v7369_v25 = vld [vmem:[%s9330_s2 + $0x20] ss:$8 sps:$4 sm:$0xff]  }
 0x127   :  { %1040 = vst [vmem:[#allocation2 + $0x88] sm:$0xf] %v6517_v29  ;;  %6808 = vmatpush3.bf16.msra.mxu1 %v7336_v18  ;;  %v7374_v29 = vld [vmem:[%s9330_s2 + $0x34] ss:$8 sps:$4 sm:$0xff]  }
 0x128   :  { %v744_v33 = vpop.f32.mrf.mxu0  ;;  %6809 = vmatprep.subr.bf16.mxu1 %v7337_v28  ;;  %v7371_v31 = vld [vmem:[%s9331_s3 + $0x118] sm:$0xff]  }
 0x129   :  { %v6518_v35 = vpack.c.bf16 %v744_v33, %v744_v33  ;;  %v7372_v33 = vld [vmem:[%s9331_s3 + $0x150] sm:$0xff]  }
 0x12a   :  { %v746_v37 = vpop.f32.mrf.mxu0 }
 0x12b   :  { %1041 = vst [vmem:[#allocation2 + $0xc8] sm:$0xf] %v6518_v35  ;;  %6810 = vmatpush3.bf16.msra.mxu1 %v7340_v30  ;;  %v7373_v35 = vld [vmem:[%s9331_s3 + $0x110] sm:$0xff]  }
 0x12c   :  { %v749_v39 = vpop.f32.mrf.mxu0  ;;  %940 = vmatmul.mubr.bf16.gmra.mxu0 %v7341_v32  ;;  %6811 = vmatprep.subr.bf16.mxu1 %v7342_v34  ;;  %v7376_v37 = vld [vmem:[%s9330_s2 + $0x30] ss:$8 sps:$4 sm:$0xff]  }
 0x12d   :  { %v6519_v41 = vpack.c.bf16 %v749_v39, %v749_v39  ;;  %5928 = vmatprep.mubr.msk.bf16.mxu0 %vm570_vm0, %v7345_v36  ;;  %v7377_v39 = vld [vmem:[%s9331_s3 + $0x148] sm:$0xff]  }
 0x12e   :  { %v751_v43 = vpop.f32.mrf.mxu0 }
 0x12f   :  { %1056 = vst [vmem:[#allocation2 + $0xc] sm:$0xf] %v6519_v41  ;;  %6812 = vmatpush3.bf16.msra.mxu1 %v7343_v38  ;;  %v7381_v41 = vld [vmem:[%s9330_s2 + $0x44] ss:$8 sps:$4 sm:$0xff]  }
 0x130   :  { %v752_v45 = vpop.f32.mrf.mxu0  ;;  %6813 = vmatprep.subr.bf16.mxu1 %v7344_v40  ;;  %v7378_v43 = vld [vmem:[%s9331_s3 + $0x108] sm:$0xff]  }
 0x131   :  { %v6520_v47 = vpack.c.bf16 %v752_v45, %v752_v45  ;;  %v7379_v45 = vld [vmem:[%s9331_s3 + $0x140] sm:$0xff]  }
 0x132   :  { %v754_v49 = vpop.f32.mrf.mxu0 }
 0x133   :  { %1057 = vst [vmem:[#allocation2 + $0x4c] sm:$0xf] %v6520_v47  ;;  %6814 = vmatpush3.bf16.msra.mxu1 %v7347_v42  ;;  %v7380_v47 = vld [vmem:[%s9331_s3 + $0x100] sm:$0xff]  }
 0x134   :  { %v757_v51 = vpop.f32.mrf.mxu0  ;;  %948 = vmatmul.mubr.bf16.gmra.mxu0 %v7348_v44  ;;  %6815 = vmatprep.subr.bf16.mxu1 %v7349_v46  ;;  %v7383_v49 = vld [vmem:[%s9330_s2 + $0x40] ss:$8 sps:$4 sm:$0xff]  }
 0x135   :  { %v6521_v53 = vpack.c.bf16 %v757_v51, %v757_v51  ;;  %6243 = vmatprep.mubr.msk.bf16.mxu0 %vm570_vm0, %v7355_v48  ;;  %v7384_v51 = vld [vmem:[%s9331_s3 + $0x1f8] sm:$0xff]  }
 0x136   :  { %v759_v55 = vpop.f32.mrf.mxu0  ;;  %v1277_v63 = vld [vmem:[#allocation2 + $0x8] sm:$0xff] }
 0x137   :  { %1058 = vst [vmem:[#allocation2 + $0x8c] sm:$0xf] %v6521_v53  ;;  %6816 = vmatpush3.bf16.msra.mxu1 %v7350_v50  ;;  %v7385_v53 = vld [vmem:[%s9331_s3 + $0x1b8] sm:$0xff]  }
 0x138   :  { %v760_v57 = vpop.f32.mrf.mxu0  ;;  %6817 = vmatprep.subr.bf16.mxu1 %v7351_v52 }
 0x139   :  { %v6522_v59 = vpack.c.bf16 %v760_v57, %v760_v57 }
 0x13a   :  { %v762_v62 = vpop.f32.mrf.mxu0  ;;  %v1285_v0 = vld [vmem:[#allocation2 + $0x48] sm:$0xff] }
 0x13b   :  { %1059 = vst [vmem:[#allocation2 + $0xcc] sm:$0xf] %v6522_v59  ;;  %6818 = vmatpush3.bf16.msra.mxu1 %v7352_v54  ;;  %v5996_v2 = vcombine.high %v1277_v63, %v1285_v0  ;;  %v5995_v3 = vcombine.low %v1277_v63, %v1285_v0  ;;  %v7388_v54 = vld [vmem:[%s9330_s2 + $0x54] ss:$8 sps:$4 sm:$0xff]  }
 0x13c   :  { %v765_v1 = vpop.f32.mrf.mxu0  ;;  %3583 = vmatmul.mubr.bf16.vlgmr.msra.gmra.mxu0 %v7353_v56  ;;  %6831 = vmatprep.subr.bf16.mxu1 %v7356_v58  ;;  %v7387_v63 = vld [vmem:[%s9331_s3 + $0x1b0] sm:$0xff]  }
 0x13d   :  { %v6523_v6 = vpack.c.bf16 %v765_v1, %v765_v1  ;;  %2573 = vmatprep.mubr.bf16.mxu1 %v5996_v2  ;;  %6244 = vmatprep.mubr.msk.bf16.mxu0 %vm570_vm0, %v7360_v61  ;;  %v7386_v61 = vld [vmem:[%s9331_s3 + $0x1f0] sm:$0xff]   ;;  %v7391_v1 = vld [vmem:[%s9331_s3 + $0x1e8] sm:$0xff]  }
 0x13e   :  { %v767_v8 = vpop.f32.mrf.mxu0  ;;  %2574 = vmatmul.mubr.bf16.vlgmr.msra.gmra.mxu1 %v5995_v3  ;;  %v1293_v16 = vld [vmem:[#allocation2 + $0x88] sm:$0xff]  ;;  %v7390_v2 = vld [vmem:[%s9330_s2 + $0x50] ss:$8 sps:$4 sm:$0xff]  }
 0x13f   :  { %1074 = vst [vmem:[#allocation2 + $0x10] sm:$0xf] %v6523_v6  ;;  %6832 = vmatpush3.bf16.msra.mxu1 %v7357_v60  ;;  %v7392_v6 = vld [vmem:[%s9331_s3 + $0x1a8] sm:$0xff]  }
 0x140   :  { %v768_v10 = vpop.f32.mrf.mxu0  ;;  %6833 = vmatprep.subr.bf16.mxu1 %v7358_v5 }
 0x141   :  { %v6524_v12 = vpack.c.bf16 %v768_v10, %v768_v10 }
 0x142   :  { %v770_v15 = vpop.f32.mrf.mxu0  ;;  %v1301_v21 = vld [vmem:[#allocation2 + $0xc8] sm:$0xff] }
 0x143   :  { %1075 = vst [vmem:[#allocation2 + $0x50] sm:$0xf] %v6524_v12  ;;  %6834 = vmatpush3.bf16.msra.mxu1 %v7359_v7  ;;  %v6012_v17 = vcombine.high %v1293_v16, %v1301_v21  ;;  %v6011_v22 = vcombine.low %v1293_v16, %v1301_v21  ;;  %v7395_v7 = vld [vmem:[%s9330_s2 + $0x64] ss:$8 sps:$4 sm:$0xff]  }
 0x144   :  { %v773_v18 = vpop.f32.mrf.mxu0  ;;  %3591 = vmatmul.mubr.bf16.gmra.mxu0 %v7362_v9  ;;  %6835 = vmatprep.subr.bf16.mxu1 %v7363_v11  ;;  %v7394_v16 = vld [vmem:[%s9331_s3 + $0x1a0] sm:$0xff]  }
 0x145   :  { %v6525_v20 = vpack.c.bf16 %v773_v18, %v773_v18  ;;  %2581 = vmatprep.mubr.bf16.mxu1 %v6012_v17  ;;  %6245 = vmatprep.mubr.msk.bf16.mxu0 %vm570_vm0, %v7367_v14  ;;  %v7393_v14 = vld [vmem:[%s9331_s3 + $0x1e0] sm:$0xff]   ;;  %v7398_v18 = vld [vmem:[%s9331_s3 + $0x1d8] sm:$0xff]  }
 0x146   :  { %v775_v24 = vpop.f32.mrf.mxu0  ;;  %2582 = vmatmul.mubr.bf16.gmra.mxu1 %v6011_v22  ;;  %v7397_v22 = vld [vmem:[%s9330_s2 + $0x60] ss:$8 sps:$4 sm:$0xff]  }
 0x147   :  { %1076 = vst [vmem:[#allocation2 + $0x90] sm:$0xf] %v6525_v20  ;;  %6836 = vmatpush3.bf16.msra.mxu1 %v7364_v13  ;;  %v7402_v20 = vld [vmem:[%s9330_s2 + $0x74] ss:$8 sps:$4 sm:$0xff]  }
 0x148   :  { %v776_v26 = vpop.f32.mrf.mxu0  ;;  %6837 = vmatprep.subr.bf16.mxu1 %v7365_v19  ;;  %v7399_v24 = vld [vmem:[%s9331_s3 + $0x198] sm:$0xff]  }
 0x149   :  { %v6526_v28 = vpack.c.bf16 %v776_v26, %v776_v26  ;;  %v7400_v26 = vld [vmem:[%s9331_s3 + $0x1d0] sm:$0xff]  }
 0x14a   :  { %v778_v30 = vpop.f32.mrf.mxu0 }
 0x14b   :  { %1077 = vst [vmem:[#allocation2 + $0xd0] sm:$0xf] %v6526_v28  ;;  %6838 = vmatpush3.bf16.msra.mxu1 %v7366_v23 }
 0x14c   :  { %v781_v32 = vpop.f32.mrf.mxu0  ;;  %3599 = vmatmul.mubr.bf16.gmra.mxu0 %v7369_v25  ;;  %6839 = vmatprep.subr.bf16.mxu1 %v7370_v27 }
 0x14d   :  { %v6527_v34 = vpack.c.bf16 %v781_v32, %v781_v32  ;;  %6246 = vmatprep.mubr.msk.bf16.mxu0 %vm570_vm0, %v7374_v29  ;;  %v7401_v29 = vld [vmem:[%s9331_s3 + $0x190] sm:$0xff]   ;;  %v7405_v32 = vld [vmem:[%s9331_s3 + $0x1c8] sm:$0xff]  }
 0x14e   :  { %v783_v36 = vpop.f32.mrf.mxu0 }
 0x14f   :  { %1092 = vst [vmem:[#allocation2 + $0x14] sm:$0xf] %v6527_v34  ;;  %6840 = vmatpush3.bf16.msra.mxu1 %v7371_v31  ;;  %v7404_v31 = vld [vmem:[%s9330_s2 + $0x70] ss:$8 sps:$4 sm:$0xff]   ;;  %v7409_v34 = vld [vmem:[%s9330_s2 + $0x84] ss:$8 sps:$4 sm:$0xff]  }
 0x150   :  { %v784_v38 = vpop.f32.mrf.mxu0  ;;  %6841 = vmatprep.subr.bf16.mxu1 %v7372_v33  ;;  %v7406_v36 = vld [vmem:[%s9331_s3 + $0x188] sm:$0xff]  }
 0x151   :  { %v6528_v40 = vpack.c.bf16 %v784_v38, %v784_v38  ;;  %v7407_v38 = vld [vmem:[%s9331_s3 + $0x1c0] sm:$0xff]  }
 0x152   :  { %v786_v42 = vpop.f32.mrf.mxu0 }
 0x153   :  { %1093 = vst [vmem:[#allocation2 + $0x54] sm:$0xf] %v6528_v40  ;;  %6842 = vmatpush3.bf16.msra.mxu1 %v7373_v35 }
 0x154   :  { %v789_v44 = vpop.f32.mrf.mxu0  ;;  %3607 = vmatmul.mubr.bf16.gmra.mxu0 %v7376_v37  ;;  %6843 = vmatprep.subr.bf16.mxu1 %v7377_v39 }
 0x155   :  { %v6529_v46 = vpack.c.bf16 %v789_v44, %v789_v44  ;;  %6247 = vmatprep.mubr.msk.bf16.mxu0 %vm570_vm0, %v7381_v41  ;;  %v7408_v41 = vld [vmem:[%s9331_s3 + $0x180] sm:$0xff]   ;;  %v7412_v44 = vld [vmem:[%s9331_s3 + $0x278] sm:$0xff]  }
 0x156   :  { %v791_v48 = vpop.f32.mrf.mxu0  ;;  %v1278_v56 = vld [vmem:[#allocation2 + $0x10] sm:$0xff] }
 0x157   :  { %1094 = vst [vmem:[#allocation2 + $0x94] sm:$0xf] %v6529_v46  ;;  %6844 = vmatpush3.bf16.msra.mxu1 %v7378_v43  ;;  %v7411_v43 = vld [vmem:[%s9330_s2 + $0x80] ss:$8 sps:$4 sm:$0xff]   ;;  %v7416_v46 = vld [vmem:[%s9330_s2 + $0x94] ss:$8 sps:$4 sm:$0xff]  }
 0x158   :  { %v792_v50 = vpop.f32.mrf.mxu0  ;;  %6845 = vmatprep.subr.bf16.mxu1 %v7379_v45 }
 0x159   :  { %v6530_v52 = vpack.c.bf16 %v792_v50, %v792_v50 }
 0x15a   :  { %v794_v55 = vpop.f32.mrf.mxu0  ;;  %v1286_v57 = vld [vmem:[#allocation2 + $0x50] sm:$0xff] }
 0x15b   :  { %1095 = vst [vmem:[#allocation2 + $0xd4] sm:$0xf] %v6530_v52  ;;  %6846 = vmatpush3.bf16.msra.mxu1 %v7380_v47  ;;  %v5998_v58 = vcombine.high %v1278_v56, %v1286_v57  ;;  %v5997_v59 = vcombine.low %v1278_v56, %v1286_v57  ;;  %v7413_v52 = vld [vmem:[%s9331_s3 + $0x238] sm:$0xff]   ;;  %v7415_v57 = vld [vmem:[%s9331_s3 + $0x230] sm:$0xff]  }
 0x15c   :  { %v797_v60 = vpop.f32.mrf.mxu0  ;;  %3615 = vmatmul.mubr.bf16.gmra.mxu0 %v7383_v49  ;;  %6859 = vmatprep.subr.bf16.mxu1 %v7384_v51 }
 0x15d   :  { %v6531_v62 = vpack.c.bf16 %v797_v60, %v797_v60  ;;  %2622 = vmatprep.mubr.bf16.mxu1 %v5998_v58  ;;  %6248 = vmatprep.mubr.msk.bf16.mxu0 %vm570_vm0, %v7388_v54  ;;  %v7414_v54 = vld [vmem:[%s9331_s3 + $0x270] sm:$0xff]   ;;  %v7419_v60 = vld [vmem:[%s9331_s3 + $0x268] sm:$0xff]  }
 0x15e   :  { %v799_v0 = vpop.f32.mrf.mxu0  ;;  %2623 = vmatmul.mubr.bf16.vlgmr.msra.gmra.mxu1 %v5997_v59  ;;  %v1294_v9 = vld [vmem:[#allocation2 + $0x90] sm:$0xff] }
 0x15f   :  { %1110 = vst [vmem:[#allocation2 + $0x18] sm:$0xf] %v6531_v62  ;;  %6860 = vmatpush3.bf16.msra.mxu1 %v7385_v53  ;;  %v7418_v59 = vld [vmem:[%s9330_s2 + $0x90] ss:$8 sps:$4 sm:$0xff]   ;;  %v7423_v62 = vld [vmem:[%s9330_s2 + $0xa4] ss:$8 sps:$4 sm:$0xff]  }
 0x160   :  { %v800_v3 = vpop.f32.mrf.mxu0  ;;  %6861 = vmatprep.subr.bf16.mxu1 %v7386_v61 }
 0x161   :  { %v6532_v5 = vpack.c.bf16 %v800_v3, %v800_v3 }
 0x162   :  { %v802_v8 = vpop.f32.mrf.mxu0  ;;  %v1302_v10 = vld [vmem:[#allocation2 + $0xd0] sm:$0xff] }
 0x163   :  { %1111 = vst [vmem:[#allocation2 + $0x58] sm:$0xf] %v6532_v5  ;;  %6862 = vmatpush3.bf16.msra.mxu1 %v7387_v63  ;;  %v6014_v11 = vcombine.high %v1294_v9, %v1302_v10  ;;  %v6013_v12 = vcombine.low %v1294_v9, %v1302_v10  ;;  %v7420_v5 = vld [vmem:[%s9331_s3 + $0x228] sm:$0xff]   ;;  %v7422_v10 = vld [vmem:[%s9331_s3 + $0x220] sm:$0xff]  }
 0x164   :  { %v805_v13 = vpop.f32.mrf.mxu0  ;;  %3623 = vmatmul.mubr.bf16.gmra.mxu0 %v7390_v2  ;;  %6863 = vmatprep.subr.bf16.mxu1 %v7391_v1 }
 0x165   :  { %v6533_v15 = vpack.c.bf16 %v805_v13, %v805_v13  ;;  %2630 = vmatprep.mubr.bf16.mxu1 %v6014_v11  ;;  %6249 = vmatprep.mubr.msk.bf16.mxu0 %vm570_vm0, %v7395_v7  ;;  %v7421_v7 = vld [vmem:[%s9331_s3 + $0x260] sm:$0xff]   ;;  %v7426_v13 = vld [vmem:[%s9331_s3 + $0x258] sm:$0xff]  }
 0x166   :  { %v807_v21 = vpop.f32.mrf.mxu0  ;;  %2631 = vmatmul.mubr.bf16.gmra.mxu1 %v6013_v12  ;;  %v7425_v12 = vld [vmem:[%s9330_s2 + $0xa0] ss:$8 sps:$4 sm:$0xff]  }
 0x167   :  { %1112 = vst [vmem:[#allocation2 + $0x98] sm:$0xf] %v6533_v15  ;;  %6864 = vmatpush3.bf16.msra.mxu1 %v7392_v6  ;;  %v7430_v15 = vld [vmem:[%s9330_s2 + $0xb4] ss:$8 sps:$4 sm:$0xff]  }
 0x168   :  { %v808_v17 = vpop.f32.mrf.mxu0  ;;  %6865 = vmatprep.subr.bf16.mxu1 %v7393_v14  ;;  %v7427_v21 = vld [vmem:[%s9331_s3 + $0x218] sm:$0xff]  }
 0x169   :  { %v6534_v19 = vpack.c.bf16 %v808_v17, %v808_v17 }
 0x16a   :  { %v810_v23 = vpop.f32.mrf.mxu0 }
 0x16b   :  { %1113 = vst [vmem:[#allocation2 + $0xd8] sm:$0xf] %v6534_v19  ;;  %6866 = vmatpush3.bf16.msra.mxu1 %v7394_v16 }
 0x16c   :  { %v813_v25 = vpop.f32.mrf.mxu0  ;;  %3631 = vmatmul.mubr.bf16.gmra.mxu0 %v7397_v22  ;;  %6867 = vmatprep.subr.bf16.mxu1 %v7398_v18  ;;  %v7428_v22 = vld [vmem:[%s9331_s3 + $0x250] sm:$0xff]  }
 0x16d   :  { %v6535_v27 = vpack.c.bf16 %v813_v25, %v813_v25  ;;  %6250 = vmatprep.mubr.msk.bf16.mxu0 %vm570_vm0, %v7402_v20  ;;  %v7429_v20 = vld [vmem:[%s9331_s3 + $0x210] sm:$0xff]   ;;  %v7433_v25 = vld [vmem:[%s9331_s3 + $0x248] sm:$0xff]  }
 0x16e   :  { %v815_v28 = vpop.f32.mrf.mxu0 }
 0x16f   :  { %1128 = vst [vmem:[#allocation2 + $0x1c] sm:$0xf] %v6535_v27  ;;  %6868 = vmatpush3.bf16.msra.mxu1 %v7399_v24  ;;  %v7432_v24 = vld [vmem:[%s9330_s2 + $0xb0] ss:$8 sps:$4 sm:$0xff]   ;;  %v7437_v27 = vld [vmem:[%s9330_s2 + $0xc4] ss:$8 sps:$4 sm:$0xff]  }
 0x170   :  { %v816_v30 = vpop.f32.mrf.mxu0  ;;  %6869 = vmatprep.subr.bf16.mxu1 %v7400_v26 }
 0x171   :  { %v6536_v33 = vpack.c.bf16 %v816_v30, %v816_v30 }
 0x172   :  { %v818_v35 = vpop.f32.mrf.mxu0 }
 0x173   :  { %1129 = vst [vmem:[#allocation2 + $0x5c] sm:$0xf] %v6536_v33  ;;  %6870 = vmatpush3.bf16.msra.mxu1 %v7401_v29  ;;  %v7434_v29 = vld [vmem:[%s9331_s3 + $0x208] sm:$0xff]  }
 0x174   :  { %v821_v37 = vpop.f32.mrf.mxu0  ;;  %3639 = vmatmul.mubr.bf16.gmra.mxu0 %v7404_v31  ;;  %6871 = vmatprep.subr.bf16.mxu1 %v7405_v32  ;;  %v7435_v31 = vld [vmem:[%s9331_s3 + $0x240] sm:$0xff]  }
 0x175   :  { %v6537_v39 = vpack.c.bf16 %v821_v37, %v821_v37  ;;  %6251 = vmatprep.mubr.msk.bf16.mxu0 %vm570_vm0, %v7409_v34  ;;  %v7436_v34 = vld [vmem:[%s9331_s3 + $0x200] sm:$0xff]   ;;  %v7440_v37 = vld [vmem:[%s9331_s3 + $0x2f8] sm:$0xff]  }
 0x176   :  { %v823_v40 = vpop.f32.mrf.mxu0  ;;  %v1279_v48 = vld [vmem:[#allocation2 + $0x18] sm:$0xff] }
 0x177   :  { %1130 = vst [vmem:[#allocation2 + $0x9c] sm:$0xf] %v6537_v39  ;;  %6872 = vmatpush3.bf16.msra.mxu1 %v7406_v36  ;;  %v7439_v36 = vld [vmem:[%s9330_s2 + $0xc0] ss:$8 sps:$4 sm:$0xff]   ;;  %v7444_v39 = vld [vmem:[%s9330_s2 + $0xd4] ss:$8 sps:$4 sm:$0xff]  }
 0x178   :  { %v824_v42 = vpop.f32.mrf.mxu0  ;;  %6873 = vmatprep.subr.bf16.mxu1 %v7407_v38 }
 0x179   :  { %v6538_v45 = vpack.c.bf16 %v824_v42, %v824_v42 }
 0x17a   :  { %v826_v47 = vpop.f32.mrf.mxu0  ;;  %v1287_v49 = vld [vmem:[#allocation2 + $0x58] sm:$0xff] }
 0x17b   :  { %1131 = vst [vmem:[#allocation2 + $0xdc] sm:$0xf] %v6538_v45  ;;  %6874 = vmatpush3.bf16.msra.mxu1 %v7408_v41  ;;  %v6000_v50 = vcombine.high %v1279_v48, %v1287_v49  ;;  %v5999_v51 = vcombine.low %v1279_v48, %v1287_v49  ;;  %v7441_v45 = vld [vmem:[%s9331_s3 + $0x2b8] sm:$0xff]   ;;  %v7442_v47 = vld [vmem:[%s9331_s3 + $0x2f0] sm:$0xff]  }
 0x17c   :  { %v829_v53 = vpop.f32.mrf.mxu0  ;;  %3647 = vmatmul.mubr.bf16.gmra.mxu0 %v7411_v43  ;;  %6887 = vmatprep.subr.bf16.mxu1 %v7412_v44 }
 0x17d   :  { %v6539_v55 = vpack.c.bf16 %v829_v53, %v829_v53  ;;  %2671 = vmatprep.mubr.bf16.mxu1 %v6000_v50  ;;  %6252 = vmatprep.mubr.msk.bf16.mxu0 %vm570_vm0, %v7416_v46  ;;  %v7443_v50 = vld [vmem:[%s9331_s3 + $0x2b0] sm:$0xff]   ;;  %v7447_v53 = vld [vmem:[%s9331_s3 + $0x2e8] sm:$0xff]  }
 0x17e   :  { %v831_v56 = vpop.f32.mrf.mxu0  ;;  %2672 = vmatmul.mubr.bf16.vlgmr.msra.gmra.mxu1 %v5999_v51  ;;  %v1295_v0 = vld [vmem:[#allocation2 + $0x98] sm:$0xff] }
 0x17f   :  { %1146 = vst [vmem:[#allocation2 + $0x20] sm:$0xf] %v6539_v55  ;;  %6888 = vmatpush3.bf16.msra.mxu1 %v7413_v52  ;;  %v7446_v52 = vld [vmem:[%s9330_s2 + $0xd0] ss:$8 sps:$4 sm:$0xff]   ;;  %v7451_v55 = vld [vmem:[%s9330_s2 + $0xe4] ss:$8 sps:$4 sm:$0xff]  }
 0x180   :  { %v832_v58 = vpop.f32.mrf.mxu0  ;;  %6889 = vmatprep.subr.bf16.mxu1 %v7414_v54 }
 0x181   :  { %v6540_v61 = vpack.c.bf16 %v832_v58, %v832_v58 }
 0x182   :  { %v834_v63 = vpop.f32.mrf.mxu0  ;;  %v1303_v2 = vld [vmem:[#allocation2 + $0xd8] sm:$0xff] }
 0x183   :  { %1147 = vst [vmem:[#allocation2 + $0x60] sm:$0xf] %v6540_v61  ;;  %6890 = vmatpush3.bf16.msra.mxu1 %v7415_v57  ;;  %v6016_v3 = vcombine.high %v1295_v0, %v1303_v2  ;;  %v6015_v1 = vcombine.low %v1295_v0, %v1303_v2  ;;  %v7448_v61 = vld [vmem:[%s9331_s3 + $0x2a8] sm:$0xff]   ;;  %v7449_v63 = vld [vmem:[%s9331_s3 + $0x2e0] sm:$0xff]  }
 0x184   :  { %v837_v6 = vpop.f32.mrf.mxu0  ;;  %3655 = vmatmul.mubr.bf16.gmra.mxu0 %v7418_v59  ;;  %6891 = vmatprep.subr.bf16.mxu1 %v7419_v60 }
 0x185   :  { %v6541_v8 = vpack.c.bf16 %v837_v6, %v837_v6  ;;  %2679 = vmatprep.mubr.bf16.mxu1 %v6016_v3  ;;  %6253 = vmatprep.mubr.msk.bf16.mxu0 %vm570_vm0, %v7423_v62  ;;  %v7450_v3 = vld [vmem:[%s9331_s3 + $0x2a0] sm:$0xff]   ;;  %v7454_v6 = vld [vmem:[%s9331_s3 + $0x2d8] sm:$0xff]  }
 0x186   :  { %v839_v9 = vpop.f32.mrf.mxu0  ;;  %2680 = vmatmul.mubr.bf16.gmra.mxu1 %v6015_v1 }
 0x187   :  { %1148 = vst [vmem:[#allocation2 + $0xa0] sm:$0xf] %v6541_v8  ;;  %6892 = vmatpush3.bf16.msra.mxu1 %v7420_v5  ;;  %v7453_v5 = vld [vmem:[%s9330_s2 + $0xe0] ss:$8 sps:$4 sm:$0xff]   ;;  %v7458_v8 = vld [vmem:[%s9330_s2 + $0xf4] ss:$8 sps:$4 sm:$0xff]  }
 0x188   :  { %v840_v11 = vpop.f32.mrf.mxu0  ;;  %6893 = vmatprep.subr.bf16.mxu1 %v7421_v7 }
 0x189   :  { %v6542_v14 = vpack.c.bf16 %v840_v11, %v840_v11 }
 0x18a   :  { %v842_v16 = vpop.f32.mrf.mxu0 }
 0x18b   :  { %1149 = vst [vmem:[#allocation2 + $0xe0] sm:$0xf] %v6542_v14  ;;  %6894 = vmatpush3.bf16.msra.mxu1 %v7422_v10  ;;  %v7455_v10 = vld [vmem:[%s9331_s3 + $0x298] sm:$0xff]  }
 0x18c   :  { %v845_v17 = vpop.f32.mrf.mxu0  ;;  %3663 = vmatmul.mubr.bf16.gmra.mxu0 %v7425_v12  ;;  %6895 = vmatprep.subr.bf16.mxu1 %v7426_v13  ;;  %v7456_v12 = vld [vmem:[%s9331_s3 + $0x2d0] sm:$0xff]  }
 0x18d   :  { %v6543_v18 = vpack.c.bf16 %v845_v17, %v845_v17  ;;  %6254 = vmatprep.mubr.msk.bf16.mxu0 %vm570_vm0, %v7430_v15  ;;  %v7457_v15 = vld [vmem:[%s9331_s3 + $0x290] sm:$0xff]   ;;  %v7461_v17 = vld [vmem:[%s9331_s3 + $0x2c8] sm:$0xff]  }
 0x18e   :  { %v847_v19 = vpop.f32.mrf.mxu0 }
 0x18f   :  { %1164 = vst [vmem:[#allocation2 + $0x24] sm:$0xf] %v6543_v18  ;;  %6896 = vmatpush3.bf16.msra.mxu1 %v7427_v21  ;;  %v7460_v21 = vld [vmem:[%s9330_s2 + $0xf0] ss:$8 sps:$4 sm:$0xff]   ;;  %v7465_v18 = vld [vmem:[%s9330_s2 + $0x104] ss:$8 sps:$4 sm:$0xff]  }
 0x190   :  { %v848_v23 = vpop.f32.mrf.mxu0  ;;  %6897 = vmatprep.subr.bf16.mxu1 %v7428_v22 }
 0x191   :  { %v6544_v26 = vpack.c.bf16 %v848_v23, %v848_v23 }
 0x192   :  { %v850_v28 = vpop.f32.mrf.mxu0 }
 0x193   :  { %1165 = vst [vmem:[#allocation2 + $0x64] sm:$0xf] %v6544_v26  ;;  %6898 = vmatpush3.bf16.msra.mxu1 %v7429_v20  ;;  %v7462_v20 = vld [vmem:[%s9331_s3 + $0x288] sm:$0xff]  }
 0x194   :  { %v853_v30 = vpop.f32.mrf.mxu0  ;;  %3671 = vmatmul.mubr.bf16.gmra.mxu0 %v7432_v24  ;;  %6899 = vmatprep.subr.bf16.mxu1 %v7433_v25  ;;  %v7463_v24 = vld [vmem:[%s9331_s3 + $0x2c0] sm:$0xff]  }
 0x195   :  { %v6545_v32 = vpack.c.bf16 %v853_v30, %v853_v30  ;;  %6255 = vmatprep.mubr.msk.bf16.mxu0 %vm570_vm0, %v7437_v27  ;;  %v7464_v27 = vld [vmem:[%s9331_s3 + $0x280] sm:$0xff]   ;;  %v7468_v30 = vld [vmem:[%s9331_s3 + $0x378] sm:$0xff]  }
 0x196   :  { %v855_v33 = vpop.f32.mrf.mxu0  ;;  %v1280_v41 = vld [vmem:[#allocation2 + $0x20] sm:$0xff] }
 0x197   :  { %1166 = vst [vmem:[#allocation2 + $0xa4] sm:$0xf] %v6545_v32  ;;  %6900 = vmatpush3.bf16.msra.mxu1 %v7434_v29  ;;  %v7467_v29 = vld [vmem:[%s9330_s2 + $0x100] ss:$8 sps:$4 sm:$0xff]   ;;  %v7472_v32 = vld [vmem:[%s9330_s2 + $0x114] ss:$8 sps:$4 sm:$0xff]  }
 0x198   :  { %v856_v35 = vpop.f32.mrf.mxu0  ;;  %6901 = vmatprep.subr.bf16.mxu1 %v7435_v31 }
 0x199   :  { %v6546_v38 = vpack.c.bf16 %v856_v35, %v856_v35 }
 0x19a   :  { %v858_v40 = vpop.f32.mrf.mxu0  ;;  %v1288_v42 = vld [vmem:[#allocation2 + $0x60] sm:$0xff] }
 0x19b   :  { %1167 = vst [vmem:[#allocation2 + $0xe4] sm:$0xf] %v6546_v38  ;;  %6902 = vmatpush3.bf16.msra.mxu1 %v7436_v34  ;;  %v6002_v43 = vcombine.high %v1280_v41, %v1288_v42  ;;  %v6001_v44 = vcombine.low %v1280_v41, %v1288_v42  ;;  %v7469_v38 = vld [vmem:[%s9331_s3 + $0x338] sm:$0xff]   ;;  %v7470_v40 = vld [vmem:[%s9331_s3 + $0x370] sm:$0xff]  }
 0x19c   :  { %v861_v46 = vpop.f32.mrf.mxu0  ;;  %3679 = vmatmul.mubr.bf16.gmra.mxu0 %v7439_v36  ;;  %6915 = vmatprep.subr.bf16.mxu1 %v7440_v37 }
 0x19d   :  { %v6547_v48 = vpack.c.bf16 %v861_v46, %v861_v46  ;;  %2720 = vmatprep.mubr.bf16.mxu1 %v6002_v43  ;;  %6256 = vmatprep.mubr.msk.bf16.mxu0 %vm570_vm0, %v7444_v39  ;;  %v7471_v43 = vld [vmem:[%s9331_s3 + $0x330] sm:$0xff]   ;;  %v7475_v46 = vld [vmem:[%s9331_s3 + $0x368] sm:$0xff]  }
 0x19e   :  { %v863_v49 = vpop.f32.mrf.mxu0  ;;  %2721 = vmatmul.mubr.bf16.vlgmr.msra.gmra.mxu1 %v6001_v44  ;;  %v1296_v57 = vld [vmem:[#allocation2 + $0xa0] sm:$0xff] }
 0x19f   :  { %1182 = vst [vmem:[#allocation2 + $0x28] sm:$0xf] %v6547_v48  ;;  %6916 = vmatpush3.bf16.msra.mxu1 %v7441_v45  ;;  %v7474_v45 = vld [vmem:[%s9330_s2 + $0x110] ss:$8 sps:$4 sm:$0xff]   ;;  %v7479_v48 = vld [vmem:[%s9330_s2 + $0x124] ss:$8 sps:$4 sm:$0xff]  }
 0x1a0   :  { %v864_v51 = vpop.f32.mrf.mxu0  ;;  %6917 = vmatprep.subr.bf16.mxu1 %v7442_v47 }
 0x1a1   :  { %v6548_v54 = vpack.c.bf16 %v864_v51, %v864_v51 }
 0x1a2   :  { %v866_v56 = vpop.f32.mrf.mxu0  ;;  %v1304_v58 = vld [vmem:[#allocation2 + $0xe0] sm:$0xff] }
 0x1a3   :  { %1183 = vst [vmem:[#allocation2 + $0x68] sm:$0xf] %v6548_v54  ;;  %6918 = vmatpush3.bf16.msra.mxu1 %v7443_v50  ;;  %v6018_v59 = vcombine.high %v1296_v57, %v1304_v58  ;;  %v6017_v60 = vcombine.low %v1296_v57, %v1304_v58  ;;  %v7476_v54 = vld [vmem:[%s9331_s3 + $0x328] sm:$0xff]   ;;  %v7477_v56 = vld [vmem:[%s9331_s3 + $0x360] sm:$0xff]  }
 0x1a4   :  { %v869_v62 = vpop.f32.mrf.mxu0  ;;  %3687 = vmatmul.mubr.bf16.gmra.mxu0 %v7446_v52  ;;  %6919 = vmatprep.subr.bf16.mxu1 %v7447_v53 }
 0x1a5   :  { %v6549_v0 = vpack.c.bf16 %v869_v62, %v869_v62  ;;  %2728 = vmatprep.mubr.bf16.mxu1 %v6018_v59  ;;  %6257 = vmatprep.mubr.msk.bf16.mxu0 %vm570_vm0, %v7451_v55  ;;  %v7478_v59 = vld [vmem:[%s9331_s3 + $0x320] sm:$0xff]   ;;  %v7482_v62 = vld [vmem:[%s9331_s3 + $0x358] sm:$0xff]  }
 0x1a6   :  { %v871_v2 = vpop.f32.mrf.mxu0  ;;  %2729 = vmatmul.mubr.bf16.gmra.mxu1 %v6017_v60 }
 0x1a7   :  { %1184 = vst [vmem:[#allocation2 + $0xa8] sm:$0xf] %v6549_v0  ;;  %6920 = vmatpush3.bf16.msra.mxu1 %v7448_v61  ;;  %v7481_v61 = vld [vmem:[%s9330_s2 + $0x120] ss:$8 sps:$4 sm:$0xff]   ;;  %v7486_v0 = vld [vmem:[%s9330_s2 + $0x134] ss:$8 sps:$4 sm:$0xff]  }
 0x1a8   :  { %v872_v1 = vpop.f32.mrf.mxu0  ;;  %6921 = vmatprep.subr.bf16.mxu1 %v7449_v63 }
 0x1a9   :  { %v6550_v7 = vpack.c.bf16 %v872_v1, %v872_v1 }
 0x1aa   :  { %v874_v9 = vpop.f32.mrf.mxu0 }
 0x1ab   :  { %1185 = vst [vmem:[#allocation2 + $0xe8] sm:$0xf] %v6550_v7  ;;  %6922 = vmatpush3.bf16.msra.mxu1 %v7450_v3  ;;  %v7483_v3 = vld [vmem:[%s9331_s3 + $0x318] sm:$0xff]  }
 0x1ac   :  { %v877_v11 = vpop.f32.mrf.mxu0  ;;  %3695 = vmatmul.mubr.bf16.gmra.mxu0 %v7453_v5  ;;  %6923 = vmatprep.subr.bf16.mxu1 %v7454_v6  ;;  %v7484_v5 = vld [vmem:[%s9331_s3 + $0x350] sm:$0xff]  }
 0x1ad   :  { %v6551_v13 = vpack.c.bf16 %v877_v11, %v877_v11  ;;  %6258 = vmatprep.mubr.msk.bf16.mxu0 %vm570_vm0, %v7458_v8  ;;  %v7485_v8 = vld [vmem:[%s9331_s3 + $0x310] sm:$0xff]   ;;  %v7489_v11 = vld [vmem:[%s9331_s3 + $0x348] sm:$0xff]  }
 0x1ae   :  { %v879_v14 = vpop.f32.mrf.mxu0 }
 0x1af   :  { %1200 = vst [vmem:[#allocation2 + $0x2c] sm:$0xf] %v6551_v13  ;;  %6924 = vmatpush3.bf16.msra.mxu1 %v7455_v10  ;;  %v7488_v10 = vld [vmem:[%s9330_s2 + $0x130] ss:$8 sps:$4 sm:$0xff]   ;;  %v7493_v13 = vld [vmem:[%s9330_s2 + $0x144] ss:$8 sps:$4 sm:$0xff]  }
 0x1b0   :  { %v880_v16 = vpop.f32.mrf.mxu0  ;;  %6925 = vmatprep.subr.bf16.mxu1 %v7456_v12 }
 0x1b1   :  { %v6552_v22 = vpack.c.bf16 %v880_v16, %v880_v16 }
 0x1b2   :  { %v882_v19 = vpop.f32.mrf.mxu0 }
 0x1b3   :  { %1201 = vst [vmem:[#allocation2 + $0x6c] sm:$0xf] %v6552_v22  ;;  %6926 = vmatpush3.bf16.msra.mxu1 %v7457_v15  ;;  %v7490_v15 = vld [vmem:[%s9331_s3 + $0x308] sm:$0xff]  }
 0x1b4   :  { %v885_v23 = vpop.f32.mrf.mxu0  ;;  %3703 = vmatmul.mubr.bf16.gmra.mxu0 %v7460_v21  ;;  %6927 = vmatprep.subr.bf16.mxu1 %v7461_v17  ;;  %v7491_v21 = vld [vmem:[%s9331_s3 + $0x340] sm:$0xff]  }
 0x1b5   :  { %v6553_v25 = vpack.c.bf16 %v885_v23, %v885_v23  ;;  %6259 = vmatprep.mubr.msk.bf16.mxu0 %vm570_vm0, %v7465_v18  ;;  %v7492_v18 = vld [vmem:[%s9331_s3 + $0x300] sm:$0xff]   ;;  %v7496_v23 = vld [vmem:[%s9331_s3 + $0x3f8] sm:$0xff]  }
 0x1b6   :  { %v887_v26 = vpop.f32.mrf.mxu0  ;;  %v1281_v34 = vld [vmem:[#allocation2 + $0x28] sm:$0xff] }
 0x1b7   :  { %1202 = vst [vmem:[#allocation2 + $0xac] sm:$0xf] %v6553_v25  ;;  %6928 = vmatpush3.bf16.msra.mxu1 %v7462_v20  ;;  %v7495_v20 = vld [vmem:[%s9330_s2 + $0x140] ss:$8 sps:$4 sm:$0xff]   ;;  %v7500_v25 = vld [vmem:[%s9330_s2 + $0x154] ss:$8 sps:$4 sm:$0xff]  }
 0x1b8   :  { %v888_v28 = vpop.f32.mrf.mxu0  ;;  %6929 = vmatprep.subr.bf16.mxu1 %v7463_v24 }
 0x1b9   :  { %v6554_v31 = vpack.c.bf16 %v888_v28, %v888_v28 }
 0x1ba   :  { %v890_v33 = vpop.f32.mrf.mxu0  ;;  %v1289_v35 = vld [vmem:[#allocation2 + $0x68] sm:$0xff] }
 0x1bb   :  { %1203 = vst [vmem:[#allocation2 + $0xec] sm:$0xf] %v6554_v31  ;;  %6930 = vmatpush3.bf16.msra.mxu1 %v7464_v27  ;;  %v6004_v36 = vcombine.high %v1281_v34, %v1289_v35  ;;  %v6003_v37 = vcombine.low %v1281_v34, %v1289_v35  ;;  %v7497_v31 = vld [vmem:[%s9331_s3 + $0x3b8] sm:$0xff]   ;;  %v7498_v33 = vld [vmem:[%s9331_s3 + $0x3f0] sm:$0xff]  }
 0x1bc   :  { %v893_v39 = vpop.f32.mrf.mxu0  ;;  %3711 = vmatmul.mubr.bf16.gmra.mxu0 %v7467_v29  ;;  %6943 = vmatprep.subr.bf16.mxu1 %v7468_v30 }
 0x1bd   :  { %v6555_v41 = vpack.c.bf16 %v893_v39, %v893_v39  ;;  %2769 = vmatprep.mubr.bf16.mxu1 %v6004_v36  ;;  %6260 = vmatprep.mubr.msk.bf16.mxu0 %vm570_vm0, %v7472_v32 }
 0x1be   :  { %v895_v42 = vpop.f32.mrf.mxu0  ;;  %2770 = vmatmul.mubr.bf16.vlgmr.msra.gmra.mxu1 %v6003_v37  ;;  %v1297_v50 = vld [vmem:[#allocation2 + $0xa8] sm:$0xff]  ;;  %v7499_v37 = vld [vmem:[%s9331_s3 + $0x3b0] sm:$0xff]  }
 0x1bf   :  { %1218 = vst [vmem:[#allocation2 + $0x30] sm:$0xf] %v6555_v41  ;;  %6944 = vmatpush3.bf16.msra.mxu1 %v7469_v38  ;;  %v7503_v41 = vld [vmem:[%s9331_s3 + $0x3e8] sm:$0xff]  }
 0x1c0   :  { %v896_v44 = vpop.f32.mrf.mxu0  ;;  %6945 = vmatprep.subr.bf16.mxu1 %v7470_v40  ;;  %v7502_v40 = vld [vmem:[%s9330_s2 + $0x150] ss:$8 sps:$4 sm:$0xff]  }
 0x1c1   :  { %v6556_v47 = vpack.c.bf16 %v896_v44, %v896_v44  ;;  %v7507_v44 = vld [vmem:[%s9330_s2 + $0x164] ss:$8 sps:$4 sm:$0xff]  }
 0x1c2   :  { %v898_v49 = vpop.f32.mrf.mxu0  ;;  %v1305_v51 = vld [vmem:[#allocation2 + $0xe8] sm:$0xff] }
 0x1c3   :  { %1219 = vst [vmem:[#allocation2 + $0x70] sm:$0xf] %v6556_v47  ;;  %6946 = vmatpush3.bf16.msra.mxu1 %v7471_v43  ;;  %v6020_v52 = vcombine.high %v1297_v50, %v1305_v51  ;;  %v6019_v53 = vcombine.low %v1297_v50, %v1305_v51  ;;  %v7504_v51 = vld [vmem:[%s9331_s3 + $0x3a8] sm:$0xff]  }
 0x1c4   :  { %v901_v55 = vpop.f32.mrf.mxu0  ;;  %3719 = vmatmul.mubr.bf16.gmra.mxu0 %v7474_v45  ;;  %6947 = vmatprep.subr.bf16.mxu1 %v7475_v46 }
 0x1c5   :  { %v6557_v57 = vpack.c.bf16 %v901_v55, %v901_v55  ;;  %2777 = vmatprep.mubr.bf16.mxu1 %v6020_v52  ;;  %6261 = vmatprep.mubr.msk.bf16.mxu0 %vm570_vm0, %v7479_v48 }
 0x1c6   :  { %v903_v58 = vpop.f32.mrf.mxu0  ;;  %2778 = vmatmul.mubr.bf16.gmra.mxu1 %v6019_v53 }
 0x1c7   :  { %1220 = vst [vmem:[#allocation2 + $0xb0] sm:$0xf] %v6557_v57  ;;  %6948 = vmatpush3.bf16.msra.mxu1 %v7476_v54  ;;  %v7505_v54 = vld [vmem:[%s9331_s3 + $0x3e0] sm:$0xff]  }
 0x1c8   :  { %v904_v60 = vpop.f32.mrf.mxu0  ;;  %6949 = vmatprep.subr.bf16.mxu1 %v7477_v56  ;;  %v7506_v58 = vld [vmem:[%s9331_s3 + $0x3a0] sm:$0xff]  }
 0x1c9   :  { %v6558_v63 = vpack.c.bf16 %v904_v60, %v904_v60 }
 0x1ca   :  { %v906_v2 = vpop.f32.mrf.mxu0 }
 0x1cb   :  { %1221 = vst [vmem:[#allocation2 + $0xf0] sm:$0xf] %v6558_v63  ;;  %6950 = vmatpush3.bf16.msra.mxu1 %v7478_v59  ;;  %v7514_v2 = vld [vmem:[%s9330_s2 + $0x174] ss:$8 sps:$4 sm:$0xff]  }
 0x1cc   :  { %v909_v1 = vpop.f32.mrf.mxu0  ;;  %3727 = vmatmul.mubr.bf16.gmra.mxu0 %v7481_v61  ;;  %6951 = vmatprep.subr.bf16.mxu1 %v7482_v62  ;;  %v7509_v61 = vld [vmem:[%s9330_s2 + $0x160] ss:$8 sps:$4 sm:$0xff]   ;;  %v7510_v62 = vld [vmem:[%s9331_s3 + $0x3d8] sm:$0xff]  }
 0x1cd   :  { %v6559_v6 = vpack.c.bf16 %v909_v1, %v909_v1  ;;  %6262 = vmatprep.mubr.msk.bf16.mxu0 %vm570_vm0, %v7486_v0  ;;  %v7511_v1 = vld [vmem:[%s9331_s3 + $0x398] sm:$0xff]  }
 0x1ce   :  { %v911_v7 = vpop.f32.mrf.mxu0 }
 0x1cf   :  { %1236 = vst [vmem:[#allocation2 + $0x34] sm:$0xf] %v6559_v6  ;;  %6952 = vmatpush3.bf16.msra.mxu1 %v7483_v3  ;;  %v7512_v6 = vld [vmem:[%s9331_s3 + $0x3d0] sm:$0xff]  }
 0x1d0   :  { %v912_v9 = vpop.f32.mrf.mxu0  ;;  %6953 = vmatprep.subr.bf16.mxu1 %v7484_v5 }
 0x1d1   :  { %v6560_v12 = vpack.c.bf16 %v912_v9, %v912_v9  ;;  %v7513_v9 = vld [vmem:[%s9331_s3 + $0x390] sm:$0xff]  }
 0x1d2   :  { %v914_v14 = vpop.f32.mrf.mxu0 }
 0x1d3   :  { %1237 = vst [vmem:[#allocation2 + $0x74] sm:$0xf] %v6560_v12  ;;  %6954 = vmatpush3.bf16.msra.mxu1 %v7485_v8  ;;  %v7517_v12 = vld [vmem:[%s9331_s3 + $0x3c8] sm:$0xff]  }
 0x1d4   :  { %v917_v16 = vpop.f32.mrf.mxu0  ;;  %3735 = vmatmul.mubr.bf16.gmra.mxu0 %v7488_v10  ;;  %6955 = vmatprep.subr.bf16.mxu1 %v7489_v11  ;;  %v7516_v11 = vld [vmem:[%s9330_s2 + $0x170] ss:$8 sps:$4 sm:$0xff]   ;;  %v7521_v14 = vld [vmem:[%s9330_s2 + $0x184] ss:$8 sps:$4 sm:$0xff]  }
 0x1d5   :  { %v6561_v17 = vpack.c.bf16 %v917_v16, %v917_v16  ;;  %6263 = vmatprep.mubr.msk.bf16.mxu0 %vm570_vm0, %v7493_v13  ;;  %v7518_v16 = vld [vmem:[%s9331_s3 + $0x388] sm:$0xff]  }
 0x1d6   :  { %v919_v22 = vpop.f32.mrf.mxu0  ;;  %v1282_v27 = vld [vmem:[#allocation2 + $0x30] sm:$0xff] }
 0x1d7   :  { %1238 = vst [vmem:[#allocation2 + $0xb4] sm:$0xf] %v6561_v17  ;;  %6956 = vmatpush3.bf16.msra.mxu1 %v7490_v15  ;;  %v7519_v17 = vld [vmem:[%s9331_s3 + $0x3c0] sm:$0xff]  }
 0x1d8   :  { %v920_v19 = vpop.f32.mrf.mxu0  ;;  %6957 = vmatprep.subr.bf16.mxu1 %v7491_v21 }
 0x1d9   :  { %v6562_v24 = vpack.c.bf16 %v920_v19, %v920_v19  ;;  %v7520_v19 = vld [vmem:[%s9331_s3 + $0x380] sm:$0xff]  }
 0x1da   :  { %v922_v26 = vpop.f32.mrf.mxu0  ;;  %v1290_v28 = vld [vmem:[#allocation2 + $0x70] sm:$0xff] }
 0x1db   :  { %1239 = vst [vmem:[#allocation2 + $0xf4] sm:$0xf] %v6562_v24  ;;  %6958 = vmatpush3.bf16.msra.mxu1 %v7492_v18  ;;  %v6006_v29 = vcombine.high %v1282_v27, %v1290_v28  ;;  %v6005_v30 = vcombine.low %v1282_v27, %v1290_v28  ;;  %v7523_v24 = vld [vmem:[%s9330_s2 + $0x180] ss:$8 sps:$4 sm:$0xff]   ;;  %v7527_v27 = vld [vmem:[%s9330_s2 + $0x194] ss:$8 sps:$4 sm:$0xff]  }
 0x1dc   :  { %v925_v32 = vpop.f32.mrf.mxu0  ;;  %3743 = vmatmul.mubr.bf16.gmra.mxu0 %v7495_v20  ;;  %6971 = vmatprep.subr.bf16.mxu1 %v7496_v23 }
 0x1dd   :  { %v6563_v34 = vpack.c.bf16 %v925_v32, %v925_v32  ;;  %2818 = vmatprep.mubr.bf16.mxu1 %v6006_v29  ;;  %6264 = vmatprep.mubr.msk.bf16.mxu0 %vm570_vm0, %v7500_v25  ;;  %v7524_v25 = vld [vmem:[%s9331_s3 + $0x78] sm:$0xff]  }
 0x1de   :  { %v927_v35 = vpop.f32.mrf.mxu0  ;;  %v6791_v36 = vpop.f32.mrf.mxu1  ;;  %2819 = vmatmul.mubr.bf16.vlgmr.msra.gmra.mxu1 %v6005_v30  ;;  %v1298_v47 = vld [vmem:[#allocation2 + $0xb0] sm:$0xff] }
 0x1df   :  { %1254 = vst [vmem:[#allocation2 + $0x38] sm:$0xf] %v6563_v34  ;;  %6972 = vmatpush3.bf16.msra.mxu1 %v7497_v31 }
 0x1e0   :  { %v928_v38 = vpop.f32.mrf.mxu0  ;;  %v6792_v39 = vpop.f32.mrf.mxu1  ;;  %6973 = vmatprep.subr.bf16.mxu1 %v7498_v33  ;;  %v7525_v33 = vld [vmem:[%s9331_s3 + $0x38] sm:$0xff]  }
 0x1e1   :  { %v6564_v42 = vpack.c.bf16 %v928_v38, %v928_v38  ;;  %v8644_v43 = vadd.f32 %v6792_v39, %v6791_v36  ;;  %v7526_v36 = vld [vmem:[%s9331_s3 + $0x70] sm:$0xff]  }
 0x1e2   :  { %v930_v45 = vpop.f32.mrf.mxu0  ;;  %v8649_v46 = vpop.f32.mrf.mxu1  ;;  %v1306_v48 = vld [vmem:[#allocation2 + $0xf0] sm:$0xff] }
 0x1e3   :  { %1255 = vst [vmem:[#allocation2 + $0x78] sm:$0xf] %v6564_v42  ;;  %6974 = vmatpush3.bf16.msra.mxu1 %v7499_v37  ;;  %v6022_v49 = vcombine.high %v1298_v47, %v1306_v48  ;;  %v6021_v50 = vcombine.low %v1298_v47, %v1306_v48  ;;  %v7531_v45 = vld [vmem:[%s9331_s3 + $0x68] sm:$0xff]  }
 0x1e4   :  { %v933_v52 = vpop.f32.mrf.mxu0  ;;  %v8654_v53 = vpop.f32.mrf.mxu1  ;;  %3751 = vmatmul.mubr.bf16.gmra.mxu0 %v7502_v40  ;;  %6975 = vmatprep.subr.bf16.mxu1 %v7503_v41  ;;  %v7529_v40 = vld [vmem:[%s9331_s3 + $0x30] sm:$0xff]  }
 0x1e5   :  { %v6565_v55 = vpack.c.bf16 %v933_v52, %v933_v52  ;;  %2826 = vmatprep.mubr.bf16.mxu1 %v6022_v49  ;;  %6265 = vmatprep.mubr.msk.bf16.mxu0 %vm570_vm0, %v7507_v44  ;;  %v7530_v44 = vld [vmem:[%s9330_s2 + $0x190] ss:$8 sps:$4 sm:$0xff]   ;;  %v7534_v49 = vld [vmem:[%s9330_s2 + $0x1a4] ss:$8 sps:$4 sm:$0xff]  }
 0x1e6   :  { %v935_v56 = vpop.f32.mrf.mxu0  ;;  %v6797_v57 = vpop.f32.mrf.mxu1  ;;  %2827 = vmatmul.mubr.bf16.gmra.mxu1 %v6021_v50 }
 0x1e7   :  { %1256 = vst [vmem:[#allocation2 + $0xb8] sm:$0xf] %v6565_v55  ;;  %6976 = vmatpush3.bf16.msra.mxu1 %v7504_v51 }
 0x1e8   :  { %v936_v59 = vpop.f32.mrf.mxu0  ;;  %v6798_v60 = vpop.f32.mrf.mxu1  ;;  %6977 = vmatprep.subr.bf16.mxu1 %v7505_v54 }
 0x1e9   :  { %v6566_v63 = vpack.c.bf16 %v936_v59, %v936_v59  ;;  %v8669_v0 = vadd.f32 %v6798_v60, %v6797_v57 }
 0x1ea   :  { %v938_v3 = vpop.f32.mrf.mxu0  ;;  %v8703_v20 = vpop.f32.mrf.mxu1 }
 0x1eb   :  { %1257 = vst [vmem:[#allocation2 + $0xf8] sm:$0xf] %v6566_v63  ;;  %6978 = vmatpush3.bf16.msra.mxu1 %v7506_v58  ;;  %v7532_v58 = vld [vmem:[%s9331_s3 + $0x28] sm:$0xff]  }
 0x1ec   :  { %v941_v5 = vpop.f32.mrf.mxu0  ;;  %3759 = vmatmul.mubr.bf16.gmra.mxu0 %v7509_v61  ;;  %6979 = vmatprep.subr.bf16.mxu1 %v7510_v62  ;;  %v8717_v34 = vpop.f32.mrf.mxu1  ;;  %v7533_v61 = vld [vmem:[%s9331_s3 + $0x60] sm:$0xff]  }
 0x1ed   :  { %v6567_v7 = vpack.c.bf16 %v941_v5, %v941_v5  ;;  %6266 = vmatprep.mubr.msk.bf16.mxu0 %vm570_vm0, %v7514_v2  ;;  %v7536_v5 = vld [vmem:[%s9331_s3 + $0x20] sm:$0xff]  }
 0x1ee   :  { %v943_v8 = vpop.f32.mrf.mxu0 }
 0x1ef   :  { %1272 = vst [vmem:[#allocation2 + $0x3c] sm:$0xf] %v6567_v7  ;;  %6980 = vmatpush3.bf16.msra.mxu1 %v7511_v1 }
 0x1f0   :  { %v944_v10 = vpop.f32.mrf.mxu0  ;;  %6981 = vmatprep.subr.bf16.mxu1 %v7512_v6 }
 0x1f1   :  { %v6568_v13 = vpack.c.bf16 %v944_v10, %v944_v10  ;;  %v7541_v10 = vld [vmem:[%s9330_s2 + $0x1b4] ss:$8 sps:$4 sm:$0xff]  }
 0x1f2   :  { %v946_v15 = vpop.f32.mrf.mxu0 }
 0x1f3   :  { %1273 = vst [vmem:[#allocation2 + $0x7c] sm:$0xf] %v6568_v13  ;;  %6982 = vmatpush3.bf16.msra.mxu1 %v7513_v9 }
 0x1f4   :  { %v949_v21 = vpop.f32.mrf.mxu0  ;;  %3767 = vmatmul.mubr.bf16.gmra.mxu0 %v7516_v11  ;;  %6983 = vmatprep.subr.bf16.mxu1 %v7517_v12 }
 0x1f5   :  { %v6569_v22 = vpack.c.bf16 %v949_v21, %v949_v21  ;;  %6267 = vmatprep.mubr.msk.bf16.mxu0 %vm570_vm0, %v7521_v14  ;;  %v7539_v14 = vld [vmem:[%s9331_s3 + $0x18] sm:$0xff]   ;;  %v7540_v21 = vld [vmem:[%s9331_s3 + $0x50] sm:$0xff]  }
 0x1f6   :  { %v951_v18 = vpop.f32.mrf.mxu0  ;;  %v1283_v29 = vld [vmem:[#allocation2 + $0x38] sm:$0xff] }
 0x1f7   :  { %1274 = vst [vmem:[#allocation2 + $0xbc] sm:$0xf] %v6569_v22  ;;  %6984 = vmatpush3.bf16.msra.mxu1 %v7518_v16 }
 0x1f8   :  { %v952_v23 = vpop.f32.mrf.mxu0  ;;  %6985 = vmatprep.subr.bf16.mxu1 %v7519_v17  ;;  %v6802_v17 = vadd.f32 %v8717_v34, %v8703_v20  ;;  %v7545_v20 = vld [vmem:[%s9331_s3 + $0x48] sm:$0xff]   ;;  %v7550_v34 = vld [vmem:[%s9331_s3] sm:$0xff]  }
 0x1f9   :  { %v6570_v26 = vpack.c.bf16 %v952_v23, %v952_v23  ;;  %v7543_v23 = vld [vmem:[%s9331_s3 + $0x10] sm:$0xff]  }
 0x1fa   :  { %v954_v28 = vpop.f32.mrf.mxu0  ;;  %v1291_v30 = vld [vmem:[#allocation2 + $0x78] sm:$0xff] }
 0x1fb   :  { %1275 = vst [vmem:[#allocation2 + $0xfc] sm:$0xf] %v6570_v26  ;;  %6986 = vmatpush3.bf16.msra.mxu1 %v7520_v19  ;;  %v6008_v31 = vcombine.high %v1283_v29, %v1291_v30  ;;  %v6007_v32 = vcombine.low %v1283_v29, %v1291_v30  ;;  %v7546_v29 = vld [vmem:[%s9331_s3 + $0x8] sm:$0xff]  }
 0x1fc   :  { %v3584_v35 = vpop.f32.mrf.mxu0  ;;  %3775 = vmatmul.mubr.bf16.gmra.mxu0 %v7523_v24  ;;  %6999 = vmatprep.subr.bf16.mxu1 %v7524_v25  ;;  %v7544_v25 = vld [vmem:[%s9330_s2 + $0x1b0] ss:$8 sps:$4 sm:$0xff]  }
 0x1fd   :  { %v6575_v37 = vpack.c.bf16 %v3584_v35, %v3584_v35  ;;  %2867 = vmatprep.mubr.bf16.mxu1 %v6008_v31  ;;  %6268 = vmatprep.mubr.msk.bf16.mxu0 %vm570_vm0, %v7527_v27  ;;  %v7548_v27 = vld [vmem:[%s9330_s2 + $0x1c4] ss:$8 sps:$4 sm:$0xff]  }
 0x1fe   :  { %v6819_v38 = vpop.f32.mrf.mxu1  ;;  %2868 = vmatmul.mubr.bf16.vlgmr.msra.gmra.mxu1 %v6007_v32  ;;  %v3586_v39 = vpop.f32.mrf.mxu0  ;;  %v1299_v52 = vld [vmem:[#allocation2 + $0xb8] sm:$0xff]  ;;  %v7547_v31 = vld [vmem:[%s9331_s3 + $0x40] sm:$0xff]  }
 0x1ff   :  { %3885 = vst [vmem:[#allocation2] sm:$0xf] %v6575_v37  ;;  %7000 = vmatpush3.bf16.msra.mxu1 %v7525_v33  ;;  %v7552_v37 = vld [vmem:[%s9331_s3 + $0xf8] sm:$0xff]  }
 0x200   :  { %v6820_v41 = vpop.f32.mrf.mxu1  ;;  %v3587_v42 = vpop.f32.mrf.mxu0  ;;  %7001 = vmatprep.subr.bf16.mxu1 %v7526_v36  ;;  %v7551_v36 = vld [vmem:[%s9330_s2 + $0x1c0] ss:$8 sps:$4 sm:$0xff]   ;;  %v7555_v39 = vld [vmem:[%s9330_s2 + $0x1d4] ss:$8 sps:$4 sm:$0xff]  }
 0x201   :  { %v6821_v47 = vadd.f32 %v6820_v41, %v6819_v38  ;;  %v6576_v48 = vpack.c.bf16 %v3587_v42, %v3587_v42 }
 0x202   :  { %v6822_v50 = vpop.f32.mrf.mxu1  ;;  %v3589_v51 = vpop.f32.mrf.mxu0  ;;  %v1307_v54 = vld [vmem:[#allocation2 + $0xf8] sm:$0xff] }
 0x203   :  { %v8736_v55 = vadd.f32 %v6821_v47, %v8644_v43  ;;  %3886 = vst [vmem:[#allocation2 + $0x40] sm:$0xf] %v6576_v48  ;;  %7002 = vmatpush3.bf16.msra.mxu1 %v7529_v40  ;;  %v6024_v56 = vcombine.high %v1299_v52, %v1307_v54  ;;  %v6023_v57 = vcombine.low %v1299_v52, %v1307_v54  ;;  %v7553_v47 = vld [vmem:[%s9331_s3 + $0xb8] sm:$0xff]   ;;  %v7557_v54 = vld [vmem:[%s9331_s3 + $0xb0] sm:$0xff]  }
 0x204   :  { %v6823_v59 = vpop.f32.mrf.mxu1  ;;  %v3592_v60 = vpop.f32.mrf.mxu0  ;;  %3783 = vmatmul.mubr.bf16.gmra.mxu0 %v7530_v44  ;;  %7003 = vmatprep.subr.bf16.mxu1 %v7531_v45  ;;  %v6796_v43 = vadd.f32 %v8654_v53, %v8649_v46  ;;  %v7537_v46 = vld [vmem:[%s9330_s2 + $0x1a0] ss:$8 sps:$4 sm:$0xff]   ;;  %v7538_v53 = vld [vmem:[%s9331_s3 + $0x58] sm:$0xff]  }
 0x205   :  { %v6824_v62 = vadd.f32 %v6823_v59, %v6822_v50  ;;  %v6577_v63 = vpack.c.bf16 %v3592_v60, %v3592_v60  ;;  %2875 = vmatprep.mubr.bf16.mxu1 %v6024_v56  ;;  %6269 = vmatprep.mubr.msk.bf16.mxu0 %vm570_vm0, %v7534_v49  ;;  %v7554_v49 = vld [vmem:[%s9331_s3 + $0xf0] sm:$0xff]   ;;  %v7559_v59 = vld [vmem:[%s9331_s3 + $0xe8] sm:$0xff]  }
 0x206   :  { %v6825_v2 = vpop.f32.mrf.mxu1  ;;  %2876 = vmatmul.mubr.bf16.gmra.mxu1 %v6023_v57  ;;  %v3594_v3 = vpop.f32.mrf.mxu0 }
 0x207   :  { %v8747_v1 = vadd.f32 %v6824_v62, %v6796_v43  ;;  %3887 = vst [vmem:[#allocation2 + $0x80] sm:$0xf] %v6577_v63  ;;  %7004 = vmatpush3.bf16.msra.mxu1 %v7532_v58  ;;  %v7558_v58 = vld [vmem:[%s9330_s2 + $0x1d0] ss:$8 sps:$4 sm:$0xff]   ;;  %v7562_v43 = vld [vmem:[%s9330_s2 + $0x1e4] ss:$8 sps:$4 sm:$0xff]  }
 0x208   :  { %v6826_v6 = vpop.f32.mrf.mxu1  ;;  %v3595_v7 = vpop.f32.mrf.mxu0  ;;  %7005 = vmatprep.subr.bf16.mxu1 %v7533_v61 }
 0x209   :  { %v6827_v8 = vadd.f32 %v6826_v6, %v6825_v2  ;;  %v6578_v9 = vpack.c.bf16 %v3595_v7, %v3595_v7 }
 0x20a   :  { %v6828_v11 = vpop.f32.mrf.mxu1  ;;  %v3597_v12 = vpop.f32.mrf.mxu0 }
 0x20b   :  { %v8762_v13 = vadd.f32 %v6827_v8, %v8669_v0  ;;  %3888 = vst [vmem:[#allocation2 + $0xc0] sm:$0xf] %v6578_v9  ;;  %7006 = vmatpush3.bf16.msra.mxu1 %v7536_v5  ;;  %v7561_v9 = vld [vmem:[%s9331_s3 + $0xe0] sm:$0xff]  }
 0x20c   :  { %v6829_v15 = vpop.f32.mrf.mxu1  ;;  %v3600_v16 = vpop.f32.mrf.mxu0  ;;  %3791 = vmatmul.mubr.bf16.gmra.mxu0 %v7537_v46  ;;  %7007 = vmatprep.subr.bf16.mxu1 %v7538_v53  ;;  %v7560_v46 = vld [vmem:[%s9331_s3 + $0xa8] sm:$0xff]  }
 0x20d   :  { %v6830_v22 = vadd.f32 %v6829_v15, %v6828_v11  ;;  %v6579_v0 = vpack.c.bf16 %v3600_v16, %v3600_v16  ;;  %6270 = vmatprep.mubr.msk.bf16.mxu0 %vm570_vm0, %v7541_v10  ;;  %v7564_v15 = vld [vmem:[%s9331_s3 + $0xa0] sm:$0xff]  }
 0x20e   :  { %v3602_v18 = vpop.f32.mrf.mxu0 }
 0x20f   :  { %v8773_v19 = vadd.f32 %v6830_v22, %v6802_v17  ;;  %3903 = vst [vmem:[#allocation2 + $0x4] sm:$0xf] %v6579_v0  ;;  %7008 = vmatpush3.bf16.msra.mxu1 %v7539_v14  ;;  %v7565_v17 = vld [vmem:[%s9330_s2 + $0x1e0] ss:$8 sps:$4 sm:$0xff]   ;;  %v7566_v22 = vld [vmem:[%s9331_s3 + $0xd8] sm:$0xff]  }
 0x210   :  { %v3603_v24 = vpop.f32.mrf.mxu0  ;;  %7009 = vmatprep.subr.bf16.mxu1 %v7540_v21  ;;  %v7569_v18 = vld [vmem:[%s9330_s2 + $0x1f4] ss:$8 sps:$4 sm:$0xff]  }
 0x211   :  { %v6580_v26 = vpack.c.bf16 %v3603_v24, %v3603_v24 }
 0x212   :  { %v3605_v28 = vpop.f32.mrf.mxu0 }
 0x213   :  { %3904 = vst [vmem:[#allocation2 + $0x44] sm:$0xf] %v6580_v26  ;;  %7010 = vmatpush3.bf16.msra.mxu1 %v7543_v23  ;;  %v7568_v28 = vld [vmem:[%s9331_s3 + $0xd0] sm:$0xff]  }
 0x214   :  { %v3608_v30 = vpop.f32.mrf.mxu0  ;;  %3799 = vmatmul.mubr.bf16.gmra.mxu0 %v7544_v25  ;;  %7011 = vmatprep.subr.bf16.mxu1 %v7545_v20  ;;  %v7567_v20 = vld [vmem:[%s9331_s3 + $0x98] sm:$0xff]  }
 0x215   :  { %v6581_v32 = vpack.c.bf16 %v3608_v30, %v3608_v30  ;;  %6271 = vmatprep.mubr.msk.bf16.mxu0 %vm570_vm0, %v7548_v27 }
 0x216   :  { %v3610_v33 = vpop.f32.mrf.mxu0  ;;  %v4159_v41 = vld [vmem:[#allocation2] sm:$0xff] }
 0x217   :  { %3905 = vst [vmem:[#allocation2 + $0x84] sm:$0xf] %v6581_v32  ;;  %7012 = vmatpush3.bf16.msra.mxu1 %v7546_v29  ;;  %v7571_v32 = vld [vmem:[%s9331_s3 + $0x90] sm:$0xff]  }
 0x218   :  { %v3611_v35 = vpop.f32.mrf.mxu0  ;;  %7013 = vmatprep.subr.bf16.mxu1 %v7547_v31 }
 0x219   :  { %v6582_v38 = vpack.c.bf16 %v3611_v35, %v3611_v35  ;;  %v7573_v35 = vld [vmem:[%s9331_s3 + $0xc8] sm:$0xff]  }
 0x21a   :  { %v3613_v40 = vpop.f32.mrf.mxu0  ;;  %v4167_v42 = vld [vmem:[#allocation2 + $0x40] sm:$0xff] }
 0x21b   :  { %3906 = vst [vmem:[#allocation2 + $0xc4] sm:$0xf] %v6582_v38  ;;  %7014 = vmatpush3.bf16.msra.mxu1 %v7550_v34  ;;  %v6339_v44 = vcombine.low %v4159_v41, %v4167_v42  ;;  %v6340_v45 = vcombine.high %v4159_v41, %v4167_v42  ;;  %v7572_v34 = vld [vmem:[%s9330_s2 + $0x1f0] ss:$8 sps:$4 sm:$0xff]   ;;  %v7576_v42 = vld [vmem:[%s9331_s3 + $0x80] sm:$0xff]  }
 0x21c   :  { %v3616_v48 = vpop.f32.mrf.mxu0  ;;  %3807 = vmatmul.mubr.bf16.gmra.mxu0 %v7551_v36  ;;  %7027 = vmatprep.subr.bf16.mxu1 %v7552_v37 }
 0x21d   :  { %v6583_v50 = vpack.c.bf16 %v3616_v48, %v3616_v48  ;;  %5407 = vmatprep.mubr.bf16.mxu1 %v6340_v45  ;;  %6272 = vmatprep.mubr.msk.bf16.mxu0 %vm570_vm0, %v7555_v39  ;;  %v7575_v39 = vld [vmem:[%s9331_s3 + $0xc0] sm:$0xff]   ;;  %v7577_v45 = vld [vmem:[%s9331_s3 + $0x178] sm:$0xff]  }
 0x21e   :  { %v6847_v51 = vpop.f32.mrf.mxu1  ;;  %v3618_v52 = vpop.f32.mrf.mxu0  ;;  %5408 = vmatmul.mubr.bf16.vlgmr.msra.gmra.mxu1 %v6339_v44  ;;  %v4175_v2 = vld [vmem:[#allocation2 + $0x80] sm:$0xff] }
 0x21f   :  { %3921 = vst [vmem:[#allocation2 + $0x8] sm:$0xf] %v6583_v50  ;;  %7028 = vmatpush3.bf16.msra.mxu1 %v7553_v47 }
 0x220   :  { %v6848_v56 = vpop.f32.mrf.mxu1  ;;  %v3619_v57 = vpop.f32.mrf.mxu0  ;;  %7029 = vmatprep.subr.bf16.mxu1 %v7554_v49 }
 0x221   :  { %v6849_v60 = vadd.f32 %v6848_v56, %v6847_v51  ;;  %v6584_v61 = vpack.c.bf16 %v3619_v57, %v3619_v57  ;;  %v7579_v57 = vld [vmem:[%s9331_s3 + $0x170] sm:$0xff]  }
 0x222   :  { %v6850_v62 = vpop.f32.mrf.mxu1  ;;  %v3621_v63 = vpop.f32.mrf.mxu0  ;;  %v4183_v3 = vld [vmem:[#allocation2 + $0xc0] sm:$0xff] }
 0x223   :  { %v8826_v5 = vadd.f32 %v6849_v60, %v8736_v55  ;;  %3922 = vst [vmem:[#allocation2 + $0x48] sm:$0xf] %v6584_v61  ;;  %7030 = vmatpush3.bf16.msra.mxu1 %v7557_v54  ;;  %v6356_v6 = vcombine.high %v4175_v2, %v4183_v3  ;;  %v6355_v7 = vcombine.low %v4175_v2, %v4183_v3  ;;  %v7578_v54 = vld [vmem:[%s9331_s3 + $0x138] sm:$0xff]   ;;  %v7580_v60 = vld [vmem:[%s9331_s3 + $0x130] sm:$0xff]  }
 0x224   :  { %v6851_v53 = vpop.f32.mrf.mxu1  ;;  %v3624_v8 = vpop.f32.mrf.mxu0  ;;  %3815 = vmatmul.mubr.bf16.gmra.mxu0 %v7558_v58  ;;  %7031 = vmatprep.subr.bf16.mxu1 %v7559_v59 }
 0x225   :  { %v6852_v10 = vadd.f32 %v6851_v53, %v6850_v62  ;;  %v6585_v11 = vpack.c.bf16 %v3624_v8, %v3624_v8  ;;  %5415 = vmatprep.mubr.bf16.mxu1 %v6356_v6  ;;  %6273 = vmatprep.mubr.msk.bf16.mxu0 %vm570_vm0, %v7562_v43  ;;  %v7581_v43 = vld [vmem:[%s9331_s3 + $0x168] sm:$0xff]   ;;  %v7583_v8 = vld [vmem:[%s9331_s3 + $0x160] sm:$0xff]  }
 0x226   :  { %v6853_v55 = vpop.f32.mrf.mxu1  ;;  %v3626_v12 = vpop.f32.mrf.mxu0  ;;  %5416 = vmatmul.mubr.bf16.gmra.mxu1 %v6355_v7 }
 0x227   :  { %v8836_v14 = vadd.f32 %v6852_v10, %v8747_v1  ;;  %3923 = vst [vmem:[#allocation2 + $0x88] sm:$0xf] %v6585_v11  ;;  %7032 = vmatpush3.bf16.msra.mxu1 %v7560_v46  ;;  %v7582_v46 = vld [vmem:[%s9331_s3 + $0x128] sm:$0xff]  }
 0x228   :  { %v6854_v16 = vpop.f32.mrf.mxu1  ;;  %v3627_v21 = vpop.f32.mrf.mxu0  ;;  %7033 = vmatprep.subr.bf16.mxu1 %v7561_v9 }
 0x229   :  { %v6855_v0 = vadd.f32 %v6854_v16, %v6853_v55  ;;  %v6586_v1 = vpack.c.bf16 %v3627_v21, %v3627_v21  ;;  %v7584_v55 = vld [vmem:[%s9331_s3 + $0x120] sm:$0xff]  }
 0x22a   :  { %v6856_v23 = vpop.f32.mrf.mxu1  ;;  %v3629_v24 = vpop.f32.mrf.mxu0 }
 0x22b   :  { %v8851_v25 = vadd.f32 %v6855_v0, %v8762_v13  ;;  %3924 = vst [vmem:[#allocation2 + $0xc8] sm:$0xf] %v6586_v1  ;;  %7034 = vmatpush3.bf16.msra.mxu1 %v7564_v15  ;;  %v7585_v15 = vld [vmem:[%s9331_s3 + $0x158] sm:$0xff]   ;;  %v7587_v1 = vld [vmem:[%s9331_s3 + $0x150] sm:$0xff]  }
 0x22c   :  { %v6857_v26 = vpop.f32.mrf.mxu1  ;;  %v3632_v27 = vpop.f32.mrf.mxu0  ;;  %3823 = vmatmul.mubr.bf16.gmra.mxu0 %v7565_v17  ;;  %7035 = vmatprep.subr.bf16.mxu1 %v7566_v22  ;;  %v7586_v22 = vld [vmem:[%s9331_s3 + $0x118] sm:$0xff]  }
 0x22d   :  { %v6858_v29 = vadd.f32 %v6857_v26, %v6856_v23  ;;  %v6587_v30 = vpack.c.bf16 %v3632_v27, %v3632_v27  ;;  %6274 = vmatprep.mubr.msk.bf16.mxu0 %vm570_vm0, %v7569_v18  ;;  %v7589_v27 = vld [vmem:[%s9331_s3 + $0x148] sm:$0xff]  }
 0x22e   :  { %v3634_v13 = vpop.f32.mrf.mxu0 }
 0x22f   :  { %v8861_v31 = vadd.f32 %v6858_v29, %v8773_v19  ;;  %3939 = vst [vmem:[#allocation2 + $0xc] sm:$0xf] %v6587_v30  ;;  %7036 = vmatpush3.bf16.msra.mxu1 %v7567_v20  ;;  %v7574_v19 = vld [vmem:[%s9331_s3 + $0x88] sm:$0xff]   ;;  %v7588_v20 = vld [vmem:[%s9331_s3 + $0x110] sm:$0xff]  }
 0x230   :  { %v3635_v33 = vpop.f32.mrf.mxu0  ;;  %7037 = vmatprep.subr.bf16.mxu1 %v7568_v28  ;;  %v7674_v28 = vmov 0.0  }
 0x231   :  { %v6588_v36 = vpack.c.bf16 %v3635_v33, %v3635_v33  ;;  %25 = vst [vmem:[%s9332_s5] sm:$0x1] %v7674_v28  ;;  %26 = vst [vmem:[%s9333_s6] sm:$0x1] %v7674_v28 }
 0x232   :  { %v3637_v37 = vpop.f32.mrf.mxu0 }
 0x233   :  { %3940 = vst [vmem:[#allocation2 + $0x4c] sm:$0xf] %v6588_v36  ;;  %7038 = vmatpush3.bf16.msra.mxu1 %v7571_v32  ;;  %v7590_v32 = vld [vmem:[%s9331_s3 + $0x108] sm:$0xff]  }
 0x234   :  { %v3640_v38 = vpop.f32.mrf.mxu0  ;;  %3831 = vmatmul.mubr.bf16.gmra.mxu0 %v7572_v34  ;;  %7039 = vmatprep.subr.bf16.mxu1 %v7573_v35  ;;  %v7591_v34 = vld [vmem:[%s9331_s3 + $0x140] sm:$0xff]  }
 0x235   :  { %v6589_v40 = vpack.c.bf16 %v3640_v38, %v3640_v38 }
 0x236   :  { %v3642_v41 = vpop.f32.mrf.mxu0  ;;  %v4160_v49 = vld [vmem:[#allocation2 + $0x8] sm:$0xff] }
 0x237   :  { %3941 = vst [vmem:[#allocation2 + $0x8c] sm:$0xf] %v6589_v40  ;;  %7040 = vmatpush3.bf16.msra.mxu1 %v7574_v19  ;;  %v7592_v19 = vld [vmem:[%s9331_s3 + $0x100] sm:$0xff]  }
 0x238   :  { %v3643_v44 = vpop.f32.mrf.mxu0  ;;  %7041 = vmatprep.subr.bf16.mxu1 %v7575_v39  ;;  %v7593_v39 = vld [vmem:[%s9331_s3 + $0x1f8] sm:$0xff]  }
 0x239   :  { %v6590_v47 = vpack.c.bf16 %v3643_v44, %v3643_v44 }
 0x23a   :  { %v3645_v48 = vpop.f32.mrf.mxu0  ;;  %v4168_v50 = vld [vmem:[#allocation2 + $0x48] sm:$0xff] }
 0x23b   :  { %3942 = vst [vmem:[#allocation2 + $0xcc] sm:$0xf] %v6590_v47  ;;  %7042 = vmatpush3.bf16.msra.mxu1 %v7576_v42  ;;  %v6341_v51 = vcombine.low %v4160_v49, %v4168_v50  ;;  %v6342_v52 = vcombine.high %v4160_v49, %v4168_v50  ;;  %v7594_v49 = vld [vmem:[%s9331_s3 + $0x1b8] sm:$0xff]  }
 0x23c   :  { %v3648_v56 = vpop.f32.mrf.mxu0  ;;  %7055 = vmatprep.subr.bf16.mxu1 %v7577_v45 }
 0x23d   :  { %v6591_v58 = vpack.c.bf16 %v3648_v56, %v3648_v56  ;;  %5456 = vmatprep.mubr.bf16.mxu1 %v6342_v52 }
 0x23e   :  { %v3650_v59 = vpop.f32.mrf.mxu0  ;;  %5457 = vmatmul.mubr.bf16.vlgmr.msra.gmra.mxu1 %v6341_v51  ;;  %v4176_v2 = vld [vmem:[#allocation2 + $0x88] sm:$0xff]  ;;  %v8902_v10 = vpop.f32.mrf.mxu1  ;;  %v7595_v51 = vld [vmem:[%s9331_s3 + $0x1f0] sm:$0xff]  }
 0x23f   :  { %3957 = vst [vmem:[#allocation2 + $0x10] sm:$0xf] %v6591_v58  ;;  %7056 = vmatpush3.bf16.msra.mxu1 %v7578_v54  ;;  %v7597_v59 = vld [vmem:[%s9331_s3 + $0x1e8] sm:$0xff]  }
 0x240   :  { %v3651_v61 = vpop.f32.mrf.mxu0  ;;  %7057 = vmatprep.subr.bf16.mxu1 %v7579_v57  ;;  %v8910_v21 = vpop.f32.mrf.mxu1  ;;  %v7596_v57 = vld [vmem:[%s9331_s3 + $0x1b0] sm:$0xff]  }
 0x241   :  { %v6592_v62 = vpack.c.bf16 %v3651_v61, %v3651_v61 }
 0x242   :  { %v3653_v63 = vpop.f32.mrf.mxu0  ;;  %v4184_v3 = vld [vmem:[#allocation2 + $0xc8] sm:$0xff]  ;;  %v8918_v23 = vpop.f32.mrf.mxu1 }
 0x243   :  { %3958 = vst [vmem:[#allocation2 + $0x50] sm:$0xf] %v6592_v62  ;;  %7058 = vmatpush3.bf16.msra.mxu1 %v7580_v60  ;;  %v6358_v6 = vcombine.high %v4176_v2, %v4184_v3  ;;  %v6357_v7 = vcombine.low %v4176_v2, %v4184_v3 }
 0x244   :  { %v3656_v53 = vpop.f32.mrf.mxu0  ;;  %7059 = vmatprep.subr.bf16.mxu1 %v7581_v43  ;;  %v8934_v30 = vpop.f32.mrf.mxu1 }
 0x245   :  { %v6593_v9 = vpack.c.bf16 %v3656_v53, %v3656_v53  ;;  %5464 = vmatprep.mubr.bf16.mxu1 %v6358_v6  ;;  %v7598_v6 = vld [vmem:[%s9331_s3 + $0x1a8] sm:$0xff]   ;;  %v7599_v53 = vld [vmem:[%s9331_s3 + $0x1e0] sm:$0xff]  }
 0x246   :  { %v3658_v11 = vpop.f32.mrf.mxu0  ;;  %5465 = vmatmul.mubr.bf16.gmra.mxu1 %v6357_v7  ;;  %v8942_v36 = vpop.f32.mrf.mxu1 }
 0x247   :  { %3959 = vst [vmem:[#allocation2 + $0x90] sm:$0xf] %v6593_v9  ;;  %7060 = vmatpush3.bf16.msra.mxu1 %v7582_v46  ;;  %v7600_v11 = vld [vmem:[%s9331_s3 + $0x1a0] sm:$0xff]  }
 0x248   :  { %v3659_v12 = vpop.f32.mrf.mxu0  ;;  %7061 = vmatprep.subr.bf16.mxu1 %v7583_v8  ;;  %v8950_v41 = vpop.f32.mrf.mxu1 }
 0x249   :  { %v6594_v16 = vpack.c.bf16 %v3659_v12, %v3659_v12 }
 0x24a   :  { %v3661_v17 = vpop.f32.mrf.mxu0  ;;  %v8958_v54 = vpop.f32.mrf.mxu1 }
 0x24b   :  { %3960 = vst [vmem:[#allocation2 + $0xd0] sm:$0xf] %v6594_v16  ;;  %7062 = vmatpush3.bf16.msra.mxu1 %v7584_v55 }
 0x24c   :  { %v3664_v0 = vpop.f32.mrf.mxu0  ;;  %7063 = vmatprep.subr.bf16.mxu1 %v7585_v15  ;;  %v8966_v61 = vpop.f32.mrf.mxu1  ;;  %v7601_v15 = vld [vmem:[%s9331_s3 + $0x1d8] sm:$0xff]  }
 0x24d   :  { %v6595_v18 = vpack.c.bf16 %v3664_v0, %v3664_v0 }
 0x24e   :  { %v3666_v24 = vpop.f32.mrf.mxu0 }
 0x24f   :  { %3975 = vst [vmem:[#allocation2 + $0x14] sm:$0xf] %v6595_v18  ;;  %7064 = vmatpush3.bf16.msra.mxu1 %v7586_v22  ;;  %v7602_v22 = vld [vmem:[%s9331_s3 + $0x198] sm:$0xff]   ;;  %v7603_v18 = vld [vmem:[%s9331_s3 + $0x1d0] sm:$0xff]  }
 0x250   :  { %v3667_v26 = vpop.f32.mrf.mxu0  ;;  %7065 = vmatprep.subr.bf16.mxu1 %v7587_v1 }
 0x251   :  { %v6596_v29 = vpack.c.bf16 %v3667_v26, %v3667_v26  ;;  %v7604_v26 = vld [vmem:[%s9331_s3 + $0x190] sm:$0xff]  }
 0x252   :  { %v3669_v13 = vpop.f32.mrf.mxu0 }
 0x253   :  { %3976 = vst [vmem:[#allocation2 + $0x54] sm:$0xf] %v6596_v29  ;;  %7066 = vmatpush3.bf16.msra.mxu1 %v7588_v20  ;;  %v7605_v13 = vld [vmem:[%s9331_s3 + $0x1c8] sm:$0xff]  }
 0x254   :  { %v3672_v33 = vpop.f32.mrf.mxu0  ;;  %7067 = vmatprep.subr.bf16.mxu1 %v7589_v27 }
 0x255   :  { %v6597_v35 = vpack.c.bf16 %v3672_v33, %v3672_v33 }
 0x256   :  { %v3674_v37 = vpop.f32.mrf.mxu0  ;;  %v4161_v44 = vld [vmem:[#allocation2 + $0x10] sm:$0xff] }
 0x257   :  { %3977 = vst [vmem:[#allocation2 + $0x94] sm:$0xf] %v6597_v35  ;;  %7068 = vmatpush3.bf16.msra.mxu1 %v7590_v32 }
 0x258   :  { %v3675_v38 = vpop.f32.mrf.mxu0  ;;  %7069 = vmatprep.subr.bf16.mxu1 %v7591_v34  ;;  %v7606_v34 = vld [vmem:[%s9331_s3 + $0x188] sm:$0xff]  }
 0x259   :  { %v6598_v40 = vpack.c.bf16 %v3675_v38, %v3675_v38 }
 0x25a   :  { %v3677_v42 = vpop.f32.mrf.mxu0  ;;  %v4169_v45 = vld [vmem:[#allocation2 + $0x50] sm:$0xff] }
 0x25b   :  { %3978 = vst [vmem:[#allocation2 + $0xd4] sm:$0xf] %v6598_v40  ;;  %7070 = vmatpush3.bf16.msra.mxu1 %v7592_v19  ;;  %v6343_v47 = vcombine.low %v4161_v44, %v4169_v45  ;;  %v6344_v48 = vcombine.high %v4161_v44, %v4169_v45  ;;  %v7607_v19 = vld [vmem:[%s9331_s3 + $0x1c0] sm:$0xff]   ;;  %v7609_v45 = vld [vmem:[%s9331_s3 + $0x278] sm:$0xff]  }
 0x25c   :  { %v3680_v50 = vpop.f32.mrf.mxu0  ;;  %7083 = vmatprep.subr.bf16.mxu1 %v7593_v39  ;;  %v7608_v40 = vld [vmem:[%s9331_s3 + $0x180] sm:$0xff]  }
 0x25d   :  { %v6599_v52 = vpack.c.bf16 %v3680_v50, %v3680_v50  ;;  %5505 = vmatprep.mubr.bf16.mxu1 %v6344_v48 }
 0x25e   :  { %v3682_v56 = vpop.f32.mrf.mxu0  ;;  %5506 = vmatmul.mubr.bf16.vlgmr.msra.gmra.mxu1 %v6343_v47  ;;  %v4177_v62 = vld [vmem:[#allocation2 + $0x90] sm:$0xff]  ;;  %v8971_v7 = vpop.f32.mrf.mxu1 }
 0x25f   :  { %3993 = vst [vmem:[#allocation2 + $0x18] sm:$0xf] %v6599_v52  ;;  %7084 = vmatpush3.bf16.msra.mxu1 %v7594_v49  ;;  %v7610_v56 = vld [vmem:[%s9331_s3 + $0x238] sm:$0xff]  }
 0x260   :  { %v3683_v58 = vpop.f32.mrf.mxu0  ;;  %7085 = vmatprep.subr.bf16.mxu1 %v7595_v51  ;;  %v8979_v55 = vpop.f32.mrf.mxu1 }
 0x261   :  { %v6600_v60 = vpack.c.bf16 %v3683_v58, %v3683_v58 }
 0x262   :  { %v3685_v43 = vpop.f32.mrf.mxu0  ;;  %v4185_v63 = vld [vmem:[#allocation2 + $0xd0] sm:$0xff]  ;;  %v8987_v0 = vpop.f32.mrf.mxu1 }
 0x263   :  { %3994 = vst [vmem:[#allocation2 + $0x58] sm:$0xf] %v6600_v60  ;;  %7086 = vmatpush3.bf16.msra.mxu1 %v7596_v57  ;;  %v6360_v2 = vcombine.high %v4177_v62, %v4185_v63  ;;  %v6359_v3 = vcombine.low %v4177_v62, %v4185_v63  ;;  %v7612_v62 = vld [vmem:[%s9331_s3 + $0x230] sm:$0xff]  }
 0x264   :  { %v3688_v46 = vpop.f32.mrf.mxu0  ;;  %7087 = vmatprep.subr.bf16.mxu1 %v7597_v59  ;;  %v8995_v27 = vpop.f32.mrf.mxu1  ;;  %v7611_v59 = vld [vmem:[%s9331_s3 + $0x270] sm:$0xff]  }
 0x265   :  { %v6601_v8 = vpack.c.bf16 %v3688_v46, %v3688_v46  ;;  %5513 = vmatprep.mubr.bf16.mxu1 %v6360_v2 }
 0x266   :  { %v3690_v9 = vpop.f32.mrf.mxu0  ;;  %5514 = vmatmul.mubr.bf16.gmra.mxu1 %v6359_v3  ;;  %v9003_v35 = vpop.f32.mrf.mxu1  ;;  %v7613_v3 = vld [vmem:[%s9331_s3 + $0x268] sm:$0xff]  }
 0x267   :  { %3995 = vst [vmem:[#allocation2 + $0x98] sm:$0xf] %v6601_v8  ;;  %7088 = vmatpush3.bf16.msra.mxu1 %v7598_v6 }
 0x268   :  { %v3691_v12 = vpop.f32.mrf.mxu0  ;;  %7089 = vmatprep.subr.bf16.mxu1 %v7599_v53  ;;  %v9011_v42 = vpop.f32.mrf.mxu1 }
 0x269   :  { %v6602_v16 = vpack.c.bf16 %v3691_v12, %v3691_v12 }
 0x26a   :  { %v3693_v17 = vpop.f32.mrf.mxu0  ;;  %v9019_v57 = vpop.f32.mrf.mxu1 }
 0x26b   :  { %3996 = vst [vmem:[#allocation2 + $0xd8] sm:$0xf] %v6602_v16  ;;  %7090 = vmatpush3.bf16.msra.mxu1 %v7600_v11  ;;  %v7615_v17 = vld [vmem:[%s9331_s3 + $0x260] sm:$0xff]  }
 0x26c   :  { %v3696_v1 = vpop.f32.mrf.mxu0  ;;  %7091 = vmatprep.subr.bf16.mxu1 %v7601_v15  ;;  %v9027_v63 = vpop.f32.mrf.mxu1  ;;  %v7614_v15 = vld [vmem:[%s9331_s3 + $0x228] sm:$0xff]  }
 0x26d   :  { %v6603_v24 = vpack.c.bf16 %v3696_v1, %v3696_v1 }
 0x26e   :  { %v3698_v20 = vpop.f32.mrf.mxu0 }
 0x26f   :  { %4011 = vst [vmem:[#allocation2 + $0x1c] sm:$0xf] %v6603_v24  ;;  %7092 = vmatpush3.bf16.msra.mxu1 %v7602_v22  ;;  %v7616_v24 = vld [vmem:[%s9331_s3 + $0x220] sm:$0xff]  }
 0x270   :  { %v3699_v29 = vpop.f32.mrf.mxu0  ;;  %7093 = vmatprep.subr.bf16.mxu1 %v7603_v18 }
 0x271   :  { %v6604_v32 = vpack.c.bf16 %v3699_v29, %v3699_v29 }
 0x272   :  { %v3701_v33 = vpop.f32.mrf.mxu0 }
 0x273   :  { %4012 = vst [vmem:[#allocation2 + $0x5c] sm:$0xf] %v6604_v32  ;;  %7094 = vmatpush3.bf16.msra.mxu1 %v7604_v26  ;;  %v7617_v26 = vld [vmem:[%s9331_s3 + $0x258] sm:$0xff]  }
 0x274   :  { %v3704_v37 = vpop.f32.mrf.mxu0  ;;  %7095 = vmatprep.subr.bf16.mxu1 %v7605_v13  ;;  %v7618_v33 = vld [vmem:[%s9331_s3 + $0x218] sm:$0xff]  }
 0x275   :  { %v6605_v38 = vpack.c.bf16 %v3704_v37, %v3704_v37  ;;  %v7619_v37 = vld [vmem:[%s9331_s3 + $0x250] sm:$0xff]  }
 0x276   :  { %v3706_v39 = vpop.f32.mrf.mxu0  ;;  %v4162_v49 = vld [vmem:[#allocation2 + $0x18] sm:$0xff] }
 0x277   :  { %4013 = vst [vmem:[#allocation2 + $0x9c] sm:$0xf] %v6605_v38  ;;  %7096 = vmatpush3.bf16.msra.mxu1 %v7606_v34 }
 0x278   :  { %v3707_v44 = vpop.f32.mrf.mxu0  ;;  %7097 = vmatprep.subr.bf16.mxu1 %v7607_v19 }
 0x279   :  { %v6606_v47 = vpack.c.bf16 %v3707_v44, %v3707_v44 }
 0x27a   :  { %v3709_v48 = vpop.f32.mrf.mxu0  ;;  %v4170_v50 = vld [vmem:[#allocation2 + $0x58] sm:$0xff] }
 0x27b   :  { %4014 = vst [vmem:[#allocation2 + $0xdc] sm:$0xf] %v6606_v47  ;;  %7098 = vmatpush3.bf16.msra.mxu1 %v7608_v40  ;;  %v6345_v51 = vcombine.low %v4162_v49, %v4170_v50  ;;  %v6346_v52 = vcombine.high %v4162_v49, %v4170_v50  ;;  %v7620_v40 = vld [vmem:[%s9331_s3 + $0x210] sm:$0xff]   ;;  %v7622_v50 = vld [vmem:[%s9331_s3 + $0x208] sm:$0xff]  }
 0x27c   :  { %v3712_v58 = vpop.f32.mrf.mxu0  ;;  %7111 = vmatprep.subr.bf16.mxu1 %v7609_v45  ;;  %v7621_v45 = vld [vmem:[%s9331_s3 + $0x248] sm:$0xff]  }
 0x27d   :  { %v6607_v60 = vpack.c.bf16 %v3712_v58, %v3712_v58  ;;  %5554 = vmatprep.mubr.bf16.mxu1 %v6346_v52  ;;  %v7623_v52 = vld [vmem:[%s9331_s3 + $0x240] sm:$0xff]  }
 0x27e   :  { %v3714_v43 = vpop.f32.mrf.mxu0  ;;  %5555 = vmatmul.mubr.bf16.vlgmr.msra.gmra.mxu1 %v6345_v51  ;;  %v9032_v46 = vpop.f32.mrf.mxu1  ;;  %v4178_v8 = vld [vmem:[#allocation2 + $0x98] sm:$0xff] }
 0x27f   :  { %4029 = vst [vmem:[#allocation2 + $0x20] sm:$0xf] %v6607_v60  ;;  %7112 = vmatpush3.bf16.msra.mxu1 %v7610_v56  ;;  %v7624_v60 = vld [vmem:[%s9331_s3 + $0x200] sm:$0xff]  }
 0x280   :  { %v3715_v2 = vpop.f32.mrf.mxu0  ;;  %7113 = vmatprep.subr.bf16.mxu1 %v7611_v59  ;;  %v9040_v1 = vpop.f32.mrf.mxu1 }
 0x281   :  { %v6608_v6 = vpack.c.bf16 %v3715_v2, %v3715_v2 }
 0x282   :  { %v3717_v53 = vpop.f32.mrf.mxu0  ;;  %v4186_v9 = vld [vmem:[#allocation2 + $0xd8] sm:$0xff]  ;;  %v9048_v13 = vpop.f32.mrf.mxu1 }
 0x283   :  { %4030 = vst [vmem:[#allocation2 + $0x60] sm:$0xf] %v6608_v6  ;;  %7114 = vmatpush3.bf16.msra.mxu1 %v7612_v62  ;;  %v6362_v11 = vcombine.high %v4178_v8, %v4186_v9  ;;  %v6361_v12 = vcombine.low %v4178_v8, %v4186_v9  ;;  %v7625_v62 = vld [vmem:[%s9331_s3 + $0x2f8] sm:$0xff]  }
 0x284   :  { %v3720_v16 = vpop.f32.mrf.mxu0  ;;  %7115 = vmatprep.subr.bf16.mxu1 %v7613_v3  ;;  %v9056_v38 = vpop.f32.mrf.mxu1 }
 0x285   :  { %v6609_v22 = vpack.c.bf16 %v3720_v16, %v3720_v16  ;;  %5562 = vmatprep.mubr.bf16.mxu1 %v6362_v11  ;;  %v7627_v16 = vld [vmem:[%s9331_s3 + $0x2f0] sm:$0xff]  }
 0x286   :  { %v3722_v18 = vpop.f32.mrf.mxu0  ;;  %5563 = vmatmul.mubr.bf16.gmra.mxu1 %v6361_v12  ;;  %v9064_v48 = vpop.f32.mrf.mxu1  ;;  %v7626_v12 = vld [vmem:[%s9331_s3 + $0x2b8] sm:$0xff]  }
 0x287   :  { %4031 = vst [vmem:[#allocation2 + $0xa0] sm:$0xf] %v6609_v22  ;;  %7116 = vmatpush3.bf16.msra.mxu1 %v7614_v15 }
 0x288   :  { %v3723_v20 = vpop.f32.mrf.mxu0  ;;  %7117 = vmatprep.subr.bf16.mxu1 %v7615_v17  ;;  %v9072_v58 = vpop.f32.mrf.mxu1 }
 0x289   :  { %v6610_v29 = vpack.c.bf16 %v3723_v20, %v3723_v20 }
 0x28a   :  { %v3725_v32 = vpop.f32.mrf.mxu0  ;;  %v9080_v3 = vpop.f32.mrf.mxu1 }
 0x28b   :  { %4032 = vst [vmem:[#allocation2 + $0xe0] sm:$0xf] %v6610_v29  ;;  %7118 = vmatpush3.bf16.msra.mxu1 %v7616_v24  ;;  %v7628_v24 = vld [vmem:[%s9331_s3 + $0x2b0] sm:$0xff]   ;;  %v7629_v29 = vld [vmem:[%s9331_s3 + $0x2e8] sm:$0xff]  }
 0x28c   :  { %v3728_v34 = vpop.f32.mrf.mxu0  ;;  %7119 = vmatprep.subr.bf16.mxu1 %v7617_v26  ;;  %v9088_v22 = vpop.f32.mrf.mxu1 }
 0x28d   :  { %v6611_v19 = vpack.c.bf16 %v3728_v34, %v3728_v34 }
 0x28e   :  { %v3730_v39 = vpop.f32.mrf.mxu0 }
 0x28f   :  { %4047 = vst [vmem:[#allocation2 + $0x24] sm:$0xf] %v6611_v19  ;;  %7120 = vmatpush3.bf16.msra.mxu1 %v7618_v33 }
 0x290   :  { %v3731_v44 = vpop.f32.mrf.mxu0  ;;  %7121 = vmatprep.subr.bf16.mxu1 %v7619_v37 }
 0x291   :  { %v6612_v47 = vpack.c.bf16 %v3731_v44, %v3731_v44 }
 0x292   :  { %v3733_v49 = vpop.f32.mrf.mxu0 }
 0x293   :  { %4048 = vst [vmem:[#allocation2 + $0x64] sm:$0xf] %v6612_v47  ;;  %7122 = vmatpush3.bf16.msra.mxu1 %v7620_v40  ;;  %v7630_v40 = vld [vmem:[%s9331_s3 + $0x2a8] sm:$0xff]   ;;  %v7631_v47 = vld [vmem:[%s9331_s3 + $0x2e0] sm:$0xff]  }
 0x294   :  { %v3736_v51 = vpop.f32.mrf.mxu0  ;;  %7123 = vmatprep.subr.bf16.mxu1 %v7621_v45 }
 0x295   :  { %v6613_v56 = vpack.c.bf16 %v3736_v51, %v3736_v51  ;;  %v7632_v51 = vld [vmem:[%s9331_s3 + $0x2a0] sm:$0xff]  }
 0x296   :  { %v3738_v59 = vpop.f32.mrf.mxu0  ;;  %v4163_v53 = vld [vmem:[#allocation2 + $0x20] sm:$0xff] }
 0x297   :  { %4049 = vst [vmem:[#allocation2 + $0xa4] sm:$0xf] %v6613_v56  ;;  %7124 = vmatpush3.bf16.msra.mxu1 %v7622_v50  ;;  %v7633_v59 = vld [vmem:[%s9331_s3 + $0x2d8] sm:$0xff]  }
 0x298   :  { %v3739_v43 = vpop.f32.mrf.mxu0  ;;  %7125 = vmatprep.subr.bf16.mxu1 %v7623_v52 }
 0x299   :  { %v6614_v2 = vpack.c.bf16 %v3739_v43, %v3739_v43 }
 0x29a   :  { %v3741_v6 = vpop.f32.mrf.mxu0  ;;  %v4171_v8 = vld [vmem:[#allocation2 + $0x60] sm:$0xff] }
 0x29b   :  { %4050 = vst [vmem:[#allocation2 + $0xe4] sm:$0xf] %v6614_v2  ;;  %7126 = vmatpush3.bf16.msra.mxu1 %v7624_v60  ;;  %v6347_v9 = vcombine.low %v4163_v53, %v4171_v8  ;;  %v6348_v11 = vcombine.high %v4163_v53, %v4171_v8  ;;  %v7635_v53 = vld [vmem:[%s9331_s3 + $0x2d0] sm:$0xff]  }
 0x29c   :  { %v3744_v15 = vpop.f32.mrf.mxu0  ;;  %7139 = vmatprep.subr.bf16.mxu1 %v7625_v62  ;;  %v7634_v62 = vld [vmem:[%s9331_s3 + $0x298] sm:$0xff]  }
 0x29d   :  { %v6615_v17 = vpack.c.bf16 %v3744_v15, %v3744_v15  ;;  %5603 = vmatprep.mubr.bf16.mxu1 %v6348_v11  ;;  %v7636_v11 = vld [vmem:[%s9331_s3 + $0x290] sm:$0xff]  }
 0x29e   :  { %v3746_v18 = vpop.f32.mrf.mxu0  ;;  %5604 = vmatmul.mubr.bf16.vlgmr.msra.gmra.mxu1 %v6347_v9  ;;  %v9093_v20 = vpop.f32.mrf.mxu1  ;;  %v4179_v34 = vld [vmem:[#allocation2 + $0xa0] sm:$0xff] }
 0x29f   :  { %4065 = vst [vmem:[#allocation2 + $0x28] sm:$0xf] %v6615_v17  ;;  %7140 = vmatpush3.bf16.msra.mxu1 %v7626_v12 }
 0x2a0   :  { %v3747_v26 = vpop.f32.mrf.mxu0  ;;  %7141 = vmatprep.subr.bf16.mxu1 %v7627_v16  ;;  %v9101_v44 = vpop.f32.mrf.mxu1  ;;  %v7637_v16 = vld [vmem:[%s9331_s3 + $0x2c8] sm:$0xff]  }
 0x2a1   :  { %v6616_v32 = vpack.c.bf16 %v3747_v26, %v3747_v26 }
 0x2a2   :  { %v3749_v33 = vpop.f32.mrf.mxu0  ;;  %v4187_v37 = vld [vmem:[#allocation2 + $0xe0] sm:$0xff]  ;;  %v9109_v52 = vpop.f32.mrf.mxu1 }
 0x2a3   :  { %4066 = vst [vmem:[#allocation2 + $0x68] sm:$0xf] %v6616_v32  ;;  %7142 = vmatpush3.bf16.msra.mxu1 %v7628_v24  ;;  %v6364_v19 = vcombine.high %v4179_v34, %v4187_v37  ;;  %v6363_v39 = vcombine.low %v4179_v34, %v4187_v37  ;;  %v7638_v24 = vld [vmem:[%s9331_s3 + $0x288] sm:$0xff]   ;;  %v7639_v32 = vld [vmem:[%s9331_s3 + $0x2c0] sm:$0xff]  }
 0x2a4   :  { %v3752_v45 = vpop.f32.mrf.mxu0  ;;  %7143 = vmatprep.subr.bf16.mxu1 %v7629_v29  ;;  %v9117_v2 = vpop.f32.mrf.mxu1  ;;  %v7640_v37 = vld [vmem:[%s9331_s3 + $0x280] sm:$0xff]  }
 0x2a5   :  { %v6617_v49 = vpack.c.bf16 %v3752_v45, %v3752_v45  ;;  %5611 = vmatprep.mubr.bf16.mxu1 %v6364_v19  ;;  %v6877_v19 = vadd.f32 %v8910_v21, %v8902_v10  ;;  %v7641_v45 = vld [vmem:[%s9331_s3 + $0x378] sm:$0xff]  }
 0x2a6   :  { %v3754_v50 = vpop.f32.mrf.mxu0  ;;  %5612 = vmatmul.mubr.bf16.gmra.mxu1 %v6363_v39  ;;  %v9125_v12 = vpop.f32.mrf.mxu1 }
 0x2a7   :  { %4067 = vst [vmem:[#allocation2 + $0xa8] sm:$0xf] %v6617_v49  ;;  %7144 = vmatpush3.bf16.msra.mxu1 %v7630_v40  ;;  %v6905_v49 = vadd.f32 %v8979_v55, %v8971_v7 }
 0x2a8   :  { %v3755_v56 = vpop.f32.mrf.mxu0  ;;  %7145 = vmatprep.subr.bf16.mxu1 %v7631_v47  ;;  %v9133_v26 = vpop.f32.mrf.mxu1 }
 0x2a9   :  { %v6618_v60 = vpack.c.bf16 %v3755_v56, %v3755_v56 }
 0x2aa   :  { %v3757_v43 = vpop.f32.mrf.mxu0  ;;  %v9143_v39 = vpop.f32.mrf.mxu1 }
 0x2ab   :  { %4068 = vst [vmem:[#allocation2 + $0xe8] sm:$0xf] %v6618_v60  ;;  %7146 = vmatpush3.bf16.msra.mxu1 %v7632_v51  ;;  %v7642_v60 = vld [vmem:[%s9331_s3 + $0x338] sm:$0xff]   ;;  %v2674_v43 = vadd.f32 %v6877_v19, %v8826_v5  ;;  %v7647_v19 = vld [vmem:[%s9331_s3 + $0x360] sm:$0xff]  }
 0x2ac   :  { %v3760_v6 = vpop.f32.mrf.mxu0  ;;  %7147 = vmatprep.subr.bf16.mxu1 %v7633_v59  ;;  %v6880_v59 = vadd.f32 %v8934_v30, %v8918_v23  ;;  %v9158_v7 = vpop.f32.mrf.mxu1  ;;  %v7643_v23 = vld [vmem:[%s9331_s3 + $0x370] sm:$0xff]   ;;  %v6908_v30 = vadd.f32 %v8995_v27, %v8987_v0 }
 0x2ad   :  { %v6619_v8 = vpack.c.bf16 %v3760_v6, %v3760_v6  ;;  %v2723_v5 = vadd.f32 %v6905_v49, %v2674_v43  ;;  %v7644_v0 = vld [vmem:[%s9331_s3 + $0x330] sm:$0xff]  }
 0x2ae   :  { %v3762_v9 = vpop.f32.mrf.mxu0 }
 0x2af   :  { %4083 = vst [vmem:[#allocation2 + $0x2c] sm:$0xf] %v6619_v8  ;;  %7148 = vmatpush3.bf16.msra.mxu1 %v7634_v62  ;;  %v6933_v62 = vadd.f32 %v9040_v1, %v9032_v46  ;;  %v6961_v46 = vadd.f32 %v9101_v44, %v9093_v20  ;;  %v2677_v9 = vadd.f32 %v6880_v59, %v8836_v14  ;;  %v7645_v14 = vld [vmem:[%s9331_s3 + $0x368] sm:$0xff]  }
 0x2b0   :  { %v3763_v15 = vpop.f32.mrf.mxu0  ;;  %7149 = vmatprep.subr.bf16.mxu1 %v7635_v53  ;;  %v6883_v53 = vadd.f32 %v8950_v41, %v8942_v36  ;;  %v6911_v36 = vadd.f32 %v9011_v42, %v9003_v35  ;;  %v6939_v35 = vadd.f32 %v9072_v58, %v9064_v48 }
 0x2b1   :  { %v6620_v17 = vpack.c.bf16 %v3763_v15, %v3763_v15  ;;  %v2772_v41 = vadd.f32 %v6933_v62, %v2723_v5  ;;  %v2726_v44 = vadd.f32 %v6908_v30, %v2677_v9  ;;  %v7650_v5 = vld [vmem:[%s9331_s3 + $0x318] sm:$0xff]   ;;  %v7651_v9 = vld [vmem:[%s9331_s3 + $0x350] sm:$0xff]  }
 0x2b2   :  { %v3765_v18 = vpop.f32.mrf.mxu0 }
 0x2b3   :  { %4084 = vst [vmem:[#allocation2 + $0x6c] sm:$0xf] %v6620_v17  ;;  %7150 = vmatpush3.bf16.msra.mxu1 %v7636_v11  ;;  %v6936_v11 = vadd.f32 %v9056_v38, %v9048_v13  ;;  %v6964_v13 = vadd.f32 %v9117_v2, %v9109_v52  ;;  %v6886_v17 = vadd.f32 %v8966_v61, %v8958_v54 }
 0x2b4   :  { %v3768_v29 = vpop.f32.mrf.mxu0  ;;  %7151 = vmatprep.subr.bf16.mxu1 %v7637_v16  ;;  %v2682_v16 = vadd.f32 %v6883_v53, %v8851_v25  ;;  %v2821_v42 = vadd.f32 %v6961_v46, %v2772_v41  ;;  %v7646_v25 = vld [vmem:[%s9331_s3 + $0x328] sm:$0xff]   ;;  %v6914_v54 = vadd.f32 %v9027_v63, %v9019_v57  ;;  %v6967_v61 = vadd.f32 %v9133_v26, %v9125_v12 }
 0x2b5   :  { %v6621_v33 = vpack.c.bf16 %v3768_v29, %v3768_v29  ;;  %v2685_v49 = vadd.f32 %v6886_v17, %v8861_v31  ;;  %v6942_v57 = vadd.f32 %v9088_v22, %v9080_v3  ;;  %v6970_v31 = vadd.f32 %v9158_v7, %v9143_v39  ;;  %v7649_v22 = vld [vmem:[%s9331_s3 + $0x358] sm:$0xff]  }
 0x2b6   :  { %v3770_v34 = vpop.f32.mrf.mxu0  ;;  %v4164_v51 = vld [vmem:[#allocation2 + $0x28] sm:$0xff]  ;;  %v2731_v2 = vadd.f32 %v6911_v36, %v2682_v16 }
 0x2b7   :  { %4085 = vst [vmem:[#allocation2 + $0xac] sm:$0xf] %v6621_v33  ;;  %7152 = vmatpush3.bf16.msra.mxu1 %v7638_v24  ;;  %v2775_v33 = vadd.f32 %v6936_v11, %v2726_v44  ;;  %v2734_v59 = vadd.f32 %v6914_v54, %v2685_v49 }
 0x2b8   :  { %v3771_v40 = vpop.f32.mrf.mxu0  ;;  %7153 = vmatprep.subr.bf16.mxu1 %v7639_v32 }
 0x2b9   :  { %v6622_v47 = vpack.c.bf16 %v3771_v40, %v3771_v40  ;;  %v2824_v40 = vadd.f32 %v6964_v13, %v2775_v33  ;;  %v2783_v30 = vadd.f32 %v6942_v57, %v2734_v59  ;;  %v7652_v13 = vld [vmem:[%s9331_s3 + $0x310] sm:$0xff]  }
 0x2ba   :  { %v3773_v50 = vpop.f32.mrf.mxu0  ;;  %v4172_v56 = vld [vmem:[#allocation2 + $0x68] sm:$0xff] }
 0x2bb   :  { %4086 = vst [vmem:[#allocation2 + $0xec] sm:$0xf] %v6622_v47  ;;  %7154 = vmatpush3.bf16.msra.mxu1 %v7640_v37  ;;  %v6349_v10 = vcombine.low %v4164_v51, %v4172_v56  ;;  %v6350_v21 = vcombine.high %v4164_v51, %v4172_v56  ;;  %v2780_v50 = vadd.f32 %v6939_v35, %v2731_v2  ;;  %v7648_v51 = vld [vmem:[%s9331_s3 + $0x320] sm:$0xff]   ;;  %v32_v56 = vadd.s32 24, %v7717_v4 }
 0x2bc   :  { %v3776_v55 = vpop.f32.mrf.mxu0  ;;  %7167 = vmatprep.subr.bf16.mxu1 %v7641_v45  ;;  %v2832_v46 = vadd.f32 %v6970_v31, %v2783_v30 }
 0x2bd   :  { %v6623_v6 = vpack.c.bf16 %v3776_v55, %v3776_v55  ;;  %5652 = vmatprep.mubr.bf16.mxu1 %v6350_v21  ;;  %vm36_vm0 = vcmp.lt.s32.totalorder %v32_v56, 25  ;;  %v7659_v56 = vld [vmem:[%s9331_s3 + $0x3f0] sm:$0xff]  }
 0x2be   :  { %v6987_v1 = vpop.f32.mrf.mxu1  ;;  %v3778_v8 = vpop.f32.mrf.mxu0  ;;  %5653 = vmatmul.mubr.bf16.vlgmr.msra.gmra.mxu1 %v6349_v10  ;;  %v4180_v29 = vld [vmem:[#allocation2 + $0xa8] sm:$0xff]  ;;  %v2829_v10 = vadd.f32 %v6967_v61, %v2780_v50  ;;  %v7656_v61 = vld [vmem:[%s9331_s3 + $0x300] sm:$0xff]  }
 0x2bf   :  { %4101 = vst [vmem:[#allocation2 + $0x30] sm:$0xf] %v6623_v6  ;;  %7168 = vmatpush3.bf16.msra.mxu1 %v7642_v60 }
 0x2c0   :  { %v6988_v27 = vpop.f32.mrf.mxu1  ;;  %v3779_v20 = vpop.f32.mrf.mxu0  ;;  %7169 = vmatprep.subr.bf16.mxu1 %v7643_v23 }
 0x2c1   :  { %v6989_v38 = vadd.f32 %v6988_v27, %v6987_v1  ;;  %v6624_v15 = vpack.c.bf16 %v3779_v20, %v3779_v20  ;;  %v9219_v27 = vsel %vm36_vm0, 1.0, %v7674_v28 }
 0x2c2   :  { %v6990_v18 = vpop.f32.mrf.mxu1  ;;  %v3781_v24 = vpop.f32.mrf.mxu0  ;;  %v4188_v32 = vld [vmem:[#allocation2 + $0xe8] sm:$0xff] }
 0x2c3   :  { %4102 = vst [vmem:[#allocation2 + $0x70] sm:$0xf] %v6624_v15  ;;  %7170 = vmatpush3.bf16.msra.mxu1 %v7644_v0  ;;  %v6366_v34 = vcombine.high %v4180_v29, %v4188_v32  ;;  %v6365_v52 = vcombine.low %v4180_v29, %v4188_v32  ;;  %v2870_v48 = vadd.f32 %v6989_v38, %v2821_v42  ;;  %v7653_v15 = vld [vmem:[%s9331_s3 + $0x348] sm:$0xff]   ;;  %v7655_v32 = vld [vmem:[%s9331_s3 + $0x340] sm:$0xff]  }
 0x2c4   :  { %v6991_v58 = vpop.f32.mrf.mxu1  ;;  %v3784_v37 = vpop.f32.mrf.mxu0  ;;  %7171 = vmatprep.subr.bf16.mxu1 %v7645_v14  ;;  %v7654_v24 = vld [vmem:[%s9331_s3 + $0x308] sm:$0xff]  }
 0x2c5   :  { %v6992_v45 = vadd.f32 %v6991_v58, %v6990_v18  ;;  %v6625_v47 = vpack.c.bf16 %v3784_v37, %v3784_v37  ;;  %5660 = vmatprep.mubr.bf16.mxu1 %v6366_v34  ;;  %v2921_v21 = vmul.f32 %v2870_v48, %v2870_v48  ;;  %v7657_v58 = vld [vmem:[%s9331_s3 + $0x3f8] sm:$0xff]  }
 0x2c6   :  { %v6993_v63 = vpop.f32.mrf.mxu1  ;;  %v3786_v12 = vpop.f32.mrf.mxu0  ;;  %5661 = vmatmul.mubr.bf16.gmra.mxu1 %v6365_v52 }
 0x2c7   :  { %v2873_v26 = vadd.f32 %v6992_v45, %v2824_v40  ;;  %4103 = vst [vmem:[#allocation2 + $0xb0] sm:$0xf] %v6625_v47  ;;  %7172 = vmatpush3.bf16.msra.mxu1 %v7646_v25 }
 0x2c8   :  { %v6994_v60 = vpop.f32.mrf.mxu1  ;;  %v3787_v3 = vpop.f32.mrf.mxu0  ;;  %7173 = vmatprep.subr.bf16.mxu1 %v7647_v19 }
 0x2c9   :  { %v6690_v43 = vpack.c.bf16 %v2873_v26, %v2870_v48  ;;  %v2909_v62 = vadd.f32 %v2873_v26, %v2870_v48  ;;  %v2922_v55 = vmul.f32 %v2873_v26, %v2873_v26  ;;  %v6995_v23 = vadd.f32 %v6994_v60, %v6993_v63  ;;  %v7658_v26 = vld [vmem:[%s9331_s3 + $0x3b8] sm:$0xff]  }
 0x2ca   :  { %v6626_v6 = vpack.c.bf16 %v3787_v3, %v3787_v3  ;;  %v6996_v4 = vpop.f32.mrf.mxu1  ;;  %v3789_v53 = vpop.f32.mrf.mxu0 }
 0x2cb   :  { %6691 = vst [vmem:[%s9334_s4] sm:$0xff] %v6690_v43   ;;  %v2925_v39 = vadd.f32 %v2922_v55, %v2921_v21  ;;  %v2878_v7 = vadd.f32 %v6995_v23, %v2829_v10  ;;  %7174 = vmatpush3.bf16.msra.mxu1 %v7648_v51  ;;  %v2908_v21 = vld [vmem:[%s9332_s5] sm:$0x1] }
 0x2cc   :  { %4104 = vst [vmem:[#allocation2 + $0xf0] sm:$0xf] %v6626_v6  ;;  %v6997_v1 = vpop.f32.mrf.mxu1  ;;  %v3792_v8 = vpop.f32.mrf.mxu0  ;;  %7175 = vmatprep.subr.bf16.mxu1 %v7649_v22  ;;  %v2920_v55 = vld [vmem:[%s9333_s6] sm:$0x1]  ;;  %v7661_v6 = vld [vmem:[%s9331_s3 + $0x3e8] sm:$0xff]  }
 0x2cd   :  { %v2910_v11 = vadd.f32 %v2909_v62, %v2878_v7  ;;  %v2923_v0 = vmul.f32 %v2878_v7, %v2878_v7  ;;  %v6998_v36 = vadd.f32 %v6997_v1, %v6996_v4  ;;  %v6627_v41 = vpack.c.bf16 %v3792_v8, %v3792_v8  ;;  %v7660_v62 = vld [vmem:[%s9331_s3 + $0x3b0] sm:$0xff]  }
 0x2ce   :  { %v3794_v20 = vpop.f32.mrf.mxu0 }
 0x2cf   :  { %v2926_v14 = vadd.f32 %v2925_v39, %v2923_v0  ;;  %v2881_v44 = vadd.f32 %v6998_v36, %v2832_v46  ;;  %4119 = vst [vmem:[#allocation2 + $0x34] sm:$0xf] %v6627_v41  ;;  %7176 = vmatpush3.bf16.msra.mxu1 %v7650_v5  ;;  %v7662_v36 = vld [vmem:[%s9331_s3 + $0x3a8] sm:$0xff]  }
 0x2d0   :  { %v3795_v38 = vpop.f32.mrf.mxu0  ;;  %7177 = vmatprep.subr.bf16.mxu1 %v7651_v9 }
 0x2d1   :  { %v2887_v16 = vmul.f32 %v9219_v27, %v2881_v44  ;;  %v6628_v17 = vpack.c.bf16 %v3795_v38, %v3795_v38 }
 0x2d2   :  { %v3797_v28 = vpop.f32.mrf.mxu0 }
 0x2d3   :  { %v6695_v35 = vpack.c.bf16 %v2887_v16, %v2878_v7  ;;  %v2911_v42 = vadd.f32 %v2910_v11, %v2887_v16  ;;  %v2924_v18 = vmul.f32 %v2887_v16, %v2887_v16  ;;  %4120 = vst [vmem:[#allocation2 + $0x74] sm:$0xf] %v6628_v17  ;;  %7178 = vmatpush3.bf16.msra.mxu1 %v7652_v13  ;;  %v7664_v16 = vld [vmem:[%s9331_s3 + $0x3a0] sm:$0xff]  }
 0x2d4   :  { %v3800_v29 = vpop.f32.mrf.mxu0  ;;  %7179 = vmatprep.subr.bf16.mxu1 %v7653_v15 }
 0x2d5   :  { %6761 = vst [vmem:[%s9334_s4 + $0x8] sm:$0xff] %v6695_v35   ;;  %v2912_v33 = vrot.slane %v2911_v42, 4  ;;  %v2927_v34 = vadd.f32 %v2926_v14, %v2924_v18  ;;  %v6629_v52 = vpack.c.bf16 %v3800_v29, %v3800_v29  ;;  %v7663_v14 = vld [vmem:[%s9331_s3 + $0x3e0] sm:$0xff]   ;;  %v7665_v35 = vld [vmem:[%s9331_s3 + $0x3d8] sm:$0xff]  }
 0x2d6   :  { %v3802_v25 = vpop.f32.mrf.mxu0  ;;  %v4165_v47 = vld [vmem:[#allocation2 + $0x30] sm:$0xff] }
 0x2d7   :  { %v2913_v2 = vadd.f32 %v2912_v33, %v2911_v42  ;;  %v2928_v54 = vrot.slane %v2927_v34, 4  ;;  %4121 = vst [vmem:[#allocation2 + $0xb4] sm:$0xf] %v6629_v52  ;;  %7180 = vmatpush3.bf16.msra.mxu1 %v7654_v24  ;;  %v7667_v52 = vld [vmem:[%s9331_s3 + $0x3d0] sm:$0xff]  }
 0x2d8   :  { %v3803_v48 = vpop.f32.mrf.mxu0  ;;  %7181 = vmatprep.subr.bf16.mxu1 %v7655_v32  ;;  %v7666_v32 = vld [vmem:[%s9331_s3 + $0x398] sm:$0xff]  }
 0x2d9   :  { %v2914_v37 = vrot.slane %v2913_v2, 2  ;;  %v2929_v19 = vadd.f32 %v2928_v54, %v2927_v34  ;;  %v6630_v40 = vpack.c.bf16 %v3803_v48, %v3803_v48 }
 0x2da   :  { %v3805_v45 = vpop.f32.mrf.mxu0  ;;  %v4173_v49 = vld [vmem:[#allocation2 + $0x70] sm:$0xff] }
 0x2db   :  { %v2915_v50 = vadd.f32 %v2914_v37, %v2913_v2  ;;  %v2930_v57 = vrot.slane %v2929_v19, 2  ;;  %4122 = vst [vmem:[#allocation2 + $0xf4] sm:$0xf] %v6630_v40  ;;  %7182 = vmatpush3.bf16.msra.mxu1 %v7656_v61  ;;  %v6351_v63 = vcombine.low %v4165_v47, %v4173_v49  ;;  %v6352_v12 = vcombine.high %v4165_v47, %v4173_v49  ;;  %v7668_v61 = vld [vmem:[%s9331_s3 + $0x390] sm:$0xff]   ;;  %v7670_v40 = vld [vmem:[%s9331_s3 + $0x388] sm:$0xff]   ;;  %v7671_v47 = vld [vmem:[%s9331_s3 + $0x3c0] sm:$0xff]  }
 0x2dc   :  { %v3808_v51 = vpop.f32.mrf.mxu0  ;;  %7195 = vmatprep.subr.bf16.mxu1 %v7657_v58  ;;  %v7669_v58 = vld [vmem:[%s9331_s3 + $0x3c8] sm:$0xff]  }
 0x2dd   :  { %v2916_v59 = vrot.slane %v2915_v50, 1  ;;  %v2931_v10 = vadd.f32 %v2930_v57, %v2929_v19  ;;  %v6631_v31 = vpack.c.bf16 %v3808_v51, %v3808_v51  ;;  %5701 = vmatprep.mubr.bf16.mxu1 %v6352_v12  ;;  %v7672_v57 = vld [vmem:[%s9331_s3 + $0x380] sm:$0xff]  }
 0x2de   :  { %v3810_v60 = vpop.f32.mrf.mxu0  ;;  %v7015_v3 = vpop.f32.mrf.mxu1  ;;  %5702 = vmatmul.mubr.bf16.vlgmr.msra.gmra.mxu1 %v6351_v63  ;;  %v4181_v1 = vld [vmem:[#allocation2 + $0xb0] sm:$0xff] }
 0x2df   :  { %v2917_v22 = vadd.f32 %v2916_v59, %v2915_v50  ;;  %v2932_v43 = vrot.slane %v2931_v10, 1  ;;  %4137 = vst [vmem:[#allocation2 + $0x38] sm:$0xf] %v6631_v31  ;;  %7196 = vmatpush3.bf16.msra.mxu1 %v7658_v26 }
 0x2e0   :  { %v3811_v23 = vpop.f32.mrf.mxu0  ;;  %v7016_v30 = vpop.f32.mrf.mxu1  ;;  %7197 = vmatprep.subr.bf16.mxu1 %v7659_v56 }
 0x2e1   :  { %v2918_v4 = vadd.f32 %v2917_v22, %v2908_v21  ;;  %v2933_v53 = vadd.f32 %v2932_v43, %v2931_v10  ;;  %v6632_v39 = vpack.c.bf16 %v3811_v23, %v3811_v23  ;;  %v9261_v7 = vadd.f32 %v7016_v30, %v7015_v3 }
 0x2e2   :  { %v3813_v5 = vpop.f32.mrf.mxu0  ;;  %v7018_v46 = vpop.f32.mrf.mxu1  ;;  %v4189_v8 = vld [vmem:[#allocation2 + $0xf0] sm:$0xff] }
 0x2e3   :  { %2919 = vst [vmem:[%s9332_s5] sm:$0x1] %v2918_v4  ;;  %v2934_v9 = vadd.f32 %v2933_v53, %v2920_v55  ;;  %4138 = vst [vmem:[#allocation2 + $0x78] sm:$0xf] %v6632_v39  ;;  %7198 = vmatpush3.bf16.msra.mxu1 %v7660_v62  ;;  %v6367_v11 = vcombine.low %v4181_v1, %v4189_v8  ;;  %v6368_v0 = vcombine.high %v4181_v1, %v4189_v8 }
 0x2e4   :  { %v3816_v41 = vpop.f32.mrf.mxu0  ;;  %v7019_v20 = vpop.f32.mrf.mxu1  ;;  %7199 = vmatprep.subr.bf16.mxu1 %v7661_v6 }
 0x2e5   :  { %2935 = vst [vmem:[%s9333_s6] sm:$0x1] %v2934_v9  ;;  %v6633_v44 = vpack.c.bf16 %v3816_v41, %v3816_v41  ;;  %v9275_v13 = vadd.f32 %v7019_v20, %v7018_v46  ;;  %5709 = vmatprep.mubr.bf16.mxu1 %v6368_v0 }
 0x2e6   :  { %v3818_v38 = vpop.f32.mrf.mxu0  ;;  %v7021_v15 = vpop.f32.mrf.mxu1  ;;  %5710 = vmatmul.mubr.bf16.gmra.mxu1 %v6367_v11 }
 0x2e7   :  { %4139 = vst [vmem:[#allocation2 + $0xb8] sm:$0xf] %v6633_v44  ;;  %7200 = vmatpush3.bf16.msra.mxu1 %v7662_v36 }
 0x2e8   :  { %v3819_v17 = vpop.f32.mrf.mxu0  ;;  %v7022_v28 = vpop.f32.mrf.mxu1  ;;  %7201 = vmatprep.subr.bf16.mxu1 %v7663_v14 }
 0x2e9   :  { %v6634_v42 = vpack.c.bf16 %v3819_v17, %v3819_v17  ;;  %v7023_v18 = vadd.f32 %v7022_v28, %v7021_v15 }
 0x2ea   :  { %v3821_v24 = vpop.f32.mrf.mxu0  ;;  %v7024_v29 = vpop.f32.mrf.mxu1 }
 0x2eb   :  { %4140 = vst [vmem:[#allocation2 + $0xf8] sm:$0xf] %v6634_v42  ;;  %7202 = vmatpush3.bf16.msra.mxu1 %v7664_v16 }
 0x2ec   :  { %v3824_v33 = vpop.f32.mrf.mxu0  ;;  %v7025_v34 = vpop.f32.mrf.mxu1  ;;  %7203 = vmatprep.subr.bf16.mxu1 %v7665_v35 }
 0x2ed   :  { %v6635_v25 = vpack.c.bf16 %v3824_v33, %v3824_v33  ;;  %v7026_v2 = vadd.f32 %v7025_v34, %v7024_v29 }
 0x2ee   :  { %v3826_v54 = vpop.f32.mrf.mxu0 }
 0x2ef   :  { %4155 = vst [vmem:[#allocation2 + $0x3c] sm:$0xf] %v6635_v25  ;;  %7204 = vmatpush3.bf16.msra.mxu1 %v7666_v32 }
 0x2f0   :  { %v3827_v48 = vpop.f32.mrf.mxu0  ;;  %7205 = vmatprep.subr.bf16.mxu1 %v7667_v52 }
 0x2f1   :  { %v6636_v37 = vpack.c.bf16 %v3827_v48, %v3827_v48 }
 0x2f2   :  { %v3829_v19 = vpop.f32.mrf.mxu0 }
 0x2f3   :  { %4156 = vst [vmem:[#allocation2 + $0x7c] sm:$0xf] %v6636_v37  ;;  %7206 = vmatpush3.bf16.msra.mxu1 %v7668_v61 }
 0x2f4   :  { %v3832_v45 = vpop.f32.mrf.mxu0  ;;  %7207 = vmatprep.subr.bf16.mxu1 %v7669_v58 }
 0x2f5   :  { %v6637_v49 = vpack.c.bf16 %v3832_v45, %v3832_v45 }
 0x2f6   :  { %v3834_v50 = vpop.f32.mrf.mxu0  ;;  %v4166_v51 = vld [vmem:[#allocation2 + $0x38] sm:$0xff] }
 0x2f7   :  { %4157 = vst [vmem:[#allocation2 + $0xbc] sm:$0xf] %v6637_v49  ;;  %7208 = vmatpush3.bf16.msra.mxu1 %v7670_v40 }
 0x2f8   :  { %v3835_v63 = vpop.f32.mrf.mxu0  ;;  %7209 = vmatprep.subr.bf16.mxu1 %v7671_v47 }
 0x2f9   :  { %v6638_v12 = vpack.c.bf16 %v3835_v63, %v3835_v63 }
 0x2fa   :  { %v3837_v26 = vpop.f32.mrf.mxu0  ;;  %v4174_v56 = vld [vmem:[#allocation2 + $0x78] sm:$0xff] }
 0x2fb   :  { %4158 = vst [vmem:[#allocation2 + $0xfc] sm:$0xf] %v6638_v12  ;;  %7210 = vmatpush3.bf16.msra.mxu1 %v7672_v57  ;;  %v6353_v59 = vcombine.low %v4166_v51, %v4174_v56  ;;  %v6354_v10 = vcombine.high %v4166_v51, %v4174_v56 }
 0x2fd   :  { %5750 = vmatprep.mubr.bf16.mxu1 %v6354_v10 }
 0x2fe   :  { %v7043_v31 = vpop.f32.mrf.mxu1  ;;  %5751 = vmatmul.mubr.bf16.vlgmr.msra.gmra.mxu1 %v6353_v59  ;;  %v4182_v22 = vld [vmem:[#allocation2 + $0xb8] sm:$0xff] }
 0x300   :  { %v7044_v21 = vpop.f32.mrf.mxu1 }
 0x301   :  { %v7045_v60 = vadd.f32 %v7044_v21, %v7043_v31 }
 0x302   :  { %v7046_v3 = vpop.f32.mrf.mxu1  ;;  %v4190_v43 = vld [vmem:[#allocation2 + $0xf8] sm:$0xff] }
 0x303   :  { %v5459_v62 = vadd.f32 %v7045_v60, %v9261_v7  ;;  %v6369_v55 = vcombine.low %v4182_v22, %v4190_v43  ;;  %v6370_v23 = vcombine.high %v4182_v22, %v4190_v43 }
 0x304   :  { %v7047_v30 = vpop.f32.mrf.mxu1 }
 0x305   :  { %v7048_v6 = vadd.f32 %v7047_v30, %v7046_v3  ;;  %5758 = vmatprep.mubr.bf16.mxu1 %v6370_v23 }
 0x306   :  { %v7049_v4 = vpop.f32.mrf.mxu1  ;;  %5759 = vmatmul.mubr.bf16.gmra.mxu1 %v6369_v55 }
 0x307   :  { %v5462_v53 = vadd.f32 %v7048_v6, %v9275_v13 }
 0x308   :  { %v7050_v39 = vpop.f32.mrf.mxu1 }
 0x309   :  { %v7051_v5 = vadd.f32 %v7050_v39, %v7049_v4 }
 0x30a   :  { %v7052_v46 = vpop.f32.mrf.mxu1 }
 0x30b   :  { %v5467_v1 = vadd.f32 %v7051_v5, %v7023_v18 }
 0x30c   :  { %v7053_v8 = vpop.f32.mrf.mxu1 }
 0x30d   :  { %v7054_v9 = vadd.f32 %v7053_v8, %v7052_v46 }
 0x30f   :  { %v5470_v11 = vadd.f32 %v7054_v9, %v7026_v2 }
 0x31e   :  { %v7071_v0 = vpop.f32.mrf.mxu1 }
 0x320   :  { %v7072_v36 = vpop.f32.mrf.mxu1 }
 0x321   :  { %v7073_v41 = vadd.f32 %v7072_v36, %v7071_v0 }
 0x322   :  { %v7074_v7 = vpop.f32.mrf.mxu1 }
 0x323   :  { %v5508_v20 = vadd.f32 %v7073_v41, %v5459_v62 }
 0x324   :  { %v7075_v14 = vpop.f32.mrf.mxu1 }
 0x325   :  { %v7076_v44 = vadd.f32 %v7075_v14, %v7074_v7 }
 0x326   :  { %v7077_v38 = vpop.f32.mrf.mxu1 }
 0x327   :  { %v5511_v15 = vadd.f32 %v7076_v44, %v5462_v53 }
 0x328   :  { %v7078_v16 = vpop.f32.mrf.mxu1 }
 0x329   :  { %v7079_v17 = vadd.f32 %v7078_v16, %v7077_v38 }
 0x32a   :  { %v7080_v28 = vpop.f32.mrf.mxu1 }
 0x32b   :  { %v5516_v13 = vadd.f32 %v7079_v17, %v5467_v1 }
 0x32c   :  { %v7081_v35 = vpop.f32.mrf.mxu1 }
 0x32d   :  { %v7082_v42 = vadd.f32 %v7081_v35, %v7080_v28 }
 0x32f   :  { %v9306_v24 = vadd.f32 %v7082_v42, %v5470_v11 }
 0x33e   :  { %v7099_v18 = vpop.f32.mrf.mxu1 }
 0x340   :  { %v7100_v29 = vpop.f32.mrf.mxu1 }
 0x341   :  { %v7101_v3 = vadd.f32 %v7100_v29, %v7099_v18 }
 0x342   :  { %v7102_v32 = vpop.f32.mrf.mxu1 }
 0x343   :  { %v5557_v55 = vadd.f32 %v7101_v3, %v5508_v20 }
 0x344   :  { %v7103_v33 = vpop.f32.mrf.mxu1 }
 0x345   :  { %v7104_v62 = vadd.f32 %v7103_v33, %v7102_v32 }
 0x346   :  { %v7105_v34 = vpop.f32.mrf.mxu1 }
 0x347   :  { %v5560_v46 = vadd.f32 %v7104_v62, %v5511_v15 }
 0x348   :  { %v7106_v52 = vpop.f32.mrf.mxu1 }
 0x349   :  { %v7107_v4 = vadd.f32 %v7106_v52, %v7105_v34 }
 0x34a   :  { %v7108_v25 = vpop.f32.mrf.mxu1 }
 0x34b   :  { %v5565_v7 = vadd.f32 %v7107_v4, %v5516_v13 }
 0x34c   :  { %v7109_v2 = vpop.f32.mrf.mxu1 }
 0x34d   :  { %v7110_v14 = vadd.f32 %v7109_v2, %v7108_v25 }
 0x34f   :  { %v5568_v32 = vadd.f32 %v7110_v14, %v9306_v24 }
 0x35e   :  { %v7127_v54 = vpop.f32.mrf.mxu1 }
 0x360   :  { %v7128_v61 = vpop.f32.mrf.mxu1 }
 0x361   :  { %v7129_v43 = vadd.f32 %v7128_v61, %v7127_v54 }
 0x362   :  { %v7130_v48 = vpop.f32.mrf.mxu1 }
 0x363   :  { %v5606_v53 = vadd.f32 %v7129_v43, %v5557_v55 }
 0x364   :  { %v7131_v58 = vpop.f32.mrf.mxu1 }
 0x365   :  { %v7132_v6 = vadd.f32 %v7131_v58, %v7130_v48 }
 0x366   :  { %v7133_v37 = vpop.f32.mrf.mxu1 }
 0x367   :  { %v5609_v0 = vadd.f32 %v7132_v6, %v5560_v46 }
 0x368   :  { %v7134_v19 = vpop.f32.mrf.mxu1 }
 0x369   :  { %v7135_v8 = vadd.f32 %v7134_v19, %v7133_v37 }
 0x36a   :  { %v7136_v40 = vpop.f32.mrf.mxu1 }
 0x36b   :  { %v5614_v17 = vadd.f32 %v7135_v8, %v5565_v7 }
 0x36c   :  { %v7137_v45 = vpop.f32.mrf.mxu1 }
 0x36d   :  { %v7138_v28 = vadd.f32 %v7137_v45, %v7136_v40 }
 0x36f   :  { %v5617_v61 = vadd.f32 %v7138_v28, %v5568_v32 }
 0x37e   :  { %v7155_v47 = vpop.f32.mrf.mxu1 }
 0x380   :  { %v7156_v49 = vpop.f32.mrf.mxu1 }
 0x381   :  { %v7157_v23 = vadd.f32 %v7156_v49, %v7155_v47 }
 0x382   :  { %v7158_v50 = vpop.f32.mrf.mxu1 }
 0x383   :  { %v5655_v9 = vadd.f32 %v7157_v23, %v5606_v53 }
 0x384   :  { %v7159_v57 = vpop.f32.mrf.mxu1 }
 0x385   :  { %v7160_v1 = vadd.f32 %v7159_v57, %v7158_v50 }
 0x386   :  { %v7161_v63 = vpop.f32.mrf.mxu1 }
 0x387   :  { %v5658_v16 = vadd.f32 %v7160_v1, %v5609_v0  ;;  %v5804_v1 = vld [vmem:[%s9333_s6] sm:$0x1] }
 0x388   :  { %v7162_v12 = vpop.f32.mrf.mxu1 }
 0x389   :  { %v7163_v44 = vadd.f32 %v7162_v12, %v7161_v63 }
 0x38a   :  { %v7164_v26 = vpop.f32.mrf.mxu1 }
 0x38b   :  { %v5663_v33 = vadd.f32 %v7163_v44, %v5614_v17 }
 0x38c   :  { %v7165_v51 = vpop.f32.mrf.mxu1 }
 0x38d   :  { %v7166_v52 = vadd.f32 %v7165_v51, %v7164_v26 }
 0x38f   :  { %v5666_v47 = vadd.f32 %v7166_v52, %v5617_v61 }
 0x39e   :  { %v7183_v56 = vpop.f32.mrf.mxu1 }
 0x3a0   :  { %v7184_v59 = vpop.f32.mrf.mxu1 }
 0x3a1   :  { %v7185_v39 = vadd.f32 %v7184_v59, %v7183_v56 }
 0x3a2   :  { %v7186_v10 = vpop.f32.mrf.mxu1 }
 0x3a3   :  { %v5704_v38 = vadd.f32 %v7185_v39, %v5655_v9 }
 0x3a4   :  { %v7187_v31 = vpop.f32.mrf.mxu1 }
 0x3a5   :  { %v7188_v36 = vadd.f32 %v7187_v31, %v7186_v10 }
 0x3a6   :  { %v7189_v21 = vpop.f32.mrf.mxu1 }
 0x3a7   :  { %v5707_v29 = vadd.f32 %v7188_v36, %v5658_v16 }
 0x3a8   :  { %v7190_v60 = vpop.f32.mrf.mxu1 }
 0x3a9   :  { %v7191_v35 = vadd.f32 %v7190_v60, %v7189_v21 }
 0x3aa   :  { %v7192_v22 = vpop.f32.mrf.mxu1 }
 0x3ab   :  { %v5712_v13 = vadd.f32 %v7191_v35, %v5663_v33 }
 0x3ac   :  { %v7193_v30 = vpop.f32.mrf.mxu1 }
 0x3ad   :  { %v7194_v25 = vadd.f32 %v7193_v30, %v7192_v22 }
 0x3af   :  { %v5715_v57 = vadd.f32 %v7194_v25, %v5666_v47 }
 0x3be   :  { %v7211_v5 = vpop.f32.mrf.mxu1 }
 0x3c0   :  { %v7212_v11 = vpop.f32.mrf.mxu1 }
 0x3c1   :  { %v7213_v41 = vadd.f32 %v7212_v11, %v7211_v5 }
 0x3c2   :  { %v7214_v20 = vpop.f32.mrf.mxu1 }
 0x3c3   :  { %v5753_v42 = vadd.f32 %v7213_v41, %v5704_v38 }
 0x3c4   :  { %v7215_v18 = vpop.f32.mrf.mxu1 }
 0x3c5   :  { %v7216_v15 = vadd.f32 %v7215_v18, %v7214_v20  ;;  %v5805_v2 = vmul.f32 %v5753_v42, %v5753_v42 }
 0x3c6   :  { %v7217_v34 = vpop.f32.mrf.mxu1 }
 0x3c7   :  { %v5756_v54 = vadd.f32 %v7216_v15, %v5707_v29 }
 0x3c8   :  { %v7218_v48 = vpop.f32.mrf.mxu1 }
 0x3c9   :  { %v6744_v58 = vpack.c.bf16 %v5756_v54, %v5753_v42  ;;  %v5793_v37 = vadd.f32 %v5756_v54, %v5753_v42  ;;  %v5806_v19 = vmul.f32 %v5756_v54, %v5756_v54  ;;  %v7219_v40 = vadd.f32 %v7218_v48, %v7217_v34 }
 0x3ca   :  { %v7220_v45 = vpop.f32.mrf.mxu1 }
 0x3cb   :  { %6773 = vst [vmem:[%s9334_s4 + $0x10] sm:$0xff] %v6744_v58   ;;  %v5809_v24 = vadd.f32 %v5806_v19, %v5805_v2  ;;  %v5761_v49 = vadd.f32 %v7219_v40, %v5712_v13 }
 0x3cc   :  { %v7221_v50 = vpop.f32.mrf.mxu1 }
 0x3cd   :  { %v5794_v63 = vadd.f32 %v5793_v37, %v5761_v49  ;;  %v5807_v12 = vmul.f32 %v5761_v49, %v5761_v49  ;;  %v7222_v26 = vadd.f32 %v7221_v50, %v7220_v45 }
 0x3cf   :  { %v5810_v51 = vadd.f32 %v5809_v24, %v5807_v12  ;;  %v5764_v56 = vadd.f32 %v7222_v26, %v5715_v57 }
 0x3d1   :  { %v5770_v59 = vmul.f32 %v9219_v27, %v5764_v56  ;;  %v5792_v27 = vld [vmem:[%s9332_s5] sm:$0x1] }
 0x3d3   :  { %v6749_v10 = vpack.c.bf16 %v5770_v59, %v5761_v49  ;;  %v5795_v31 = vadd.f32 %v5794_v63, %v5770_v59  ;;  %v5808_v21 = vmul.f32 %v5770_v59, %v5770_v59 }
 0x3d5   :  { %6774 = vst [vmem:[%s9334_s4 + $0x18] sm:$0xff] %v6749_v10   ;;  %v5796_v60 = vrot.slane %v5795_v31, 4  ;;  %v5811_v3 = vadd.f32 %v5810_v51, %v5808_v21 }
 0x3d7   :  { %v5797_v22 = vadd.f32 %v5796_v60, %v5795_v31  ;;  %v5812_v43 = vrot.slane %v5811_v3, 4 }
 0x3d9   :  { %v5798_v62 = vrot.slane %v5797_v22, 2  ;;  %v5813_v55 = vadd.f32 %v5812_v43, %v5811_v3 }
 0x3db   :  { %v5799_v23 = vadd.f32 %v5798_v62, %v5797_v22  ;;  %v5814_v30 = vrot.slane %v5813_v55, 2 }
 0x3dd   :  { %v5800_v6 = vrot.slane %v5799_v23, 1  ;;  %v5815_v4 = vadd.f32 %v5814_v30, %v5813_v55 }
 0x3df   :  { %v5801_v53 = vadd.f32 %v5800_v6, %v5799_v23  ;;  %v5816_v39 = vrot.slane %v5815_v4, 1 }
 0x3e1   :  { %v5802_v5 = vadd.f32 %v5801_v53, %v5792_v27  ;;  %v5817_v46 = vadd.f32 %v5816_v39, %v5815_v4 }
 0x3e3   :  { %5803 = vst [vmem:[%s9332_s5] sm:$0x1] %v5802_v5  ;;  %v5818_v8 = vadd.f32 %v5817_v46, %v5804_v1 }
 0x3e5   :  { %5819 = vst [vmem:[%s9333_s6] sm:$0x1] %v5818_v8 }

</bundles_post_ra>
